<compile_context>
chip_gen: v7x
topology: tpu7x:2x2x1
jax: 0.10.0
libtpu: 0.0.40
codegen_flags: <defaults>
</compile_context>

<pallas_src>
import functools

import jax
import jax.numpy as jnp
from jax.experimental import pallas as pl
from jax.experimental.pallas import tpu as pltpu


def _vq_kernel(x_ref, et_ref, e_ref, e2h_ref, q_ref, ind_ref, cnt_ref,
               *, n_valid, tile_n):
    i = pl.program_id(0)

    x = x_ref[...]            # (TN, D)  native dtype (bf16 stays bf16 on MXU)
    e_t = et_ref[...]         # (D, K)   pre-transposed codebook (no XLU relayout)
    e = e_ref[...]            # (K, D)   codebook for the one-hot gather
    e2h = e2h_ref[...]        # (1, K)   f32, 0.5 * ||e_k||^2, precomputed once

    # argmax_k -(||x||^2 - 2 x.e_k + ||e_k||^2) == argmax_k (x.e_k - 0.5||e_k||^2)
    # (per-row ||x||^2 dropped, 2.0 folded into e2h; both argmax-invariant).
    xe = jnp.dot(x, e_t, preferred_element_type=jnp.float32)     # MXU, (TN, K)
    scores = xe - e2h                                            # (TN, K) f32

    ind = jnp.argmax(scores, axis=-1).astype(jnp.int32)          # (TN,)

    # Row-validity mask for the (possibly) ragged final tile: without a wrapper
    # pad, tail rows of x contain unspecified data; they must not reach the
    # counts or the quantize matmul (their HBM writes are masked by Pallas).
    row = i * tile_n + jax.lax.broadcasted_iota(jnp.int32, (tile_n, 1), 0)
    valid = row < n_valid                                        # (TN, 1)

    k_iota = jax.lax.broadcasted_iota(jnp.int32, scores.shape, 1)
    onehot = jnp.logical_and(k_iota == ind[:, None], valid)      # (TN, K) bool

    # quantize = embed[ind] via one_hot @ embed (exact MXU gather); invalid -> 0.
    q = jnp.dot(onehot.astype(e.dtype), e, preferred_element_type=jnp.float32)
    q_ref[...] = q.astype(q_ref.dtype)
    # TODO(synk): when D < 128, pack p=128//D rows per output row so the q
    # writeback is an unmasked full-lane store; measure the in-kernel relayout
    # cost vs. the store win (strongest on v5e) before enabling.

    # Lane-dense index output: one (1, TN) int32 slab per grid step.
    ind_ref[0, :] = ind

    # In-kernel histogram for perplexity (exact f32 counts, tail rows masked).
    cnt_ref[0, 0, :] = jnp.sum(onehot.astype(jnp.float32), axis=0)


def _tpu_vmem_and_cores():
    """(VMEM capacity bytes, #TensorCores sharing the grid) with safe fallbacks."""
    cap = 64 << 20            # conservative fallback: v7x physical VMEM per TC
    try:
        cap = int(pltpu.get_tpu_info().vmem_capacity_bytes)
    except Exception:
        pass
    num_tc = 1
    try:
        kind = jax.devices()[0].device_kind.lower()
        if ("v4" in kind) or ("v5p" in kind) or ("7" in kind):
            num_tc = 2        # megacore parts: 2 TensorCores share one grid
    except Exception:
        pass
    return cap, num_tc


def _pick_tile_n(n, d, k, itemsize, vmem_budget_bytes, num_tc, max_tile_n):
    """Row tile: as big as the VMEM budget allows (amortizes the ~0.35us
    per-grid-step overhead), multiple of 128, capped at max_tile_n.  On 2-TC
    parts keep >= 4 grid steps when N allows (2 per core, so the software
    pipeline overlaps); on 1-TC parts never shrink just to create steps."""
    d_pad = -(-d // 128) * 128            # lane padding of x/q tiles in VMEM
    k_pad = -(-k // 128) * 128
    per_row = (4 * d_pad * itemsize       # x in + q out, double-buffered
               + 3 * k_pad * 4            # f32 scores / onehot intermediates
               + 16)                      # index / count slivers
    cap_rows = max(128, vmem_budget_bytes // per_row)
    t = min(max_tile_n, cap_rows, max(n, 128))
    t = max(128, (t // 128) * 128)
    if num_tc > 1:
        while t > 128 and -(-n // t) < 2 * num_tc:
            t -= 128
    return t


def _const_spec(shape, *, single_buffered):
    """BlockSpec for a constant (revisited-every-step) input."""
    idx_map = lambda i: (0,) * len(shape)
    if single_buffered:
        # Constants never need double buffering; halves the codebook's VMEM
        # footprint (matters for production K/D, free here).
        return pl.BlockSpec(shape, idx_map, pipeline_mode=pl.Buffered(1))
    return pl.BlockSpec(shape, idx_map)


def euclidean_codebook_forward(x, embed, *, max_tile_n=8192):
    """Eval-mode EuclideanCodebook.forward (svq_temp=None, training=False).

    Returns (quantize, embed_ind, perplexity) matching the PyTorch module.
    """
    shape = x.shape
    d = shape[-1]
    flat = x.reshape(-1, d)                # rearrange(x, '... d -> (...) d'), no copy
    n = flat.shape[0]
    k = embed.shape[0]

    itemsize = jnp.dtype(x.dtype).itemsize
    vmem_cap, num_tc = _tpu_vmem_and_cores()
    tile_n = _pick_tile_n(n, d, k, itemsize, int(0.35 * vmem_cap), num_tc, max_tile_n)
    grid_n = -(-n // tile_n)               # cdiv; ragged tail handled by Pallas masks

    # Hoisted constants: transposed codebook for the distance matmul and
    # 0.5*||e||^2 (tiny, single-buffered in VMEM).
    embed_t = jnp.swapaxes(embed, 0, 1)                                  # (D, K)
    e2h = 0.5 * jnp.sum(embed.astype(jnp.float32) ** 2, axis=-1)[None, :]  # (1, K)

    kernel = functools.partial(_vq_kernel, n_valid=n, tile_n=tile_n)
    compiler_params = pltpu.CompilerParams(
        dimension_semantics=("parallel",),
        vmem_limit_bytes=max(32 << 20, int(0.75 * vmem_cap)))

    def run(single_buffered_consts):
        return pl.pallas_call(
            kernel,
            out_shape=(
                jax.ShapeDtypeStruct((n, d), x.dtype),              # quantize
                jax.ShapeDtypeStruct((1, n), jnp.int32),            # indices (lane-dense)
                jax.ShapeDtypeStruct((grid_n, 1, k), jnp.float32),  # per-tile counts
            ),
            grid_spec=pltpu.PrefetchScalarGridSpec(
                num_scalar_prefetch=0,
                grid=(grid_n,),
                in_specs=[
                    pl.BlockSpec((tile_n, d), lambda i: (i, 0)),    # x tile
                    _const_spec((d, k), single_buffered=single_buffered_consts),
                    _const_spec((k, d), single_buffered=single_buffered_consts),
                    _const_spec((1, k), single_buffered=single_buffered_consts),
                ],
                out_specs=[
                    pl.BlockSpec((tile_n, d), lambda i: (i, 0)),
                    pl.BlockSpec((1, tile_n), lambda i: (0, i)),
                    pl.BlockSpec((1, 1, k), lambda i: (i, 0, 0)),
                ],
            ),
            compiler_params=compiler_params,
        )(flat, embed_t, embed, e2h)

    try:
        q_flat, ind_out, cnt_out = run(True)
    except Exception:
        # Fallback if this jax build rejects pipeline_mode=pl.Buffered(1);
        # identical semantics, constants just double-buffered.
        q_flat, ind_out, cnt_out = run(False)

    quantize = q_flat.reshape(shape)
    embed_ind = ind_out.reshape(-1).reshape(shape[:-1])

    # Perplexity from the in-kernel histogram (no (N, K) one-hot in HBM).
    counts = jnp.sum(cnt_out.reshape(grid_n, k), axis=0)            # (K,)
    avg_probs = counts / jnp.float32(n)
    perplexity = jnp.exp(-jnp.sum(avg_probs * jnp.log(avg_probs + 1e-10)))

    # TODO(synk): for production codebook sizes (K >= ~1k) add a second
    # "arbitrary" K grid axis with a flash-style running (max, argmax) + partial
    # counts in VMEM scratch so (TN, K) tiles fit v7x's 64 MiB VMEM.
    return quantize, embed_ind, perplexity


def _check(x, embed):
    quantize, embed_ind, perplexity = euclidean_codebook_forward(x, embed)
    jax.block_until_ready((quantize, embed_ind, perplexity))

    d = x.shape[-1]
    k = embed.shape[0]
    flat = x.reshape(-1, d).astype(jnp.float32)
    e32 = embed.astype(jnp.float32)
    dist = -(jnp.sum(flat ** 2, axis=1, keepdims=True)
             - 2.0 * flat @ e32.T
             + jnp.sum(e32 ** 2, axis=1)[None, :])

    ki = embed_ind.reshape(-1).astype(jnp.int32)
    # tie-tolerant nearest-codeword check (x^2 term dropped in-kernel)
    chosen = jnp.take_along_axis(dist, ki[:, None], axis=1)[:, 0]
    assert jnp.allclose(chosen, dist.max(axis=-1), atol=1e-4, rtol=1e-5)
    # quantize == embed[ind]
    assert jnp.allclose(quantize.reshape(-1, d), embed[ki], atol=1e-5, rtol=1e-5)
    # perplexity matches the eval-mode bookkeeping for these indices
    onehot = jax.nn.one_hot(ki, k, dtype=jnp.float32)
    avg = onehot.mean(axis=0)
    p_ref = jnp.exp(-jnp.sum(avg * jnp.log(avg + 1e-10)))
    assert jnp.allclose(perplexity, p_ref, atol=1e-4, rtol=1e-4)


if __name__ == "__main__":
    # Module config (small, deterministic): dim=32, codebook_size=128,
    # kmeans_init=False -> embed ~ randn(codebook_size, dim).
    dim = 32
    codebook_size = 128

    key = jax.random.PRNGKey(0)
    k_x, k_e, k_x2 = jax.random.split(key, 3)
    embed = jax.random.normal(k_e, (codebook_size, dim), dtype=jnp.float32)

    # (batch=2, seq=128, dim=32): N = 256
    x = jax.random.normal(k_x, (2, 128, dim), dtype=jnp.float32)
    _check(x, embed)

    # ragged N = 2*75 = 150 (not a multiple of the tile): exercises the
    # Pallas ragged final block + in-kernel validity mask (no wrapper pad).
    x2 = jax.random.normal(k_x2, (2, 75, dim), dtype=jnp.float32)
    _check(x2, embed)

    # TODO(synk): training-mode EMA codebook update / dead-code expiry / kmeans
    # init and temperature sampling (svq_temp) are stateful host-side logic and
    # are not implemented in the kernel.
    print("KERNEL_OK")
</pallas_src>

<mosaic_0001>
module attributes {stable_mosaic.version = 11 : i64} {
  func.func @_vq_kernel(%arg0: i32, %arg1: memref<256x32xf32, #tpu.memory_space<vmem>>, %arg2: memref<32x128xf32, #tpu.memory_space<vmem>>, %arg3: memref<128x32xf32, #tpu.memory_space<vmem>>, %arg4: memref<1x128xf32, #tpu.memory_space<vmem>>, %arg5: memref<256x32xf32, #tpu.memory_space<vmem>>, %arg6: memref<1x256xi32, #tpu.memory_space<vmem>>, %arg7: memref<1x1x128xf32, #tpu.memory_space<vmem>>) attributes {dimension_semantics = [#tpu.dimension_semantics<parallel>], iteration_bounds = array<i64: 1>, scalar_prefetch = 0 : i64, scratch_operands = 0 : i64, tpu.core_type = #tpu.core_type<tc>, window_params = [{transform_indices = @transform_0, window_bounds = array<i64: 256, 32>}, {pipeline_mode = #tpu.pipeline_mode<synchronous>, transform_indices = @transform_1, window_bounds = array<i64: 32, 128>}, {pipeline_mode = #tpu.pipeline_mode<synchronous>, transform_indices = @transform_2, window_bounds = array<i64: 128, 32>}, {pipeline_mode = #tpu.pipeline_mode<synchronous>, transform_indices = @transform_3, window_bounds = array<i64: 1, 128>}, {transform_indices = @transform_4, window_bounds = array<i64: 256, 32>}, {transform_indices = @transform_5, window_bounds = array<i64: 1, 256>}, {transform_indices = @transform_6, window_bounds = array<i64: 1, 1, 128>}]} {
    %c0 = arith.constant 0 : index
    %c0_0 = arith.constant 0 : index
    %0 = vector.load %arg1[%c0, %c0_0] : memref<256x32xf32, #tpu.memory_space<vmem>>, vector<256x32xf32>
    %c0_1 = arith.constant 0 : index
    %c0_2 = arith.constant 0 : index
    %1 = vector.load %arg2[%c0_1, %c0_2] : memref<32x128xf32, #tpu.memory_space<vmem>>, vector<32x128xf32>
    %c0_3 = arith.constant 0 : index
    %c0_4 = arith.constant 0 : index
    %2 = vector.load %arg3[%c0_3, %c0_4] : memref<128x32xf32, #tpu.memory_space<vmem>>, vector<128x32xf32>
    %c0_5 = arith.constant 0 : index
    %c0_6 = arith.constant 0 : index
    %3 = vector.load %arg4[%c0_5, %c0_6] : memref<1x128xf32, #tpu.memory_space<vmem>>, vector<1x128xf32>
    %cst = arith.constant dense<0.000000e+00> : vector<256x128xf32>
    %4 = tpu.matmul %0, %1, %cst {dimension_numbers = #tpu.dot_dimension_numbers<[1], [0], [0], [1], [0, 0, 1, 1], [], []>} : vector<256x32xf32>, vector<32x128xf32>, vector<256x128xf32> -> vector<256x128xf32>
    %5 = vector.broadcast %3 : vector<1x128xf32> to vector<256x128xf32>
    %6 = arith.subf %4, %5 : vector<256x128xf32>
    %7 = tpu.reduce_index %6 {axis = 1 : i32, kind = #tpu.reduction_kind<arg_max>} : vector<256x128xf32> -> vector<256xi32>
    %c256_i32 = arith.constant 256 : i32
    %8 = arith.muli %arg0, %c256_i32 : i32
    %9 = tpu.iota {dimensions = array<i32: 0>} : vector<256x1xi32>
    %10 = vector.broadcast %8 : i32 to vector<256x1xi32>
    %11 = arith.addi %10, %9 : vector<256x1xi32>
    %c256_i32_7 = arith.constant 256 : i32
    %12 = vector.broadcast %c256_i32_7 : i32 to vector<256x1xi32>
    %13 = arith.cmpi slt, %11, %12 : vector<256x1xi32>
    %14 = tpu.iota {dimensions = array<i32: 1>} : vector<256x128xi32>
    %15 = vector.shape_cast %7 : vector<256xi32> to vector<256x1xi32>
    %16 = vector.broadcast %15 : vector<256x1xi32> to vector<256x128xi32>
    %17 = arith.cmpi eq, %14, %16 : vector<256x128xi32>
    %18 = vector.broadcast %13 : vector<256x1xi1> to vector<256x128xi1>
    %19 = arith.andi %17, %18 : vector<256x128xi1>
    %20 = arith.extui %19 : vector<256x128xi1> to vector<256x128xi32>
    %21 = arith.sitofp %20 : vector<256x128xi32> to vector<256x128xf32>
    %cst_8 = arith.constant dense<0.000000e+00> : vector<256x32xf32>
    %22 = tpu.matmul %21, %2, %cst_8 {dimension_numbers = #tpu.dot_dimension_numbers<[1], [0], [0], [1], [0, 0, 1, 1], [], []>} : vector<256x128xf32>, vector<128x32xf32>, vector<256x32xf32> -> vector<256x32xf32>
    %c0_9 = arith.constant 0 : index
    %c0_10 = arith.constant 0 : index
    %23 = vector.load %arg5[%c0_9, %c0_10] : memref<256x32xf32, #tpu.memory_space<vmem>>, vector<256x32xf32>
    tpu.vector_store %arg5[%c0_9, %c0_10], %22 {strides = array<i32>} : memref<256x32xf32, #tpu.memory_space<vmem>>, vector<256x32xf32>,
    %c0_11 = arith.constant 0 : index
    %c0_12 = arith.constant 0 : index
    %24 = vector.load %arg6[%c0_11, %c0_12] : memref<1x256xi32, #tpu.memory_space<vmem>>, vector<1x256xi32>
    %25 = vector.shape_cast %24 : vector<1x256xi32> to vector<256xi32>
    %26 = vector.shape_cast %7 : vector<256xi32> to vector<1x256xi32>
    tpu.vector_store %arg6[%c0_11, %c0_12], %26 {strides = array<i32>} : memref<1x256xi32, #tpu.memory_space<vmem>>, vector<1x256xi32>,
    %27 = arith.extui %19 : vector<256x128xi1> to vector<256x128xi32>
    %28 = arith.sitofp %27 : vector<256x128xi32> to vector<256x128xf32>
    %cst_13 = arith.constant dense<0.000000e+00> : vector<128xf32>
    %29 = vector.multi_reduction <add>, %28, %cst_13 [0] : vector<256x128xf32> to vector<128xf32>
    %c0_14 = arith.constant 0 : index
    %c0_15 = arith.constant 0 : index
    %c0_16 = arith.constant 0 : index
    %30 = vector.load %arg7[%c0_14, %c0_15, %c0_16] : memref<1x1x128xf32, #tpu.memory_space<vmem>>, vector<1x1x128xf32>
    %31 = vector.shape_cast %30 : vector<1x1x128xf32> to vector<128xf32>
    %32 = vector.shape_cast %29 : vector<128xf32> to vector<1x1x128xf32>
    tpu.vector_store %arg7[%c0_14, %c0_15, %c0_16], %32 {strides = array<i32>} : memref<1x1x128xf32, #tpu.memory_space<vmem>>, vector<1x1x128xf32>,
    return
  }
  func.func @transform_0(%arg0: i32) -> (i32, i32) {
    %c0_i32 = arith.constant 0 : i32
    %c0_i32_0 = arith.constant 0 : i32
    return %arg0, %c0_i32 : i32, i32
  }
  func.func @transform_1(%arg0: i32) -> (i32, i32) {
    %c0_i32 = arith.constant 0 : i32
    %c0_i32_0 = arith.constant 0 : i32
    %c0_i32_1 = arith.constant 0 : i32
    return %c0_i32, %c0_i32_0 : i32, i32
  }
  func.func @transform_2(%arg0: i32) -> (i32, i32) {
    %c0_i32 = arith.constant 0 : i32
    %c0_i32_0 = arith.constant 0 : i32
    %c0_i32_1 = arith.constant 0 : i32
    return %c0_i32, %c0_i32_0 : i32, i32
  }
  func.func @transform_3(%arg0: i32) -> (i32, i32) {
    %c0_i32 = arith.constant 0 : i32
    %c0_i32_0 = arith.constant 0 : i32
    %c0_i32_1 = arith.constant 0 : i32
    return %c0_i32, %c0_i32_0 : i32, i32
  }
  func.func @transform_4(%arg0: i32) -> (i32, i32) {
    %c0_i32 = arith.constant 0 : i32
    %c0_i32_0 = arith.constant 0 : i32
    return %arg0, %c0_i32 : i32, i32
  }
  func.func @transform_5(%arg0: i32) -> (i32, i32) {
    %c0_i32 = arith.constant 0 : i32
    %c0_i32_0 = arith.constant 0 : i32
    return %c0_i32, %arg0 : i32, i32
  }
  func.func @transform_6(%arg0: i32) -> (i32, i32, i32) {
    %c0_i32 = arith.constant 0 : i32
    %c0_i32_0 = arith.constant 0 : i32
    %c0_i32_1 = arith.constant 0 : i32
    return %arg0, %c0_i32, %c0_i32_0 : i32, i32, i32
  }
}

module attributes {stable_mosaic.version = 11 : i64} {
  func.func @_vq_kernel(%arg0: i32, %arg1: memref<256x32xf32, #tpu.memory_space<vmem>>, %arg2: memref<32x128xf32, #tpu.memory_space<vmem>>, %arg3: memref<128x32xf32, #tpu.memory_space<vmem>>, %arg4: memref<1x128xf32, #tpu.memory_space<vmem>>, %arg5: memref<256x32xf32, #tpu.memory_space<vmem>>, %arg6: memref<1x256xi32, #tpu.memory_space<vmem>>, %arg7: memref<1x1x128xf32, #tpu.memory_space<vmem>>) attributes {dimension_semantics = [#tpu.dimension_semantics<parallel>], iteration_bounds = array<i64: 1>, scalar_prefetch = 0 : i64, scratch_operands = 0 : i64, tpu.core_type = #tpu.core_type<tc>, window_params = [{transform_indices = @transform_0, window_bounds = array<i64: 256, 32>}, {pipeline_mode = #tpu.pipeline_mode<synchronous>, transform_indices = @transform_1, window_bounds = array<i64: 32, 128>}, {pipeline_mode = #tpu.pipeline_mode<synchronous>, transform_indices = @transform_2, window_bounds = array<i64: 128, 32>}, {pipeline_mode = #tpu.pipeline_mode<synchronous>, transform_indices = @transform_3, window_bounds = array<i64: 1, 128>}, {transform_indices = @transform_4, window_bounds = array<i64: 256, 32>}, {transform_indices = @transform_5, window_bounds = array<i64: 1, 256>}, {transform_indices = @transform_6, window_bounds = array<i64: 1, 1, 128>}]} {
    %c0 = arith.constant 0 : index
    %c0_0 = arith.constant 0 : index
    %0 = vector.load %arg1[%c0, %c0_0] : memref<256x32xf32, #tpu.memory_space<vmem>>, vector<256x32xf32>
    %c0_1 = arith.constant 0 : index
    %c0_2 = arith.constant 0 : index
    %1 = vector.load %arg2[%c0_1, %c0_2] : memref<32x128xf32, #tpu.memory_space<vmem>>, vector<32x128xf32>
    %c0_3 = arith.constant 0 : index
    %c0_4 = arith.constant 0 : index
    %2 = vector.load %arg3[%c0_3, %c0_4] : memref<128x32xf32, #tpu.memory_space<vmem>>, vector<128x32xf32>
    %c0_5 = arith.constant 0 : index
    %c0_6 = arith.constant 0 : index
    %3 = vector.load %arg4[%c0_5, %c0_6] : memref<1x128xf32, #tpu.memory_space<vmem>>, vector<1x128xf32>
    %cst = arith.constant dense<0.000000e+00> : vector<256x128xf32>
    %4 = tpu.matmul %0, %1, %cst {dimension_numbers = #tpu.dot_dimension_numbers<[1], [0], [0], [1], [0, 0, 1, 1], [], []>} : vector<256x32xf32>, vector<32x128xf32>, vector<256x128xf32> -> vector<256x128xf32>
    %5 = vector.broadcast %3 : vector<1x128xf32> to vector<256x128xf32>
    %6 = arith.subf %4, %5 : vector<256x128xf32>
    %7 = tpu.reduce_index %6 {axis = 1 : i32, kind = #tpu.reduction_kind<arg_max>} : vector<256x128xf32> -> vector<256xi32>
    %c256_i32 = arith.constant 256 : i32
    %8 = arith.muli %arg0, %c256_i32 : i32
    %9 = tpu.iota {dimensions = array<i32: 0>} : vector<256x1xi32>
    %10 = vector.broadcast %8 : i32 to vector<256x1xi32>
    %11 = arith.addi %10, %9 : vector<256x1xi32>
    %c256_i32_7 = arith.constant 256 : i32
    %12 = vector.broadcast %c256_i32_7 : i32 to vector<256x1xi32>
    %13 = arith.cmpi slt, %11, %12 : vector<256x1xi32>
    %14 = tpu.iota {dimensions = array<i32: 1>} : vector<256x128xi32>
    %15 = vector.shape_cast %7 : vector<256xi32> to vector<256x1xi32>
    %16 = vector.broadcast %15 : vector<256x1xi32> to vector<256x128xi32>
    %17 = arith.cmpi eq, %14, %16 : vector<256x128xi32>
    %18 = vector.broadcast %13 : vector<256x1xi1> to vector<256x128xi1>
    %19 = arith.andi %17, %18 : vector<256x128xi1>
    %20 = arith.extui %19 : vector<256x128xi1> to vector<256x128xi32>
    %21 = arith.sitofp %20 : vector<256x128xi32> to vector<256x128xf32>
    %cst_8 = arith.constant dense<0.000000e+00> : vector<256x32xf32>
    %22 = tpu.matmul %21, %2, %cst_8 {dimension_numbers = #tpu.dot_dimension_numbers<[1], [0], [0], [1], [0, 0, 1, 1], [], []>} : vector<256x128xf32>, vector<128x32xf32>, vector<256x32xf32> -> vector<256x32xf32>
    %c0_9 = arith.constant 0 : index
    %c0_10 = arith.constant 0 : index
    %23 = vector.load %arg5[%c0_9, %c0_10] : memref<256x32xf32, #tpu.memory_space<vmem>>, vector<256x32xf32>
    tpu.vector_store %arg5[%c0_9, %c0_10], %22 {strides = array<i32>} : memref<256x32xf32, #tpu.memory_space<vmem>>, vector<256x32xf32>,
    %c0_11 = arith.constant 0 : index
    %c0_12 = arith.constant 0 : index
    %24 = vector.load %arg6[%c0_11, %c0_12] : memref<1x256xi32, #tpu.memory_space<vmem>>, vector<1x256xi32>
    %25 = vector.shape_cast %24 : vector<1x256xi32> to vector<256xi32>
    %26 = vector.shape_cast %7 : vector<256xi32> to vector<1x256xi32>
    tpu.vector_store %arg6[%c0_11, %c0_12], %26 {strides = array<i32>} : memref<1x256xi32, #tpu.memory_space<vmem>>, vector<1x256xi32>,
    %27 = arith.extui %19 : vector<256x128xi1> to vector<256x128xi32>
    %28 = arith.sitofp %27 : vector<256x128xi32> to vector<256x128xf32>
    %cst_13 = arith.constant dense<0.000000e+00> : vector<128xf32>
    %29 = vector.multi_reduction <add>, %28, %cst_13 [0] : vector<256x128xf32> to vector<128xf32>
    %c0_14 = arith.constant 0 : index
    %c0_15 = arith.constant 0 : index
    %c0_16 = arith.constant 0 : index
    %30 = vector.load %arg7[%c0_14, %c0_15, %c0_16] : memref<1x1x128xf32, #tpu.memory_space<vmem>>, vector<1x1x128xf32>
    %31 = vector.shape_cast %30 : vector<1x1x128xf32> to vector<128xf32>
    %32 = vector.shape_cast %29 : vector<128xf32> to vector<1x1x128xf32>
    tpu.vector_store %arg7[%c0_14, %c0_15, %c0_16], %32 {strides = array<i32>} : memref<1x1x128xf32, #tpu.memory_space<vmem>>, vector<1x1x128xf32>,
    return
  }
  func.func @transform_0(%arg0: i32) -> (i32, i32) {
    %c0_i32 = arith.constant 0 : i32
    %c0_i32_0 = arith.constant 0 : i32
    return %arg0, %c0_i32 : i32, i32
  }
  func.func @transform_1(%arg0: i32) -> (i32, i32) {
    %c0_i32 = arith.constant 0 : i32
    %c0_i32_0 = arith.constant 0 : i32
    %c0_i32_1 = arith.constant 0 : i32
    return %c0_i32, %c0_i32_0 : i32, i32
  }
  func.func @transform_2(%arg0: i32) -> (i32, i32) {
    %c0_i32 = arith.constant 0 : i32
    %c0_i32_0 = arith.constant 0 : i32
    %c0_i32_1 = arith.constant 0 : i32
    return %c0_i32, %c0_i32_0 : i32, i32
  }
  func.func @transform_3(%arg0: i32) -> (i32, i32) {
    %c0_i32 = arith.constant 0 : i32
    %c0_i32_0 = arith.constant 0 : i32
    %c0_i32_1 = arith.constant 0 : i32
    return %c0_i32, %c0_i32_0 : i32, i32
  }
  func.func @transform_4(%arg0: i32) -> (i32, i32) {
    %c0_i32 = arith.constant 0 : i32
    %c0_i32_0 = arith.constant 0 : i32
    return %arg0, %c0_i32 : i32, i32
  }
  func.func @transform_5(%arg0: i32) -> (i32, i32) {
    %c0_i32 = arith.constant 0 : i32
    %c0_i32_0 = arith.constant 0 : i32
    return %c0_i32, %arg0 : i32, i32
  }
  func.func @transform_6(%arg0: i32) -> (i32, i32, i32) {
    %c0_i32 = arith.constant 0 : i32
    %c0_i32_0 = arith.constant 0 : i32
    %c0_i32_1 = arith.constant 0 : i32
    return %arg0, %c0_i32, %c0_i32_0 : i32, i32, i32
  }
}

</mosaic_0001>

<bundles_post_ra>
// kernel: tpu_custom_call.1
= control target key start
LH: loop header
LB: loop body
LE: loop exit
PB: predicated region body
PF: predicated region fallthrough
CT: control target
= control target key end

     0   :  { %12 = vsyncpa [#allocation3], 0  ;;  %vm75_vm0 = vcmask 261120   ;;  %s6023_s0 = inlined_call_operand.vmem [shape: f32[256,32], index: 0, kind: input, shape index: {}]   ;;  %s6024_s1 = inlined_call_operand.vmem [shape: f32[32,128], index: 1, kind: input, shape index: {}]   ;;  %s6025_s2 = inlined_call_operand.vmem [shape: f32[128,32], index: 2, kind: input, shape index: {}]   ;;  %s6026_s3 = inlined_call_operand.vmem [shape: f32[1,128], index: 3, kind: input, shape index: {}]   ;;  %s6027_s4 = inlined_call_operand.vmem [shape: f32[256,32], index: 4, kind: output, shape index: {0}]   ;;  %s6028_s5 = inlined_call_operand.hbm [shape: s32[1,256], index: 5, kind: output, shape index: {1}]   ;;  %s6029_s6 = inlined_call_operand.hbm [shape: f32[1,1,128], index: 6, kind: output, shape index: {2}]  }
   0x1   :  { %v54_v0 = vld [vmem:[%s6024_s1] sm:$0xff]  ;;  %v55_v1 = vld [vmem:[%s6024_s1 + $0x8] sm:$0xff]  ;;  %v56_v2 = vld [vmem:[%s6024_s1 + $0x10] sm:$0xff] }
   0x2   :  { %v4332_v3 = vpack.c.bf16 %v55_v1, %v54_v0  ;;  %v57_v4 = vld [vmem:[%s6024_s1 + $0x18] sm:$0xff]  ;;  %v22_v5 = vld [vmem:[%s6023_s0] sm:$0xff]  ;;  %v23_v7 = vld [vmem:[%s6023_s0 + $0x8] sm:$0xff] }
   0x3   :  { %v4336_v6 = vpack.c.bf16 %v57_v4, %v56_v2  ;;  %4204 = vmatprep.mubr.msk.f32.mxu0 %vm75_vm0, %v22_v5  ;;  %v24_v8 = vld [vmem:[%s6023_s0 + $0x10] sm:$0xff]  ;;  %v25_v9 = vld [vmem:[%s6023_s0 + $0x18] sm:$0xff] }
   0x4   :  { %4333 = vmatprep.subr.bf16.mxu0 %v4332_v3 }
   0x5   :  { %4335 = vmatpush3.bf16.msra.mxu0 %v4332_v3 }
   0x6   :  { %4337 = vmatprep.subr.bf16.mxu0 %v4336_v6 }
   0x9   :  { %4339 = vmatpush3.bf16.msra.mxu0 %v4336_v6 }
   0xc   :  { %4205 = vmatmul.mubr.msk.f32.vlgmr.msra.gmra.mrb[0].mxu0 %vm75_vm0, %v23_v7 }
   0xd   :  { %4207 = vmatprep.mubr.msk.f32.mxu0 %vm75_vm0, %v24_v8 }
   0xe   :  { %13 = vsyncpa [#allocation5], 0  ;;  %v26_v10 = vld [vmem:[%s6023_s0 + $0x20] sm:$0xff]  ;;  %v27_v11 = vld [vmem:[%s6023_s0 + $0x28] sm:$0xff] }
   0xf   :  { %v28_v12 = vld [vmem:[%s6023_s0 + $0x30] sm:$0xff]  ;;  %v29_v13 = vld [vmem:[%s6023_s0 + $0x38] sm:$0xff]  ;;  %v30_v14 = vld [vmem:[%s6023_s0 + $0x40] sm:$0xff] }
  0x10   :  { %4208 = vmatmul.mubr.msk.f32.gmra.mrb[2].mxu0 %vm75_vm0, %v25_v9  ;;  %v31_v15 = vld [vmem:[%s6023_s0 + $0x48] sm:$0xff]  ;;  %v32_v16 = vld [vmem:[%s6023_s0 + $0x50] sm:$0xff]  ;;  %v33_v17 = vld [vmem:[%s6023_s0 + $0x58] sm:$0xff] }
  0x11   :  { %4210 = vmatprep.mubr.msk.f32.mxu0 %vm75_vm0, %v26_v10  ;;  %v34_v18 = vld [vmem:[%s6023_s0 + $0x60] sm:$0xff]  ;;  %v35_v19 = vld [vmem:[%s6023_s0 + $0x68] sm:$0xff]  ;;  %v36_v20 = vld [vmem:[%s6023_s0 + $0x70] sm:$0xff] }
  0x12   :  { %v37_v21 = vld [vmem:[%s6023_s0 + $0x78] sm:$0xff]  ;;  %v38_v22 = vld [vmem:[%s6023_s0 + $0x80] sm:$0xff]  ;;  %v39_v23 = vld [vmem:[%s6023_s0 + $0x88] sm:$0xff] }
  0x13   :  { %v40_v24 = vld [vmem:[%s6023_s0 + $0x90] sm:$0xff]  ;;  %v41_v25 = vld [vmem:[%s6023_s0 + $0x98] sm:$0xff]  ;;  %v42_v26 = vld [vmem:[%s6023_s0 + $0xa0] sm:$0xff] }
  0x14   :  { %4211 = vmatmul.mubr.msk.f32.gmra.mrb[4].mxu0 %vm75_vm0, %v27_v11  ;;  %v43_v27 = vld [vmem:[%s6023_s0 + $0xa8] sm:$0xff]  ;;  %v44_v28 = vld [vmem:[%s6023_s0 + $0xb0] sm:$0xff]  ;;  %v45_v29 = vld [vmem:[%s6023_s0 + $0xb8] sm:$0xff] }
  0x15   :  { %4213 = vmatprep.mubr.msk.f32.mxu0 %vm75_vm0, %v28_v12  ;;  %v46_v30 = vld [vmem:[%s6023_s0 + $0xc0] sm:$0xff]  ;;  %v47_v31 = vld [vmem:[%s6023_s0 + $0xc8] sm:$0xff]  ;;  %v48_v32 = vld [vmem:[%s6023_s0 + $0xd0] sm:$0xff] }
  0x16   :  { %v49_v33 = vld [vmem:[%s6023_s0 + $0xd8] sm:$0xff]  ;;  %v50_v34 = vld [vmem:[%s6023_s0 + $0xe0] sm:$0xff]  ;;  %v51_v35 = vld [vmem:[%s6023_s0 + $0xe8] sm:$0xff] }
  0x17   :  { %v52_v36 = vld [vmem:[%s6023_s0 + $0xf0] sm:$0xff]  ;;  %v53_v37 = vld [vmem:[%s6023_s0 + $0xf8] sm:$0xff]  ;;  %v58_v38 = vld [vmem:[%s6025_s2] sm:$0xff] }
  0x18   :  { %4214 = vmatmul.mubr.msk.f32.gmra.mrb[6].mxu0 %vm75_vm0, %v29_v13  ;;  %v59_v39 = vld [vmem:[%s6025_s2 + $0x8] sm:$0xff]  ;;  %v60_v40 = vld [vmem:[%s6025_s2 + $0x10] sm:$0xff]  ;;  %v61_v42 = vld [vmem:[%s6025_s2 + $0x18] sm:$0xff] }
  0x19   :  { %4216 = vmatprep.mubr.msk.f32.mxu0 %vm75_vm0, %v30_v14  ;;  %v4340_v41 = vpack.c.bf16 %v59_v39, %v58_v38  ;;  %v4344_v43 = vpack.c.bf16 %v61_v42, %v60_v40  ;;  %v62_v44 = vld [vmem:[%s6025_s2 + $0x20] sm:$0xff]  ;;  %v63_v45 = vld [vmem:[%s6025_s2 + $0x28] sm:$0xff]  ;;  %v64_v47 = vld [vmem:[%s6025_s2 + $0x30] sm:$0xff] }
  0x1a   :  { %v4348_v46 = vpack.c.bf16 %v63_v45, %v62_v44  ;;  %v65_v48 = vld [vmem:[%s6025_s2 + $0x38] sm:$0xff]  ;;  %v4652_v50 = vld [vmem:[%s6026_s3] ss:$0 sm:$0xff]  ;;  %v67_v0 = vld [vmem:[%s6025_s2 + $0x48] sm:$0xff] }
  0x1b   :  { %4372 = vmatprep.subr.bf16.mxu1 %v4340_v41  ;;  %4341 = vmatprep.subr.bf16.mxu0 %v4340_v41  ;;  %v4352_v49 = vpack.c.bf16 %v65_v48, %v64_v47  ;;  %v66_v63 = vld [vmem:[%s6025_s2 + $0x40] sm:$0xff]  ;;  %v68_v5 = vld [vmem:[%s6025_s2 + $0x50] sm:$0xff]  ;;  %v69_v6 = vld [vmem:[%s6025_s2 + $0x58] sm:$0xff] }
  0x1c   :  { %4217 = vmatmul.mubr.msk.f32.gmra.mrb[8].mxu0 %vm75_vm0, %v31_v15  ;;  %4380 = vmatpush3.bf16.msra.mxu1 %v4340_v41  ;;  %v4356_v4 = vpack.c.bf16 %v67_v0, %v66_v63  ;;  %v70_v7 = vld [vmem:[%s6025_s2 + $0x60] sm:$0xff]  ;;  %v4360_v9 = vpack.c.bf16 %v69_v6, %v68_v5  ;;  %v71_v10 = vld [vmem:[%s6025_s2 + $0x68] sm:$0xff]  ;;  %v4445_v5 = vmov 1966171168  }
  0x1d   :  { %4219 = vmatprep.mubr.msk.f32.mxu0 %vm75_vm0, %v32_v16  ;;  %4343 = vmatpush3.bf16.msra.mxu0 %v4340_v41  ;;  %v4364_v14 = vpack.c.bf16 %v71_v10, %v70_v7  ;;  %v2078_v6 = vunpack.c.l.s4 %v4445_v5 }
  0x1e   :  { %4373 = vmatprep.subr.bf16.mxu1 %v4344_v43  ;;  %4345 = vmatprep.subr.bf16.mxu0 %v4344_v43 }
  0x20   :  { %4220 = vmatmul.mubr.msk.f32.gmra.mrb[10].mxu0 %vm75_vm0, %v33_v17  ;;  %4381 = vmatpush3.bf16.msra.mxu1 %v4344_v43 }
  0x21   :  { %4222 = vmatprep.mubr.msk.f32.mxu0 %vm75_vm0, %v34_v18  ;;  %4347 = vmatpush3.bf16.msra.mxu0 %v4344_v43 }
  0x22   :  { %4374 = vmatprep.subr.bf16.mxu1 %v4348_v46  ;;  %4349 = vmatprep.subr.bf16.mxu0 %v4348_v46 }
  0x24   :  { %4223 = vmatmul.mubr.msk.f32.gmra.mrb[12].mxu0 %vm75_vm0, %v35_v19  ;;  %4382 = vmatpush3.bf16.msra.mxu1 %v4348_v46 }
  0x25   :  { %4225 = vmatprep.mubr.msk.f32.mxu0 %vm75_vm0, %v36_v20  ;;  %4351 = vmatpush3.bf16.msra.mxu0 %v4348_v46 }
  0x26   :  { %4375 = vmatprep.subr.bf16.mxu1 %v4352_v49  ;;  %4353 = vmatprep.subr.bf16.mxu0 %v4352_v49 }
  0x28   :  { %4226 = vmatmul.mubr.msk.f32.gmra.mrb[14].mxu0 %vm75_vm0, %v37_v21  ;;  %4383 = vmatpush3.bf16.msra.mxu1 %v4352_v49 }
  0x29   :  { %4228 = vmatprep.mubr.msk.f32.mxu0 %vm75_vm0, %v38_v22  ;;  %4355 = vmatpush3.bf16.msra.mxu0 %v4352_v49 }
  0x2a   :  { %4376 = vmatprep.subr.bf16.mxu1 %v4356_v4  ;;  %4357 = vmatprep.subr.bf16.mxu0 %v4356_v4 }
  0x2c   :  { %4229 = vmatmul.mubr.msk.f32.gmra.mrb[16].mxu0 %vm75_vm0, %v39_v23  ;;  %4384 = vmatpush3.bf16.msra.mxu1 %v4356_v4  ;;  %v4444_v23 = vmov 0  }
  0x2d   :  { %4231 = vmatprep.mubr.msk.f32.mxu0 %vm75_vm0, %v40_v24  ;;  %4359 = vmatpush3.bf16.msra.mxu0 %v4356_v4  ;;  %v72_v24 = vld [vmem:[%s6025_s2 + $0x70] sm:$0xff] }
  0x2e   :  { %4377 = vmatprep.subr.bf16.mxu1 %v4360_v9  ;;  %4361 = vmatprep.subr.bf16.mxu0 %v4360_v9 }
  0x2f   :  { %4395 = vset.pattern.permute.xlu0 %v4444_v23  ;;  %4394 = vset.pattern.permute.xlu1 %v4444_v23 }
  0x30   :  { %4232 = vmatmul.mubr.msk.f32.gmra.mrb[18].mxu0 %vm75_vm0, %v41_v25  ;;  %4385 = vmatpush3.bf16.msra.mxu1 %v4360_v9  ;;  %v73_v25 = vld [vmem:[%s6025_s2 + $0x78] sm:$0xff]  ;;  %s4448_s2 = smov [#allocation4]  }
  0x31   :  { %4234 = vmatprep.mubr.msk.f32.mxu0 %vm75_vm0, %v42_v26  ;;  %4363 = vmatpush3.bf16.msra.mxu0 %v4360_v9  ;;  %s4001_s25 = sshll.u32 %s4448_s2, 4  ;;  %s4002_s25 = int_to_ptr.vmem [resolvable:$true] %s4001_s25 }
  0x32   :  { %4378 = vmatprep.subr.bf16.mxu1 %v4364_v14  ;;  %4365 = vmatprep.subr.bf16.mxu0 %v4364_v14  ;;  %s4396_s0 = scalar_lea.vmem %s4002_s25, 16  ;;  %s4400_s26 = scalar_lea.vmem %s4002_s25, 32 }
  0x33   :  { %p4397_p0 = scmp.ne.s32.totalorder %s4002_s25, %s4396_s0  ;;  %p4401_p1 = scmp.lt.s32.totalorder %s4002_s25, %s4002_s25 }
  0x34   :  { %4235 = vmatmul.mubr.msk.f32.gmra.mrb[20].mxu0 %vm75_vm0, %v43_v27  ;;  %4386 = vmatpush3.bf16.msra.mxu1 %v4364_v14  ;;  %p4402_p2 = scmp.lt.s32.totalorder %s4400_s26, %s4396_s0 }
  0x35   :  { %4237 = vmatprep.mubr.msk.f32.mxu0 %vm75_vm0, %v44_v28  ;;  %4367 = vmatpush3.bf16.msra.mxu0 %v4364_v14  ;;  %v4368_v28 = vpack.c.bf16 %v73_v25, %v72_v24 }
  0x36   :  { %p4403_p3 = por %p4402_p2, %p4401_p1 }
  0x37   :  { %4379 = vmatprep.subr.bf16.mxu1 %v4368_v28  ;;  %4369 = vmatprep.subr.bf16.mxu0 %v4368_v28 }
  0x38   :  { %4238 = vmatmul.mubr.msk.f32.gmra.mrb[22].mxu0 %vm75_vm0, %v45_v29  ;;  %4387 = vmatpush3.bf16.msra.mxu1 %v4368_v28  ;;  %p4404_p4 = pnand %p4403_p3, %p4397_p0 }
  0x39   :  { %4240 = vmatprep.mubr.msk.f32.mxu0 %vm75_vm0, %v46_v30  ;;  %4371 = vmatpush3.bf16.msra.mxu0 %v4368_v28 }
  0x3c   :  { %4241 = vmatmul.mubr.msk.f32.gmra.mrb[24].mxu0 %vm75_vm0, %v47_v31 }
  0x3d   :  { %4243 = vmatprep.mubr.msk.f32.mxu0 %vm75_vm0, %v48_v32 }
  0x40   :  { %4244 = vmatmul.mubr.msk.f32.gmra.mrb[26].mxu0 %vm75_vm0, %v49_v33 }
  0x41   :  { %4246 = vmatprep.mubr.msk.f32.mxu0 %vm75_vm0, %v50_v34 }
  0x44   :  { %4247 = vmatmul.mubr.msk.f32.gmra.mrb[28].mxu0 %vm75_vm0, %v51_v35 }
  0x45   :  { %4249 = vmatprep.mubr.msk.f32.mxu0 %vm75_vm0, %v52_v36 }
  0x48   :  { %4250 = vmatmul.mubr.msk.f32.gmra.mrb[30].mxu0 %vm75_vm0, %v53_v37 }
  0xdf   :  { %v4206_v51 = vpop.f32.mrb[0].mxu0 }
  0xe0   :  { %v238_v52 = vpop.f32.mrb[1].mxu0  ;;  %v404_v11 = vsub.f32 %v4206_v51, %v4652_v50 }
  0xe1   :  { %v403_v53 = vsub.f32 %v238_v52, %v4652_v50 }
  0xe3   :  { %435 = vmax.index.xlane.f32.xlu0 %v403_v53  ;;  %v4655_v54 = vpop.f32.mrb[2].mxu0 }
  0xe4   :  { %v4657_v55 = vpop.f32.mrb[3].mxu0  ;;  %v406_v63 = vsub.f32 %v4655_v54, %v4652_v50  ;;  %v6030_v54 = vlaneseq }
  0xe6   :  { %v4726_v7 = vshrl.u32 %v6030_v54, 7  ;;  %v4729_v9 = vand.u32 127, %v6030_v54 }
  0xe7   :  { %v4659_v56 = vpop.f32.mrb[4].mxu0 }
  0xe8   :  { %v408_v57 = vsub.f32 %v4659_v56, %v4652_v50  ;;  %v4663_v58 = vpop.f32.mrb[5].mxu0  ;;  %6065 = vst [vmem:[#allocation8_spill] sm:$0xff] %v4726_v7  ;;  %v4735_v10 = vsub.s32 1, %v4726_v7  ;;  %v4741_v56 = vsub.s32 3, %v4726_v7 }
  0xe9   :  { %v407_v4 = vsub.f32 %v4663_v58, %v4652_v50  ;;  %v4732_v58 = vsub.s32 0, %v4726_v7 }
  0xeb   :  { %v4215_v59 = vpop.f32.mrb[6].mxu0 }
  0xec   :  { %v410_v60 = vsub.f32 %v4215_v59, %v4652_v50  ;;  %v268_v61 = vpop.f32.mrb[7].mxu0  ;;  %v405_v59 = vsub.f32 %v4657_v55, %v4652_v50 }
  0xed   :  { %v409_v1 = vsub.f32 %v268_v61, %v4652_v50 }
  0xee   :  { %449 = vmax.index.xlane.f32.xlu0 %v410_v60 }
  0xef   :  { %v4218_v62 = vpop.f32.mrb[8].mxu0 }
  0xf0   :  { %v278_v2 = vpop.f32.mrb[9].mxu0  ;;  %v412_v3 = vsub.f32 %v4218_v62, %v4652_v50 }
  0xf1   :  { %v411_v12 = vsub.f32 %v278_v2, %v4652_v50 }
  0xf2   :  { %447 = vmax.index.xlane.f32.xlu0 %v409_v1  ;;  %453 = vmax.index.xlane.f32.xlu1 %v412_v3 }
  0xf3   :  { %v4221_v8 = vpop.f32.mrb[10].mxu0 }
  0xf4   :  { %v288_v13 = vpop.f32.mrb[11].mxu0  ;;  %v414_v15 = vsub.f32 %v4221_v8, %v4652_v50  ;;  %v2079_v8 = vunpack.c.0.s8 %v2078_v6 }
  0xf5   :  { %v413_v16 = vsub.f32 %v288_v13, %v4652_v50  ;;  %v4753_v13 = vsub.s32 7, %v4726_v7 }
  0xf6   :  { %437 = vmax.index.xlane.f32.xlu0 %v404_v11  ;;  %451 = vmax.index.xlane.f32.xlu1 %v411_v12  ;;  %v4747_v11 = vsub.s32 5, %v4726_v7  ;;  %v4750_v12 = vsub.s32 6, %v4726_v7 }
  0xf7   :  { %v4224_v17 = vpop.f32.mrb[12].mxu0 }
  0xf8   :  { %v298_v18 = vpop.f32.mrb[13].mxu0  ;;  %v416_v19 = vsub.f32 %v4224_v17, %v4652_v50 }
  0xf9   :  { %v415_v20 = vsub.f32 %v298_v18, %v4652_v50 }
  0xfa   :  { %457 = vmax.index.xlane.f32.xlu1 %v414_v15  ;;  %455 = vmax.index.xlane.f32.xlu0 %v413_v16  ;;  %v4756_v15 = vsub.s32 %v2079_v8, %v4726_v7 }
  0xfb   :  { %v4227_v21 = vpop.f32.mrb[14].mxu0 }
  0xfc   :  { %v308_v22 = vpop.f32.mrb[15].mxu0  ;;  %v418_v26 = vsub.f32 %v4227_v21, %v4652_v50 }
  0xfd   :  { %v417_v27 = vsub.f32 %v308_v22, %v4652_v50 }
  0xfe   :  { %461 = vmax.index.xlane.f32.xlu1 %v416_v19  ;;  %459 = vmax.index.xlane.f32.xlu0 %v415_v20  ;;  %v6033_v19 = vmov 1.0  }
  0xff   :  { %v4230_v29 = vpop.f32.mrb[16].mxu0 }
 0x100   :  { %v318_v30 = vpop.f32.mrb[17].mxu0  ;;  %v420_v31 = vsub.f32 %v4230_v29, %v4652_v50 }
 0x101   :  { %v419_v32 = vsub.f32 %v318_v30, %v4652_v50 }
 0x102   :  { %465 = vmax.index.xlane.f32.xlu1 %v418_v26  ;;  %463 = vmax.index.xlane.f32.xlu0 %v417_v27 }
 0x103   :  { %v4233_v33 = vpop.f32.mrb[18].mxu0 }
 0x104   :  { %v328_v34 = vpop.f32.mrb[19].mxu0  ;;  %v422_v35 = vsub.f32 %v4233_v33, %v4652_v50 }
 0x105   :  { %v421_v36 = vsub.f32 %v328_v34, %v4652_v50 }
 0x106   :  { %469 = vmax.index.xlane.f32.xlu1 %v420_v31  ;;  %467 = vmax.index.xlane.f32.xlu0 %v419_v32 }
 0x107   :  { %v4236_v37 = vpop.f32.mrb[20].mxu0 }
 0x108   :  { %v338_v38 = vpop.f32.mrb[21].mxu0  ;;  %v424_v39 = vsub.f32 %v4236_v37, %v4652_v50 }
 0x109   :  { %v423_v40 = vsub.f32 %v338_v38, %v4652_v50 }
 0x10a   :  { %473 = vmax.index.xlane.f32.xlu1 %v422_v35  ;;  %471 = vmax.index.xlane.f32.xlu0 %v421_v36 }
 0x10b   :  { %v4239_v41 = vpop.f32.mrb[22].mxu0 }
 0x10c   :  { %v348_v42 = vpop.f32.mrb[23].mxu0  ;;  %v426_v43 = vsub.f32 %v4239_v41, %v4652_v50  ;;  %v6031_v41 = vmov 0.0  }
 0x10d   :  { %v425_v44 = vsub.f32 %v348_v42, %v4652_v50 }
 0x10e   :  { %477 = vmax.index.xlane.f32.xlu1 %v424_v39  ;;  %475 = vmax.index.xlane.f32.xlu0 %v423_v40 }
 0x10f   :  { %v4242_v45 = vpop.f32.mrb[24].mxu0 }
 0x110   :  { %v358_v46 = vpop.f32.mrb[25].mxu0  ;;  %v428_v47 = vsub.f32 %v4242_v45, %v4652_v50 }
 0x111   :  { %v427_v48 = vsub.f32 %v358_v46, %v4652_v50 }
 0x112   :  { %481 = vmax.index.xlane.f32.xlu1 %v426_v43  ;;  %479 = vmax.index.xlane.f32.xlu0 %v425_v44 }
 0x113   :  { %v4245_v49 = vpop.f32.mrb[26].mxu0 }
 0x114   :  { %v368_v51 = vpop.f32.mrb[27].mxu0  ;;  %v430_v52 = vsub.f32 %v4245_v49, %v4652_v50 }
 0x115   :  { %v429_v0 = vsub.f32 %v368_v51, %v4652_v50 }
 0x116   :  { %485 = vmax.index.xlane.f32.xlu1 %v428_v47  ;;  %483 = vmax.index.xlane.f32.xlu0 %v427_v48 }
 0x117   :  { %v4248_v53 = vpop.f32.mrb[28].mxu0 }
 0x118   :  { %v378_v60 = vpop.f32.mrb[29].mxu0  ;;  %v432_v55 = vsub.f32 %v4248_v53, %v4652_v50 }
 0x119   :  { %v431_v61 = vsub.f32 %v378_v60, %v4652_v50 }
 0x11a   :  { %439 = vmax.index.xlane.f32.xlu0 %v405_v59  ;;  %489 = vmax.index.xlane.f32.xlu1 %v430_v52 }
 0x11b   :  { %v4251_v62 = vpop.f32.mrb[30].mxu0 }
 0x11c   :  { %v434_v1 = vsub.f32 %v4251_v62, %v4652_v50  ;;  %v388_v2 = vpop.f32.mrb[31].mxu0 }
 0x11d   :  { %v433_v3 = vsub.f32 %v388_v2, %v4652_v50  ;;  %v4738_v50 = vsub.s32 2, %v4726_v7 }
 0x11e   :  { %441 = vmax.index.xlane.f32.xlu0 %v406_v63  ;;  %487 = vmax.index.xlane.f32.xlu1 %v429_v0 }
 0x122   :  { %443 = vmax.index.xlane.f32.xlu0 %v407_v4  ;;  %493 = vmax.index.xlane.f32.xlu1 %v432_v55 }
 0x126   :  { %445 = vmax.index.xlane.f32.xlu0 %v408_v57  ;;  %491 = vmax.index.xlane.f32.xlu1 %v431_v61  ;;  %v4744_v57 = vsub.s32 4, %v4726_v7 }
 0x12a   :  { %495 = vmax.index.xlane.f32.xlu1 %v433_v3 }
 0x12e   :  { %497 = vmax.index.xlane.f32.xlu1 %v434_v1 }
 0x170   :  { %v436_v14 = vpop.xlane.xlu0 %435 }
 0x171   :  { %vm600_vm1 = vcmp.eq.s32.totalorder %v4729_v9, %v436_v14  ;;  %v1052_v16 = vrot.slane %v436_v14, %v4732_v58  ;;  %v1056_v17 = vrot.slane %v436_v14, %v4735_v10  ;;  %v1060_v18 = vrot.slane %v436_v14, %v4738_v50 }
 0x172   :  { %4284 = vmatprep.mubr.msk.f32.mxu0 %vm600_vm1, %v6033_v19  ;;  %v1064_v20 = vrot.slane %v436_v14, %v4741_v56  ;;  %v1068_v21 = vrot.slane %v436_v14, %v4744_v57  ;;  %v1072_v22 = vrot.slane %v436_v14, %v4747_v11  ;;  %v1076_v23 = vrot.slane %v436_v14, %v4750_v12 }
 0x173   :  { %v1080_v24 = vrot.slane %v436_v14, %v4753_v13  ;;  %v2073_v25 = vcombine.low %v1052_v16, %v1056_v17  ;;  %v4787_v42 = vsel %vm600_vm1, 1.0, %v6031_v41 }
 0x174   :  { %v2074_v26 = vcombine.low %v1060_v18, %v1064_v20  ;;  %v2075_v27 = vcombine.low %v1068_v21, %v1072_v22 }
 0x175   :  { %v2076_v28 = vcombine.low %v1076_v23, %v1080_v24  ;;  %v2083_v29 = vrot.slane %v2073_v25, %v4756_v15 }
 0x176   :  { %v2090_v30 = vrot.slane %v2074_v26, %v4756_v15  ;;  %v2097_v31 = vrot.slane %v2075_v27, %v4756_v15 }
 0x177   :  { %v2104_v32 = vrot.slane %v2076_v28, %v4756_v15 }
 0x178   :  { %v2105_v33 = vcombine.low %v2083_v29, %v2090_v30 }
 0x179   :  { %v2106_v34 = vcombine.low %v2097_v31, %v2104_v32 }
 0x17a   :  { %v2113_v35 = vrot.slane %v2105_v33, %v4756_v15 }
 0x17b   :  { %v4775_v36 = vpop.xlane.xlu0 %449  ;;  %v2120_v37 = vrot.slane %v2106_v34, %v4756_v15 }
 0x17c   :  { %vm607_vm2 = vcmp.eq.s32.totalorder %v4729_v9, %v4775_v36  ;;  %v1276_v39 = vrot.slane %v4775_v36, %v4732_v58  ;;  %v1280_v40 = vrot.slane %v4775_v36, %v4735_v10  ;;  %v1284_v44 = vrot.slane %v4775_v36, %v4738_v50 }
 0x17d   :  { %v2121_v38 = vcombine.low %v2113_v35, %v2120_v37  ;;  %v4793_v43 = vsel %vm607_vm2, 1.0, %v6031_v41  ;;  %v1288_v47 = vrot.slane %v4775_v36, %v4741_v56  ;;  %v1292_v48 = vrot.slane %v4775_v36, %v4744_v57 }
 0x17e   :  { %v1296_v49 = vrot.slane %v4775_v36, %v4747_v11  ;;  %v1300_v51 = vrot.slane %v4775_v36, %v4750_v12  ;;  %v1304_v59 = vrot.slane %v4775_v36, %v4753_v13  ;;  %v4817_v62 = vcombine.low %v1276_v39, %v1280_v40 }
 0x17f   :  { %3642 = vperm.xlu0 %4395, %v2121_v38   ;;  %v4797_v45 = vpop.xlane.xlu0 %447  ;;  %v454_v46 = vpop.xlane.xlu1 %453  ;;  %v4832_v8 = vcombine.low %v1284_v44, %v1288_v47 }
 0x180   :  { %6066 = vst [vmem:[#allocation9_spill] sm:$0xff] %v4797_v45  ;;  %vm606_vm3 = vcmp.eq.s32.totalorder %v4729_v9, %v4797_v45  ;;  %v1340_v52 = vrot.slane %v454_v46, %v4732_v58  ;;  %v1344_v53 = vrot.slane %v454_v46, %v4735_v10  ;;  %vm609_vm4 = vcmp.eq.s32.totalorder %v4729_v9, %v454_v46 }
 0x181   :  { %4293 = vmatprep.mubr.msk.f32.mxu1 %vm606_vm3, %v6033_v19  ;;  %v1348_v60 = vrot.slane %v454_v46, %v4738_v50  ;;  %v1352_v61 = vrot.slane %v454_v46, %v4741_v56  ;;  %v1356_v63 = vrot.slane %v454_v46, %v4744_v57  ;;  %v1360_v0 = vrot.slane %v454_v46, %v4747_v11 }
 0x182   :  { %4294 = vmatmul.mubr.msk.f32.vlgmr.msra.gmra.mrb[0].mxu1 %vm607_vm2, %v6033_v19  ;;  %v1364_v1 = vrot.slane %v454_v46, %v4750_v12  ;;  %v1368_v2 = vrot.slane %v454_v46, %v4753_v13  ;;  %v4828_v3 = vsel %vm606_vm3, 1.0, %v6031_v41  ;;  %v2514_v5 = vcombine.low %v1340_v52, %v1344_v53 }
 0x183   :  { %v438_v55 = vpop.xlane.xlu0 %437  ;;  %v4830_v4 = vpop.xlane.xlu1 %451  ;;  %v2515_v6 = vcombine.low %v1348_v60, %v1352_v61  ;;  %v2516_v14 = vcombine.low %v1356_v63, %v1360_v0  ;;  %v4847_v17 = vsel %vm609_vm4, 1.0, %v6031_v41  ;;  %v2418_v36 = vcombine.low %v1292_v48, %v1296_v49 }
 0x184   :  { %6067 = vst [vmem:[#allocation10_spill] sm:$0xff] %v4830_v4  ;;  %vm601_vm5 = vcmp.eq.s32.totalorder %v4729_v9, %v438_v55  ;;  %vm608_vm6 = vcmp.eq.s32.totalorder %v4729_v9, %v4830_v4  ;;  %v2517_v16 = vcombine.low %v1364_v1, %v1368_v2  ;;  %v2524_v18 = vrot.slane %v2514_v5, %v4756_v15 }
 0x185   :  { %4285 = vmatmul.mubr.msk.f32.vlgmr.msra.gmra.mrb[32].mxu0 %vm601_vm5, %v6033_v19  ;;  %4296 = vmatprep.mubr.msk.f32.mxu1 %vm608_vm6, %v6033_v19  ;;  %v2531_v20 = vrot.slane %v2515_v6, %v4756_v15  ;;  %v1084_v21 = vrot.slane %v438_v55, %v4732_v58  ;;  %v2538_v22 = vrot.slane %v2516_v14, %v4756_v15  ;;  %v4049_v48 = vsel %vm601_vm5, 1.0, %v6031_v41 }
 0x186   :  { %4297 = vmatmul.mubr.msk.f32.gmra.mrb[2].mxu1 %vm609_vm4, %v6033_v19  ;;  %v2545_v23 = vrot.slane %v2517_v16, %v4756_v15  ;;  %v1088_v24 = vrot.slane %v438_v55, %v4735_v10  ;;  %v1092_v25 = vrot.slane %v438_v55, %v4738_v50  ;;  %v1096_v29 = vrot.slane %v438_v55, %v4741_v56 }
 0x187   :  { %v4859_v26 = vpop.xlane.xlu1 %457  ;;  %v4861_v27 = vpop.xlane.xlu0 %455  ;;  %v2546_v28 = vcombine.low %v2524_v18, %v2531_v20  ;;  %v1100_v30 = vrot.slane %v438_v55, %v4744_v57  ;;  %v1104_v31 = vrot.slane %v438_v55, %v4747_v11  ;;  %v1108_v33 = vrot.slane %v438_v55, %v4750_v12 }
 0x188   :  { %6068 = vst [vmem:[#allocation11_spill] sm:$0xff] %v4859_v26  ;;  %6069 = vst [vmem:[#allocation12_spill] sm:$0xff] %v4861_v27  ;;  %vm610_vm7 = vcmp.eq.s32.totalorder %v4729_v9, %v4861_v27  ;;  %vm611_vm8 = vcmp.eq.s32.totalorder %v4729_v9, %v4859_v26  ;;  %v2547_v32 = vcombine.low %v2538_v22, %v2545_v23  ;;  %v4902_v60 = vsel %vm608_vm6, 1.0, %v6031_v41 }
 0x189   :  { %4299 = vmatprep.mubr.msk.f32.mxu1 %vm610_vm7, %v6033_v19  ;;  %v2554_v34 = vrot.slane %v2546_v28, %v4756_v15  ;;  %v1112_v35 = vrot.slane %v438_v55, %v4753_v13  ;;  %v2419_v37 = vcombine.low %v1300_v51, %v1304_v59  ;;  %v2122_v39 = vcombine.low %v1084_v21, %v1088_v24 }
 0x18a   :  { %4300 = vmatmul.mubr.msk.f32.gmra.mrb[4].mxu1 %vm611_vm8, %v6033_v19  ;;  %v2561_v38 = vrot.slane %v2547_v32, %v4756_v15  ;;  %v2123_v40 = vcombine.low %v1092_v25, %v1096_v29  ;;  %v2124_v44 = vcombine.low %v1100_v30, %v1104_v31  ;;  %v2426_v49 = vrot.slane %v4817_v62, %v4756_v15 }
 0x18b   :  { %v4882_v46 = vpop.xlane.xlu1 %461  ;;  %v4884_v47 = vpop.xlane.xlu0 %459  ;;  %v2125_v52 = vcombine.low %v1108_v33, %v1112_v35  ;;  %v2433_v51 = vrot.slane %v4832_v8, %v4756_v15  ;;  %v2132_v59 = vrot.slane %v2122_v39, %v4756_v15  ;;  %v4908_v61 = vsel %vm610_vm7, 1.0, %v6031_v41 }
 0x18c   :  { %6070 = vst [vmem:[#allocation13_spill] sm:$0xff] %v4882_v46  ;;  %6071 = vst [vmem:[#allocation14_spill] sm:$0xff] %v4884_v47  ;;  %v2562_v53 = vcombine.low %v2554_v34, %v2561_v38  ;;  %vm612_vm9 = vcmp.eq.s32.totalorder %v4729_v9, %v4884_v47  ;;  %vm613_vm10 = vcmp.eq.s32.totalorder %v4729_v9, %v4882_v46  ;;  %v4917_v0 = vsel %vm611_vm8, 1.0, %v6031_v41 }
 0x18d   :  { %4302 = vmatprep.mubr.msk.f32.mxu1 %vm612_vm9, %v6033_v19  ;;  %v2139_v62 = vrot.slane %v2123_v40, %v4756_v15  ;;  %v2146_v63 = vrot.slane %v2124_v44, %v4756_v15  ;;  %v2153_v1 = vrot.slane %v2125_v52, %v4756_v15  ;;  %v4925_v2 = vadd.f32 %v4049_v48, %v4787_v42 }
 0x18e   :  { %3669 = vperm.xlu0 %4395, %v2562_v53   ;;  %4303 = vmatmul.mubr.msk.f32.gmra.mrb[6].mxu1 %vm613_vm10, %v6033_v19  ;;  %v2440_v55 = vrot.slane %v2418_v36, %v4756_v15  ;;  %v4929_v5 = vsel %vm612_vm9, 1.0, %v6031_v41  ;;  %v2447_v16 = vrot.slane %v2419_v37, %v4756_v15  ;;  %v4936_v18 = vcombine.low %v2426_v49, %v2433_v51 }
 0x18f   :  { %v4931_v6 = vpop.xlane.xlu1 %465  ;;  %v4933_v8 = vpop.xlane.xlu0 %463  ;;  %v2154_v14 = vcombine.low %v2132_v59, %v2139_v62  ;;  %v4942_v42 = vsel %vm613_vm10, 1.0, %v6031_v41  ;;  %v2155_v20 = vcombine.low %v2146_v63, %v2153_v1 }
 0x190   :  { %6072 = vst [vmem:[#allocation15_spill] sm:$0xff] %v4931_v6  ;;  %6073 = vst [vmem:[#allocation16_spill] sm:$0xff] %v4933_v8  ;;  %vm614_vm11 = vcmp.eq.s32.totalorder %v4729_v9, %v4933_v8  ;;  %vm615_vm12 = vcmp.eq.s32.totalorder %v4729_v9, %v4931_v6  ;;  %v4950_v22 = vcombine.low %v2440_v55, %v2447_v16 }
 0x191   :  { %6074 = vst [vmem:[#allocation17_spill] sm:$0xff] %v4936_v18  ;;  %v2162_v21 = vrot.slane %v2154_v14, %v4756_v15  ;;  %4305 = vmatprep.mubr.msk.f32.mxu1 %vm614_vm11, %v6033_v19  ;;  %v2169_v25 = vrot.slane %v2155_v20, %v4756_v15  ;;  %v4958_v28 = vsel %vm614_vm11, 1.0, %v6031_v41  ;;  %v4961_v29 = vsel %vm615_vm12, 1.0, %v6031_v41 }
 0x192   :  { %6075 = vst [vmem:[#allocation18_spill] sm:$0xff] %v4950_v22  ;;  %4306 = vmatmul.mubr.msk.f32.gmra.mrb[8].mxu1 %vm615_vm12, %v6033_v19 }
 0x193   :  { %v470_v31 = vpop.xlane.xlu1 %469  ;;  %v4966_v32 = vpop.xlane.xlu0 %467  ;;  %v2170_v37 = vcombine.low %v2162_v21, %v2169_v25 }
 0x194   :  { %6076 = vst [vmem:[#allocation19_spill] sm:$0xff] %v4966_v32  ;;  %vm616_vm13 = vcmp.eq.s32.totalorder %v4729_v9, %v4966_v32  ;;  %vm617_vm14 = vcmp.eq.s32.totalorder %v4729_v9, %v470_v31  ;;  %v1596_v38 = vrot.slane %v470_v31, %v4732_v58  ;;  %v1600_v39 = vrot.slane %v470_v31, %v4735_v10 }
 0x195   :  { %4308 = vmatprep.mubr.msk.f32.mxu1 %vm616_vm13, %v6033_v19  ;;  %v1604_v40 = vrot.slane %v470_v31, %v4738_v50  ;;  %3645 = vperm.xlu1 %4394, %v2170_v37   ;;  %v4988_v48 = vsel %vm616_vm13, 1.0, %v6031_v41  ;;  %v1608_v49 = vrot.slane %v470_v31, %v4741_v56  ;;  %v1612_v51 = vrot.slane %v470_v31, %v4744_v57 }
 0x196   :  { %4309 = vmatmul.mubr.msk.f32.gmra.mrb[10].mxu1 %vm617_vm14, %v6033_v19  ;;  %v1616_v53 = vrot.slane %v470_v31, %v4747_v11  ;;  %v4995_v59 = vsel %vm617_vm14, 1.0, %v6031_v41  ;;  %v1620_v1 = vrot.slane %v470_v31, %v4750_v12  ;;  %v1624_v55 = vrot.slane %v470_v31, %v4753_v13 }
 0x197   :  { %v474_v62 = vpop.xlane.xlu1 %473  ;;  %v4997_v63 = vpop.xlane.xlu0 %471  ;;  %v2906_v14 = vcombine.low %v1596_v38, %v1600_v39  ;;  %v2907_v16 = vcombine.low %v1604_v40, %v1608_v49 }
 0x198   :  { %6077 = vst [vmem:[#allocation20_spill] sm:$0xff] %v4997_v63  ;;  %vm618_vm15 = vcmp.eq.s32.totalorder %v4729_v9, %v4997_v63  ;;  %vm619_vm1 = vcmp.eq.s32.totalorder %v4729_v9, %v474_v62  ;;  %v2908_v20 = vcombine.low %v1612_v51, %v1616_v53  ;;  %v2909_v37 = vcombine.low %v1620_v1, %v1624_v55 }
 0x199   :  { %v5005_v21 = vsel %vm618_vm15, 1.0, %v6031_v41  ;;  %4311 = vmatprep.mubr.msk.f32.mxu1 %vm618_vm15, %v6033_v19  ;;  %v5009_v25 = vsel %vm619_vm1, 1.0, %v6031_v41  ;;  %v2916_v54 = vrot.slane %v2906_v14, %v4756_v15  ;;  %v2923_v31 = vrot.slane %v2907_v16, %v4756_v15 }
 0x19a   :  { %4312 = vmatmul.mubr.msk.f32.gmra.mrb[12].mxu1 %vm619_vm1, %v6033_v19  ;;  %v2930_v38 = vrot.slane %v2908_v20, %v4756_v15  ;;  %v1660_v39 = vrot.slane %v474_v62, %v4732_v58  ;;  %v1664_v40 = vrot.slane %v474_v62, %v4735_v10  ;;  %v2937_v53 = vrot.slane %v2909_v37, %v4756_v15 }
 0x19b   :  { %v478_v49 = vpop.xlane.xlu1 %477  ;;  %v5017_v51 = vpop.xlane.xlu0 %475  ;;  %v1668_v52 = vrot.slane %v474_v62, %v4738_v50  ;;  %v1672_v1 = vrot.slane %v474_v62, %v4741_v56  ;;  %v1676_v55 = vrot.slane %v474_v62, %v4744_v57  ;;  %v2938_v14 = vcombine.low %v2916_v54, %v2923_v31 }
 0x19c   :  { %6078 = vst [vmem:[#allocation21_spill] sm:$0xff] %v5017_v51  ;;  %vm620_vm2 = vcmp.eq.s32.totalorder %v4729_v9, %v5017_v51  ;;  %vm621_vm3 = vcmp.eq.s32.totalorder %v4729_v9, %v478_v49  ;;  %v1680_v16 = vrot.slane %v474_v62, %v4747_v11  ;;  %v2939_v36 = vcombine.low %v2930_v38, %v2937_v53 }
 0x19d   :  { %v5028_v20 = vsel %vm620_vm2, 1.0, %v6031_v41  ;;  %4314 = vmatprep.mubr.msk.f32.mxu1 %vm620_vm2, %v6033_v19  ;;  %v5032_v37 = vsel %vm621_vm3, 1.0, %v6031_v41  ;;  %v1684_v44 = vrot.slane %v474_v62, %v4750_v12  ;;  %v2946_v34 = vrot.slane %v2938_v14, %v4756_v15 }
 0x19e   :  { %4315 = vmatmul.mubr.msk.f32.gmra.mrb[14].mxu1 %vm621_vm3, %v6033_v19  ;;  %v1688_v35 = vrot.slane %v474_v62, %v4753_v13  ;;  %v3004_v54 = vcombine.low %v1660_v39, %v1664_v40  ;;  %v3005_v31 = vcombine.low %v1668_v52, %v1672_v1  ;;  %v2953_v30 = vrot.slane %v2939_v36, %v4756_v15 }
 0x19f   :  { %v5038_v23 = vpop.xlane.xlu1 %481  ;;  %v5040_v24 = vpop.xlane.xlu0 %479  ;;  %v3006_v33 = vcombine.low %v1676_v55, %v1680_v16  ;;  %v1724_v41 = vrot.slane %v478_v49, %v4732_v58  ;;  %v1728_v38 = vrot.slane %v478_v49, %v4735_v10  ;;  %v6080_v40 = vmov 0.0  }
 0x1a0   :  { %6079 = vst [vmem:[#allocation22_spill] sm:$0xff] %v5040_v24  ;;  %vm622_vm4 = vcmp.eq.s32.totalorder %v4729_v9, %v5040_v24  ;;  %vm623_vm5 = vcmp.eq.s32.totalorder %v4729_v9, %v5038_v23  ;;  %v3007_v62 = vcombine.low %v1684_v44, %v1688_v35  ;;  %v3014_v52 = vrot.slane %v3004_v54, %v4756_v15 }
 0x1a1   :  { %v2954_v39 = vcombine.low %v2946_v34, %v2953_v30  ;;  %v5051_v53 = vsel %vm622_vm4, 1.0, %v6080_v40  ;;  %4317 = vmatprep.mubr.msk.f32.mxu1 %vm622_vm4, %v6033_v19  ;;  %v5055_v36 = vsel %vm623_vm5, 1.0, %v6080_v40  ;;  %v3021_v1 = vrot.slane %v3005_v31, %v4756_v15 }
 0x1a2   :  { %4318 = vmatmul.mubr.msk.f32.gmra.mrb[16].mxu1 %vm623_vm5, %v6033_v19  ;;  %v3028_v55 = vrot.slane %v3006_v33, %v4756_v15  ;;  %v3035_v14 = vrot.slane %v3007_v62, %v4756_v15  ;;  %v1732_v35 = vrot.slane %v478_v49, %v4738_v50  ;;  %v1736_v30 = vrot.slane %v478_v49, %v4741_v56 }
 0x1a3   :  { %3693 = vperm.xlu0 %4395, %v2954_v39   ;;  %v5063_v34 = vpop.xlane.xlu1 %485  ;;  %v5065_v44 = vpop.xlane.xlu0 %483  ;;  %v3036_v16 = vcombine.low %v3014_v52, %v3021_v1  ;;  %v1740_v54 = vrot.slane %v478_v49, %v4744_v57  ;;  %v1744_v31 = vrot.slane %v478_v49, %v4747_v11  ;;  %v1748_v19 = vrot.slane %v478_v49, %v4750_v12 }
 0x1a4   :  { %6081 = vst [vmem:[#allocation23_spill] sm:$0xff] %v5065_v44  ;;  %v3037_v7 = vcombine.low %v3028_v55, %v3035_v14  ;;  %vm624_vm6 = vcmp.eq.s32.totalorder %v4729_v9, %v5065_v44  ;;  %vm625_vm7 = vcmp.eq.s32.totalorder %v4729_v9, %v5063_v34  ;;  %v1752_v33 = vrot.slane %v478_v49, %v4753_v13 }
 0x1a5   :  { %v3044_v62 = vrot.slane %v3036_v16, %v4756_v15  ;;  %v5077_v39 = vsel %vm624_vm6, 1.0, %v6080_v40  ;;  %v6082_v52 = vmov 1.0   ;;  %v5081_v1 = vsel %vm625_vm7, 1.0, %v6080_v40 }
 0x1a6   :  { %4320 = vmatprep.mubr.msk.f32.mxu1 %vm624_vm6, %v6082_v52  ;;  %v3102_v6 = vcombine.low %v1724_v41, %v1728_v38  ;;  %v3051_v55 = vrot.slane %v3037_v7, %v4756_v15  ;;  %v3103_v14 = vcombine.low %v1732_v35, %v1736_v30  ;;  %v3104_v8 = vcombine.low %v1740_v54, %v1744_v31 }
 0x1a7   :  { %4321 = vmatmul.mubr.msk.f32.gmra.mrb[18].mxu1 %vm625_vm7, %v6082_v52  ;;  %v3105_v44 = vcombine.low %v1748_v19, %v1752_v33  ;;  %v5085_v24 = vpop.xlane.xlu0 %439  ;;  %v5087_v49 = vpop.xlane.xlu1 %489  ;;  %v1788_v51 = vrot.slane %v5038_v23, %v4732_v58  ;;  %v1792_v63 = vrot.slane %v5038_v23, %v4735_v10  ;;  %v1796_v7 = vrot.slane %v5038_v23, %v4738_v50 }
 0x1a8   :  { %v3112_v16 = vrot.slane %v3102_v6, %v4756_v15  ;;  %v3052_v41 = vcombine.low %v3044_v62, %v3051_v55  ;;  %v3119_v38 = vrot.slane %v3103_v14, %v4756_v15  ;;  %v3126_v19 = vrot.slane %v3104_v8, %v4756_v15 }
 0x1a9   :  { %v3133_v35 = vrot.slane %v3105_v44, %v4756_v15  ;;  %vm602_vm8 = vcmp.eq.s32.totalorder %v4729_v9, %v5085_v24  ;;  %v1800_v6 = vrot.slane %v5038_v23, %v4741_v56  ;;  %v1804_v30 = vrot.slane %v5038_v23, %v4744_v57 }
 0x1aa   :  { %v1808_v54 = vrot.slane %v5038_v23, %v4747_v11  ;;  %3699 = vperm.xlu0 %4395, %v3052_v41   ;;  %v3134_v31 = vcombine.low %v3112_v16, %v3119_v38  ;;  %v4050_v62 = vsel %vm602_vm8, 1.0, %v6080_v40  ;;  %4287 = vmatprep.mubr.msk.f32.mxu0 %vm602_vm8, %v6082_v52  ;;  %v1812_v8 = vrot.slane %v5038_v23, %v4750_v12 }
 0x1ab   :  { %v3135_v33 = vcombine.low %v3126_v19, %v3133_v35  ;;  %v3946_v44 = vadd.f32 %v4050_v62, %v4925_v2  ;;  %v5112_v55 = vpop.xlane.xlu0 %441  ;;  %v5114_v14 = vpop.xlane.xlu1 %487  ;;  %v1816_v32 = vrot.slane %v5038_v23, %v4753_v13  ;;  %v3200_v47 = vcombine.low %v1788_v51, %v1792_v63 }
 0x1ac   :  { %v3201_v41 = vcombine.low %v1796_v7, %v1800_v6  ;;  %v3142_v16 = vrot.slane %v3134_v31, %v4756_v15  ;;  %v3202_v19 = vcombine.low %v1804_v30, %v1808_v54  ;;  %vm603_vm9 = vcmp.eq.s32.totalorder %v4729_v9, %v5112_v55 }
 0x1ad   :  { %v3149_v38 = vrot.slane %v3135_v33, %v4756_v15  ;;  %v3203_v35 = vcombine.low %v1812_v8, %v1816_v32  ;;  %v3210_v2 = vrot.slane %v3200_v47, %v4756_v15  ;;  %v4051_v46 = vsel %vm603_vm9, 1.0, %v6080_v40  ;;  %4288 = vmatmul.mubr.msk.f32.gmra.mrb[34].mxu0 %vm603_vm9, %v6082_v52 }
 0x1ae   :  { %v3217_v62 = vrot.slane %v3201_v41, %v4756_v15  ;;  %v3224_v63 = vrot.slane %v3202_v19, %v4756_v15  ;;  %v3947_v51 = vadd.f32 %v4051_v46, %v3946_v44  ;;  %vm626_vm10 = vcmp.eq.s32.totalorder %v4729_v9, %v5114_v14 }
 0x1af   :  { %v3150_v23 = vcombine.low %v3142_v16, %v3149_v38  ;;  %v3231_v7 = vrot.slane %v3203_v35, %v4756_v15  ;;  %v5131_v32 = vsel %vm626_vm10, 1.0, %v6080_v40  ;;  %4323 = vmatprep.mubr.msk.f32.mxu1 %vm626_vm10, %v6082_v52  ;;  %vm627_vm11 = vcmp.eq.s32.totalorder %v4729_v9, %v5087_v49  ;;  %v5140_v46 = vpop.xlane.xlu0 %443  ;;  %v5142_v30 = vpop.xlane.xlu1 %493 }
 0x1b0   :  { %v3232_v6 = vcombine.low %v3210_v2, %v3217_v62  ;;  %v5137_v47 = vsel %vm627_vm11, 1.0, %v6080_v40  ;;  %4324 = vmatmul.mubr.msk.f32.gmra.mrb[20].mxu1 %vm627_vm11, %v6082_v52  ;;  %v1852_v54 = vrot.slane %v5063_v34, %v4732_v58  ;;  %v1856_v31 = vrot.slane %v5063_v34, %v4735_v10 }
 0x1b1   :  { %3705 = vperm.xlu0 %4395, %v3150_v23   ;;  %v1860_v33 = vrot.slane %v5063_v34, %v4738_v50  ;;  %v3233_v8 = vcombine.low %v3224_v63, %v3231_v7  ;;  %v1864_v41 = vrot.slane %v5063_v34, %v4741_v56  ;;  %v1868_v16 = vrot.slane %v5063_v34, %v4744_v57 }
 0x1b2   :  { %v3240_v44 = vrot.slane %v3232_v6, %v4756_v15  ;;  %v1872_v38 = vrot.slane %v5063_v34, %v4747_v11  ;;  %v1876_v19 = vrot.slane %v5063_v34, %v4750_v12  ;;  %v1880_v35 = vrot.slane %v5063_v34, %v4753_v13 }
 0x1b3   :  { %v3298_v2 = vcombine.low %v1852_v54, %v1856_v31  ;;  %v3247_v62 = vrot.slane %v3233_v8, %v4756_v15  ;;  %v3299_v23 = vcombine.low %v1860_v33, %v1864_v41  ;;  %vm604_vm12 = vcmp.eq.s32.totalorder %v4729_v9, %v5140_v46  ;;  %v5174_v41 = vpop.xlane.xlu0 %445 }
 0x1b4   :  { %v1916_v63 = vrot.slane %v5087_v49, %v4732_v58  ;;  %v3300_v7 = vcombine.low %v1868_v16, %v1872_v38  ;;  %v3301_v6 = vcombine.low %v1876_v19, %v1880_v35  ;;  %v4052_v26 = vsel %vm604_vm12, 1.0, %v6080_v40  ;;  %4290 = vmatprep.mubr.msk.f32.mxu0 %vm604_vm12, %v6082_v52  ;;  %v5176_v16 = vpop.xlane.xlu1 %491 }
 0x1b5   :  { %v3308_v27 = vrot.slane %v3298_v2, %v4756_v15  ;;  %v3248_v4 = vcombine.low %v3240_v44, %v3247_v62  ;;  %v3315_v34 = vrot.slane %v3299_v23, %v4756_v15  ;;  %v3948_v54 = vadd.f32 %v4052_v26, %v3947_v51 }
 0x1b6   :  { %v1920_v31 = vrot.slane %v5087_v49, %v4735_v10  ;;  %v3322_v33 = vrot.slane %v3300_v7, %v4756_v15  ;;  %v3329_v8 = vrot.slane %v3301_v6, %v4756_v15  ;;  %v1924_v38 = vrot.slane %v5087_v49, %v4738_v50 }
 0x1b7   :  { %v1928_v44 = vrot.slane %v5087_v49, %v4741_v56  ;;  %3711 = vperm.xlu0 %4395, %v3248_v4   ;;  %v3330_v19 = vcombine.low %v3308_v27, %v3315_v34  ;;  %v1932_v26 = vrot.slane %v5087_v49, %v4744_v57  ;;  %v1936_v51 = vrot.slane %v5087_v49, %v4747_v11 }
 0x1b8   :  { %v1940_v35 = vrot.slane %v5087_v49, %v4750_v12  ;;  %v3331_v2 = vcombine.low %v3322_v33, %v3329_v8  ;;  %v1944_v62 = vrot.slane %v5087_v49, %v4753_v13  ;;  %v3396_v23 = vcombine.low %v1916_v63, %v1920_v31 }
 0x1b9   :  { %v3397_v7 = vcombine.low %v1924_v38, %v1928_v44  ;;  %v3338_v6 = vrot.slane %v3330_v19, %v4756_v15  ;;  %v3398_v45 = vcombine.low %v1932_v26, %v1936_v51  ;;  %vm605_vm13 = vcmp.eq.s32.totalorder %v4729_v9, %v5174_v41 }
 0x1ba   :  { %vm628_vm14 = vcmp.eq.s32.totalorder %v4729_v9, %v5176_v16  ;;  %v3345_v4 = vrot.slane %v3331_v2, %v4756_v15  ;;  %v3399_v27 = vcombine.low %v1940_v35, %v1944_v62  ;;  %v3406_v34 = vrot.slane %v3396_v23, %v4756_v15  ;;  %4291 = vmatmul.mubr.msk.f32.gmra.mrb[36].mxu0 %vm605_vm13, %v6082_v52 }
 0x1bb   :  { %v3413_v33 = vrot.slane %v3397_v7, %v4756_v15  ;;  %v3420_v49 = vrot.slane %v3398_v45, %v4756_v15  ;;  %v4053_v63 = vsel %vm605_vm13, 1.0, %v6080_v40  ;;  %v5202_v31 = vsel %vm628_vm14, 1.0, %v6080_v40  ;;  %4326 = vmatprep.mubr.msk.f32.mxu1 %vm628_vm14, %v6082_v52 }
 0x1bc   :  { %vm629_vm15 = vcmp.eq.s32.totalorder %v4729_v9, %v5142_v30  ;;  %v3346_v8 = vcombine.low %v3338_v6, %v3345_v4  ;;  %v3427_v38 = vrot.slane %v3399_v27, %v4756_v15  ;;  %v3949_v19 = vadd.f32 %v4053_v63, %v3948_v54 }
 0x1bd   :  { %v3428_v44 = vcombine.low %v3406_v34, %v3413_v33  ;;  %4327 = vmatmul.mubr.msk.f32.gmra.mrb[22].mxu1 %vm629_vm15, %v6082_v52  ;;  %v5210_v26 = vsel %vm629_vm15, 1.0, %v6080_v40  ;;  %v1884_v45 = vrot.slane %v5114_v14, %v4732_v58  ;;  %v1888_v51 = vrot.slane %v5114_v14, %v4735_v10 }
 0x1be   :  { %v1892_v35 = vrot.slane %v5114_v14, %v4738_v50  ;;  %3717 = vperm.xlu0 %4395, %v3346_v8   ;;  %v3429_v2 = vcombine.low %v3420_v49, %v3427_v38  ;;  %v3950_v54 = vadd.f32 %v4828_v3, %v3949_v19  ;;  %v1896_v23 = vrot.slane %v5114_v14, %v4741_v56 }
 0x1bf   :  { %v3436_v62 = vrot.slane %v3428_v44, %v4756_v15  ;;  %v1900_v7 = vrot.slane %v5114_v14, %v4744_v57  ;;  %v1904_v6 = vrot.slane %v5114_v14, %v4747_v11  ;;  %v1908_v4 = vrot.slane %v5114_v14, %v4750_v12 }
 0x1c0   :  { %v1912_v27 = vrot.slane %v5114_v14, %v4753_v13  ;;  %v3443_v34 = vrot.slane %v3429_v2, %v4756_v15  ;;  %v3951_v33 = vadd.f32 %v4793_v43, %v3950_v54  ;;  %v3347_v3 = vcombine.low %v1884_v45, %v1888_v51 }
 0x1c1   :  { %v3348_v49 = vcombine.low %v1892_v35, %v1896_v23  ;;  %v3349_v63 = vcombine.low %v1900_v7, %v1904_v6  ;;  %v1148_v38 = vrot.slane %v5112_v55, %v4732_v58  ;;  %v1152_v44 = vrot.slane %v5112_v55, %v4735_v10 }
 0x1c2   :  { %v3350_v8 = vcombine.low %v1908_v4, %v1912_v27  ;;  %v3444_v19 = vcombine.low %v3436_v62, %v3443_v34  ;;  %v3952_v18 = vadd.f32 %v4902_v60, %v3951_v33  ;;  %v3357_v22 = vrot.slane %v3347_v3, %v4756_v15  ;;  %v5246_v62 = vpop.xlane.xlu1 %495 }
 0x1c3   :  { %v3364_v14 = vrot.slane %v3348_v49, %v4756_v15  ;;  %v3371_v2 = vrot.slane %v3349_v63, %v4756_v15  ;;  %v1156_v45 = vrot.slane %v5112_v55, %v4738_v50  ;;  %v1160_v51 = vrot.slane %v5112_v55, %v4741_v56 }
 0x1c4   :  { %v3378_v43 = vrot.slane %v3350_v8, %v4756_v15  ;;  %3723 = vperm.xlu0 %4395, %v3444_v19   ;;  %v3953_v35 = vadd.f32 %v4847_v17, %v3952_v18  ;;  %v1164_v54 = vrot.slane %v5112_v55, %v4744_v57  ;;  %v1168_v23 = vrot.slane %v5112_v55, %v4747_v11 }
 0x1c5   :  { %v3379_v60 = vcombine.low %v3357_v22, %v3364_v14  ;;  %v1172_v6 = vrot.slane %v5112_v55, %v4750_v12  ;;  %v1176_v4 = vrot.slane %v5112_v55, %v4753_v13  ;;  %v2220_v27 = vcombine.low %v1148_v38, %v1152_v44 }
 0x1c6   :  { %v3380_v7 = vcombine.low %v3371_v2, %v3378_v43  ;;  %v3954_v34 = vadd.f32 %v4908_v61, %v3953_v35  ;;  %v2221_v18 = vcombine.low %v1156_v45, %v1160_v51  ;;  %v2222_v22 = vcombine.low %v1164_v54, %v1168_v23 }
 0x1c7   :  { %v3387_v17 = vrot.slane %v3379_v60, %v4756_v15  ;;  %v2223_v3 = vcombine.low %v1172_v6, %v1176_v4  ;;  %v2230_v49 = vrot.slane %v2220_v27, %v4756_v15  ;;  %vm630_vm1 = vcmp.eq.s32.totalorder %v4729_v9, %v5246_v62 }
 0x1c8   :  { %v3394_v33 = vrot.slane %v3380_v7, %v4756_v15  ;;  %v3955_v63 = vadd.f32 %v4917_v0, %v3954_v34  ;;  %v2237_v8 = vrot.slane %v2221_v18, %v4756_v15  ;;  %v2244_v55 = vrot.slane %v2222_v22, %v4756_v15  ;;  %4329 = vmatprep.mubr.msk.f32.mxu1 %vm630_vm1, %v6082_v52 }
 0x1c9   :  { %v5266_v61 = vsel %vm630_vm1, 1.0, %v6080_v40  ;;  %v2251_v44 = vrot.slane %v2223_v3, %v4756_v15  ;;  %v1980_v19 = vrot.slane %v5142_v30, %v4732_v58  ;;  %v1984_v14 = vrot.slane %v5142_v30, %v4735_v10 }
 0x1ca   :  { %v3395_v38 = vcombine.low %v3387_v17, %v3394_v33  ;;  %v3956_v0 = vadd.f32 %v4929_v5, %v3955_v63  ;;  %v2252_v2 = vcombine.low %v2230_v49, %v2237_v8  ;;  %v1988_v43 = vrot.slane %v5142_v30, %v4738_v50 }
 0x1cb   :  { %v1992_v45 = vrot.slane %v5142_v30, %v4741_v56  ;;  %v2253_v51 = vcombine.low %v2244_v55, %v2251_v44  ;;  %v1996_v35 = vrot.slane %v5142_v30, %v4744_v57  ;;  %v2000_v60 = vrot.slane %v5142_v30, %v4747_v11  ;;  %v5301_v55 = vpop.xlane.xlu1 %497 }
 0x1cc   :  { %3720 = vperm.xlu0 %4395, %v3395_v38   ;;  %v2004_v54 = vrot.slane %v5142_v30, %v4750_v12  ;;  %v3957_v5 = vadd.f32 %v4942_v42, %v3956_v0  ;;  %v2260_v23 = vrot.slane %v2252_v2, %v4756_v15  ;;  %v2008_v7 = vrot.slane %v5142_v30, %v4753_v13 }
 0x1cd   :  { %v3494_v6 = vcombine.low %v1980_v19, %v1984_v14  ;;  %v2267_v4 = vrot.slane %v2253_v51, %v4756_v15  ;;  %v3495_v27 = vcombine.low %v1988_v43, %v1992_v45  ;;  %v3496_v34 = vcombine.low %v1996_v35, %v2000_v60 }
 0x1ce   :  { %v1116_v17 = vrot.slane %v5085_v24, %v4732_v58  ;;  %v3958_v18 = vadd.f32 %v4958_v28, %v3957_v5  ;;  %v3497_v22 = vcombine.low %v2004_v54, %v2008_v7  ;;  %v1120_v42 = vrot.slane %v5085_v24, %v4735_v10 }
 0x1cf   :  { %v3504_v33 = vrot.slane %v3494_v6, %v4756_v15  ;;  %v2268_v3 = vcombine.low %v2260_v23, %v2267_v4  ;;  %v3511_v49 = vrot.slane %v3495_v27, %v4756_v15  ;;  %v3518_v30 = vrot.slane %v3496_v34, %v4756_v15 }
 0x1d0   :  { %v1124_v63 = vrot.slane %v5085_v24, %v4738_v50  ;;  %v3959_v8 = vadd.f32 %v4961_v29, %v3958_v18  ;;  %v3525_v28 = vrot.slane %v3497_v22, %v4756_v15  ;;  %v1128_v38 = vrot.slane %v5085_v24, %v4741_v56 }
 0x1d1   :  { %v1132_v44 = vrot.slane %v5085_v24, %v4744_v57  ;;  %3651 = vperm.xlu1 %4394, %v2268_v3   ;;  %v3526_v19 = vcombine.low %v3504_v33, %v3511_v49  ;;  %v1136_v14 = vrot.slane %v5085_v24, %v4747_v11  ;;  %v1140_v0 = vrot.slane %v5085_v24, %v4750_v12 }
 0x1d2   :  { %v1144_v29 = vrot.slane %v5085_v24, %v4753_v13  ;;  %v3960_v2 = vadd.f32 %v4988_v48, %v3959_v8  ;;  %v3527_v43 = vcombine.low %v3518_v30, %v3525_v28  ;;  %v2171_v45 = vcombine.low %v1116_v17, %v1120_v42 }
 0x1d3   :  { %v2172_v51 = vcombine.low %v1124_v63, %v1128_v38  ;;  %v3534_v35 = vrot.slane %v3526_v19, %v4756_v15  ;;  %v2173_v60 = vcombine.low %v1132_v44, %v1136_v14  ;;  %vm631_vm2 = vcmp.eq.s32.totalorder %v4729_v9, %v5301_v55 }
 0x1d4   :  { %v2174_v54 = vcombine.low %v1140_v0, %v1144_v29  ;;  %v3961_v5 = vadd.f32 %v4995_v59, %v3960_v2  ;;  %v3541_v23 = vrot.slane %v3527_v43, %v4756_v15  ;;  %v2181_v7 = vrot.slane %v2171_v45, %v4756_v15  ;;  %4330 = vmatmul.mubr.msk.f32.gmra.mrb[24].mxu1 %vm631_vm2, %v6082_v52 }
 0x1d5   :  { %v2188_v24 = vrot.slane %v2172_v51, %v4756_v15  ;;  %v2195_v48 = vrot.slane %v2173_v60, %v4756_v15  ;;  %v5326_v4 = vsel %vm631_vm2, 1.0, %v6080_v40  ;;  %v1948_v27 = vrot.slane %v5176_v16, %v4732_v58 }
 0x1d6   :  { %v2202_v6 = vrot.slane %v2174_v54, %v4756_v15  ;;  %v3962_v59 = vadd.f32 %v5005_v21, %v3961_v5  ;;  %v3542_v34 = vcombine.low %v3534_v35, %v3541_v23  ;;  %v1952_v18 = vrot.slane %v5176_v16, %v4735_v10 }
 0x1d7   :  { %v2203_v17 = vcombine.low %v2181_v7, %v2188_v24  ;;  %v1956_v52 = vrot.slane %v5176_v16, %v4738_v50  ;;  %v1960_v33 = vrot.slane %v5176_v16, %v4741_v56  ;;  %v1964_v40 = vrot.slane %v5176_v16, %v4744_v57 }
 0x1d8   :  { %v2204_v22 = vcombine.low %v2195_v48, %v2202_v6  ;;  %v3963_v42 = vadd.f32 %v5009_v25, %v3962_v59  ;;  %3729 = vperm.xlu0 %4395, %v3542_v34   ;;  %v1968_v3 = vrot.slane %v5176_v16, %v4747_v11  ;;  %v1972_v49 = vrot.slane %v5176_v16, %v4750_v12 }
 0x1d9   :  { %v2211_v21 = vrot.slane %v2203_v17, %v4756_v15  ;;  %v1976_v63 = vrot.slane %v5176_v16, %v4753_v13  ;;  %v3445_v8 = vcombine.low %v1948_v27, %v1952_v18  ;;  %v3446_v28 = vcombine.low %v1956_v52, %v1960_v33 }
 0x1da   :  { %v2218_v30 = vrot.slane %v2204_v22, %v4756_v15  ;;  %v3964_v38 = vadd.f32 %v5028_v20, %v3963_v42  ;;  %v3447_v44 = vcombine.low %v1964_v40, %v1968_v3  ;;  %v1212_v25 = vrot.slane %v5174_v41, %v4732_v58 }
 0x1db   :  { %v1216_v19 = vrot.slane %v5174_v41, %v4735_v10  ;;  %v3448_v0 = vcombine.low %v1972_v49, %v1976_v63  ;;  %v3455_v29 = vrot.slane %v3445_v8, %v4756_v15  ;;  %v3462_v2 = vrot.slane %v3446_v28, %v4756_v15 }
 0x1dc   :  { %v2219_v14 = vcombine.low %v2211_v21, %v2218_v30  ;;  %v3965_v43 = vadd.f32 %v5032_v37, %v3964_v38  ;;  %v3469_v16 = vrot.slane %v3447_v44, %v4756_v15  ;;  %v1220_v20 = vrot.slane %v5174_v41, %v4738_v50 }
 0x1dd   :  { %v1224_v45 = vrot.slane %v5174_v41, %v4741_v56  ;;  %v3476_v51 = vrot.slane %v3448_v0, %v4756_v15  ;;  %v3477_v35 = vcombine.low %v3455_v29, %v3462_v2  ;;  %v1228_v60 = vrot.slane %v5174_v41, %v4744_v57 }
 0x1de   :  { %3648 = vperm.xlu1 %4394, %v2219_v14   ;;  %v1232_v54 = vrot.slane %v5174_v41, %v4747_v11  ;;  %v3966_v37 = vadd.f32 %v5051_v53, %v3965_v43  ;;  %v1236_v5 = vrot.slane %v5174_v41, %v4750_v12  ;;  %v1240_v23 = vrot.slane %v5174_v41, %v4753_v13 }
 0x1df   :  { %v2318_v7 = vcombine.low %v1212_v25, %v1216_v19  ;;  %v3478_v24 = vcombine.low %v3469_v16, %v3476_v51  ;;  %v3485_v48 = vrot.slane %v3477_v35, %v4756_v15  ;;  %v2319_v6 = vcombine.low %v1220_v20, %v1224_v45 }
 0x1e0   :  { %v2320_v27 = vcombine.low %v1228_v60, %v1232_v54  ;;  %v3967_v59 = vadd.f32 %v5055_v36, %v3966_v37  ;;  %v2321_v34 = vcombine.low %v1236_v5, %v1240_v23  ;;  %v1180_v53 = vrot.slane %v5140_v46, %v4732_v58 }
 0x1e1   :  { %v2328_v17 = vrot.slane %v2318_v7, %v4756_v15  ;;  %v3492_v18 = vrot.slane %v3478_v24, %v4756_v15  ;;  %v2335_v22 = vrot.slane %v2319_v6, %v4756_v15  ;;  %v1184_v52 = vrot.slane %v5140_v46, %v4735_v10 }
 0x1e2   :  { %v2342_v41 = vrot.slane %v2320_v27, %v4756_v15  ;;  %v3968_v33 = vadd.f32 %v5077_v39, %v3967_v59  ;;  %v2349_v40 = vrot.slane %v2321_v34, %v4756_v15  ;;  %v1188_v36 = vrot.slane %v5140_v46, %v4738_v50 }
 0x1e3   :  { %v1192_v42 = vrot.slane %v5140_v46, %v4741_v56  ;;  %v3493_v21 = vcombine.low %v3485_v48, %v3492_v18  ;;  %v2350_v3 = vcombine.low %v2328_v17, %v2335_v22  ;;  %v1196_v49 = vrot.slane %v5140_v46, %v4744_v57 }
 0x1e4   :  { %v1200_v30 = vrot.slane %v5140_v46, %v4747_v11  ;;  %v3969_v63 = vadd.f32 %v5081_v1, %v3968_v33  ;;  %v2351_v8 = vcombine.low %v2342_v41, %v2349_v40  ;;  %v1204_v39 = vrot.slane %v5140_v46, %v4750_v12 }
 0x1e5   :  { %v1208_v28 = vrot.slane %v5140_v46, %v4753_v13  ;;  %3726 = vperm.xlu0 %4395, %v3493_v21   ;;  %v2358_v38 = vrot.slane %v2350_v3, %v4756_v15  ;;  %v2269_v44 = vcombine.low %v1180_v53, %v1184_v52  ;;  %v2270_v25 = vcombine.low %v1188_v36, %v1192_v42 }
 0x1e6   :  { %v2271_v19 = vcombine.low %v1196_v49, %v1200_v30  ;;  %v3970_v14 = vadd.f32 %v5131_v32, %v3969_v63  ;;  %v2365_v0 = vrot.slane %v2351_v8, %v4756_v15  ;;  %v2012_v1 = vrot.slane %v5246_v62, %v4732_v58 }
 0x1e7   :  { %v2272_v29 = vcombine.low %v1204_v39, %v1208_v28  ;;  %v2279_v2 = vrot.slane %v2269_v44, %v4756_v15  ;;  %v2286_v43 = vrot.slane %v2270_v25, %v4756_v15  ;;  %v2016_v16 = vrot.slane %v5246_v62, %v4735_v10  ;;  %v6083_v44 = vld [vmem:[#allocation18_spill] sm:$0xff] }
 0x1e8   :  { %v2293_v46 = vrot.slane %v2271_v19, %v4756_v15  ;;  %v3971_v20 = vadd.f32 %v5137_v47, %v3970_v14  ;;  %v2366_v45 = vcombine.low %v2358_v38, %v2365_v0  ;;  %v2020_v51 = vrot.slane %v5246_v62, %v4738_v50 }
 0x1e9   :  { %v2300_v32 = vrot.slane %v2272_v29, %v4756_v15  ;;  %v2301_v35 = vcombine.low %v2279_v2, %v2286_v43  ;;  %v2024_v60 = vrot.slane %v5246_v62, %v4741_v56  ;;  %v2028_v54 = vrot.slane %v5246_v62, %v4744_v57  ;;  %v6087_v29 = vld [vmem:[#allocation9_spill] sm:$0xff] }
 0x1ea   :  { %v2032_v37 = vrot.slane %v5246_v62, %v4747_v11  ;;  %v3972_v5 = vadd.f32 %v5202_v31, %v3971_v20  ;;  %3657 = vperm.xlu1 %4394, %v2366_v45   ;;  %v2036_v23 = vrot.slane %v5246_v62, %v4750_v12  ;;  %v2040_v7 = vrot.slane %v5246_v62, %v4753_v13 }
 0x1eb   :  { %v2302_v47 = vcombine.low %v2293_v46, %v2300_v32  ;;  %v2309_v24 = vrot.slane %v2301_v35, %v4756_v15  ;;  %v3543_v48 = vcombine.low %v2012_v1, %v2016_v16  ;;  %v3544_v6 = vcombine.low %v2020_v51, %v2024_v60 }
 0x1ec   :  { %v3545_v27 = vcombine.low %v2028_v54, %v2032_v37  ;;  %v3973_v59 = vadd.f32 %v5210_v26, %v3972_v5  ;;  %v3546_v17 = vcombine.low %v2036_v23, %v2040_v7  ;;  %v2044_v31 = vrot.slane %v5301_v55, %v4732_v58 }
 0x1ed   :  { %v2316_v34 = vrot.slane %v2302_v47, %v4756_v15  ;;  %v3553_v53 = vrot.slane %v3543_v48, %v4756_v15  ;;  %v3560_v18 = vrot.slane %v3544_v6, %v4756_v15  ;;  %v2048_v62 = vrot.slane %v5301_v55, %v4735_v10  ;;  %v6095_v48 = vld [vmem:[#allocation10_spill] sm:$0xff] }
 0x1ee   :  { %v3567_v22 = vrot.slane %v3545_v27, %v4756_v15  ;;  %v3974_v41 = vadd.f32 %v5266_v61, %v3973_v59  ;;  %v3574_v26 = vrot.slane %v3546_v17, %v4756_v15  ;;  %v2052_v33 = vrot.slane %v5301_v55, %v4738_v50 }
 0x1ef   :  { %v2317_v52 = vcombine.low %v2309_v24, %v2316_v34  ;;  %v3575_v40 = vcombine.low %v3553_v53, %v3560_v18  ;;  %v2056_v36 = vrot.slane %v5301_v55, %v4741_v56  ;;  %v2060_v42 = vrot.slane %v5301_v55, %v4744_v57 }
 0x1f0   :  { %v2064_v21 = vrot.slane %v5301_v55, %v4747_v11  ;;  %v5442_v3 = vadd.f32 %v5326_v4, %v3974_v41  ;;  %v3576_v61 = vcombine.low %v3567_v22, %v3574_v26  ;;  %v2068_v49 = vrot.slane %v5301_v55, %v4750_v12  ;;  %v6085_v4 = vld [vmem:[#allocation17_spill] sm:$0xff] }
 0x1f1   :  { %3654 = vperm.xlu1 %4394, %v2317_v52   ;;  %v2072_v30 = vrot.slane %v5301_v55, %v4753_v13  ;;  %v3583_v63 = vrot.slane %v3575_v40, %v4756_v15  ;;  %v3592_v8 = vcombine.low %v2044_v31, %v2048_v62  ;;  %v3593_v39 = vcombine.low %v2052_v33, %v2056_v36 }
 0x1f2   :  { %v3594_v28 = vcombine.low %v2060_v42, %v2064_v21  ;;  %v3590_v38 = vrot.slane %v3576_v61, %v4756_v15  ;;  %v6084_v25 = vrot.slane %v6083_v44, %v4756_v15  ;;  %v6086_v19 = vrot.slane %v6085_v4, %v4756_v15 }
 0x1f3   :  { %v3595_v0 = vcombine.low %v2068_v49, %v2072_v30  ;;  %v1272_v1 = vrot.slane %v6087_v29, %v4753_v13  ;;  %v3602_v55 = vrot.slane %v3592_v8, %v4756_v15  ;;  %v3609_v2 = vrot.slane %v3593_v39, %v4756_v15 }
 0x1f4   :  { %v2464_v14 = vcombine.low %v6086_v19, %v6084_v25  ;;  %v3616_v43 = vrot.slane %v3594_v28, %v4756_v15  ;;  %v6088_v46 = vrot.slane %v6087_v29, %v4735_v10  ;;  %v6089_v16 = vrot.slane %v6087_v29, %v4732_v58  ;;  %v6096_v28 = vld [vmem:[#allocation11_spill] sm:$0xff] }
 0x1f5   :  { %v3591_v45 = vcombine.low %v3583_v63, %v3590_v38  ;;  %v3623_v32 = vrot.slane %v3595_v0, %v4756_v15  ;;  %v6090_v51 = vrot.slane %v6087_v29, %v4741_v56  ;;  %v6091_v35 = vrot.slane %v6087_v29, %v4738_v50 }
 0x1f6   :  { %v2367_v20 = vcombine.low %v6089_v16, %v6088_v46  ;;  %3663 = vperm.xlu1 %4394, %v2464_v14   ;;  %v6092_v54 = vrot.slane %v6087_v29, %v4747_v11  ;;  %v6093_v37 = vrot.slane %v6087_v29, %v4744_v57  ;;  %v3624_v47 = vcombine.low %v3602_v55, %v3609_v2 }
 0x1f7   :  { %v2368_v60 = vcombine.low %v6091_v35, %v6090_v51  ;;  %v6094_v23 = vrot.slane %v6087_v29, %v4750_v12  ;;  %v1308_v6 = vrot.slane %v6095_v48, %v4732_v58  ;;  %3732 = vperm.xlu0 %4395, %v3591_v45   ;;  %v3625_v27 = vcombine.low %v3616_v43, %v3623_v32  ;;  %v6097_v32 = vld [vmem:[#allocation12_spill] sm:$0xff] }
 0x1f8   :  { %v2369_v5 = vcombine.low %v6093_v37, %v6092_v54  ;;  %v2377_v24 = vrot.slane %v2367_v20, %v4756_v15  ;;  %v1312_v17 = vrot.slane %v6095_v48, %v4735_v10  ;;  %v3632_v31 = vrot.slane %v3624_v47, %v4756_v15 }
 0x1f9   :  { %v2370_v7 = vcombine.low %v6094_v23, %v1272_v1  ;;  %v2384_v59 = vrot.slane %v2368_v60, %v4756_v15  ;;  %v1316_v18 = vrot.slane %v6095_v48, %v4738_v50  ;;  %v1320_v22 = vrot.slane %v6095_v48, %v4741_v56 }
 0x1fa   :  { %v2391_v34 = vrot.slane %v2369_v5, %v4756_v15  ;;  %v3639_v62 = vrot.slane %v3625_v27, %v4756_v15  ;;  %v1324_v52 = vrot.slane %v6095_v48, %v4744_v57  ;;  %v1328_v26 = vrot.slane %v6095_v48, %v4747_v11 }
 0x1fb   :  { %v2398_v53 = vrot.slane %v2370_v7, %v4756_v15  ;;  %v2399_v41 = vcombine.low %v2377_v24, %v2384_v59  ;;  %v1332_v40 = vrot.slane %v6095_v48, %v4750_v12  ;;  %v1336_v36 = vrot.slane %v6095_v48, %v4753_v13 }
 0x1fc   :  { %v2465_v42 = vcombine.low %v1308_v6, %v1312_v17  ;;  %v3640_v21 = vcombine.low %v3632_v31, %v3639_v62  ;;  %v2466_v49 = vcombine.low %v1316_v18, %v1320_v22  ;;  %v2467_v30 = vcombine.low %v1324_v52, %v1328_v26  ;;  %v6098_v26 = vld [vmem:[#allocation13_spill] sm:$0xff] }
 0x1fd   :  { %v2400_v33 = vcombine.low %v2391_v34, %v2398_v53  ;;  %v2407_v61 = vrot.slane %v2399_v41, %v4756_v15  ;;  %v2468_v8 = vcombine.low %v1332_v40, %v1336_v36  ;;  %v1404_v38 = vrot.slane %v6096_v28, %v4732_v58 }
 0x1fe   :  { %v2475_v39 = vrot.slane %v2465_v42, %v4756_v15  ;;  %3735 = vperm.xlu0 %4395, %v3640_v21   ;;  %v2482_v44 = vrot.slane %v2466_v49, %v4756_v15  ;;  %v2489_v25 = vrot.slane %v2467_v30, %v4756_v15  ;;  %v1408_v4 = vrot.slane %v6096_v28, %v4735_v10 }
 0x1ff   :  { %v2414_v63 = vrot.slane %v2400_v33, %v4756_v15  ;;  %v1412_v19 = vrot.slane %v6096_v28, %v4738_v50  ;;  %v2496_v0 = vrot.slane %v2468_v8, %v4756_v15  ;;  %v1416_v29 = vrot.slane %v6096_v28, %v4741_v56 }
 0x200   :  { %v1420_v1 = vrot.slane %v6096_v28, %v4744_v57  ;;  %v2497_v55 = vcombine.low %v2475_v39, %v2482_v44  ;;  %v1424_v2 = vrot.slane %v6096_v28, %v4747_v11  ;;  %v1428_v43 = vrot.slane %v6096_v28, %v4750_v12 }
 0x201   :  { %v2415_v14 = vcombine.low %v2407_v61, %v2414_v63  ;;  %v1432_v46 = vrot.slane %v6096_v28, %v4753_v13  ;;  %v2498_v16 = vcombine.low %v2489_v25, %v2496_v0  ;;  %v2612_v20 = vcombine.low %v1404_v38, %v1408_v4 }
 0x202   :  { %v2613_v45 = vcombine.low %v1412_v19, %v1416_v29  ;;  %v1372_v51 = vrot.slane %v6097_v32, %v4732_v58  ;;  %v2505_v35 = vrot.slane %v2497_v55, %v4756_v15  ;;  %v2614_v60 = vcombine.low %v1420_v1, %v1424_v2  ;;  %v6099_v55 = vld [vmem:[#allocation14_spill] sm:$0xff] }
 0x203   :  { %3660 = vperm.xlu1 %4394, %v2415_v14   ;;  %v2615_v54 = vcombine.low %v1428_v43, %v1432_v46  ;;  %v1376_v37 = vrot.slane %v6097_v32, %v4735_v10  ;;  %v2512_v5 = vrot.slane %v2498_v16, %v4756_v15  ;;  %v2622_v47 = vrot.slane %v2612_v20, %v4756_v15 }
 0x204   :  { %v2629_v23 = vrot.slane %v2613_v45, %v4756_v15  ;;  %v1380_v7 = vrot.slane %v6097_v32, %v4738_v50  ;;  %v2636_v24 = vrot.slane %v2614_v60, %v4756_v15  ;;  %v1384_v6 = vrot.slane %v6097_v32, %v4741_v56 }
 0x205   :  { %v2643_v48 = vrot.slane %v2615_v54, %v4756_v15  ;;  %v1388_v27 = vrot.slane %v6097_v32, %v4744_v57  ;;  %v2513_v59 = vcombine.low %v2505_v35, %v2512_v5  ;;  %v1392_v17 = vrot.slane %v6097_v32, %v4747_v11 }
 0x206   :  { %v2644_v34 = vcombine.low %v2622_v47, %v2629_v23  ;;  %v1396_v31 = vrot.slane %v6097_v32, %v4750_v12  ;;  %v1400_v18 = vrot.slane %v6097_v32, %v4753_v13  ;;  %v2563_v22 = vcombine.low %v1372_v51, %v1376_v37 }
 0x207   :  { %v2645_v53 = vcombine.low %v2636_v24, %v2643_v48  ;;  %v2564_v62 = vcombine.low %v1380_v7, %v1384_v6  ;;  %3666 = vperm.xlu1 %4394, %v2513_v59   ;;  %v2565_v52 = vcombine.low %v1388_v27, %v1392_v17  ;;  %v1468_v33 = vrot.slane %v6098_v26, %v4732_v58 }
 0x208   :  { %v2652_v41 = vrot.slane %v2644_v34, %v4756_v15  ;;  %v1472_v40 = vrot.slane %v6098_v26, %v4735_v10  ;;  %v2566_v42 = vcombine.low %v1396_v31, %v1400_v18  ;;  %v2573_v21 = vrot.slane %v2563_v22, %v4756_v15  ;;  %v6100_v31 = vld [vmem:[#allocation19_spill] sm:$0xff] }
 0x209   :  { %v2659_v36 = vrot.slane %v2645_v53, %v4756_v15  ;;  %v2580_v61 = vrot.slane %v2564_v62, %v4756_v15  ;;  %v2587_v49 = vrot.slane %v2565_v52, %v4756_v15  ;;  %v1476_v30 = vrot.slane %v6098_v26, %v4738_v50 }
 0x20a   :  { %v1480_v63 = vrot.slane %v6098_v26, %v4741_v56  ;;  %v1484_v8 = vrot.slane %v6098_v26, %v4744_v57  ;;  %v2594_v28 = vrot.slane %v2566_v42, %v4756_v15  ;;  %v1488_v44 = vrot.slane %v6098_v26, %v4747_v11 }
 0x20b   :  { %v2660_v39 = vcombine.low %v2652_v41, %v2659_v36  ;;  %v2595_v38 = vcombine.low %v2573_v21, %v2580_v61  ;;  %v1492_v25 = vrot.slane %v6098_v26, %v4750_v12  ;;  %v1496_v4 = vrot.slane %v6098_v26, %v4753_v13 }
 0x20c   :  { %v2710_v19 = vcombine.low %v1468_v33, %v1472_v40  ;;  %v2711_v14 = vcombine.low %v1476_v30, %v1480_v63  ;;  %v2596_v0 = vcombine.low %v2587_v49, %v2594_v28  ;;  %v2712_v1 = vcombine.low %v1484_v8, %v1488_v44  ;;  %v6101_v44 = vld [vmem:[#allocation20_spill] sm:$0xff] }
 0x20d   :  { %3675 = vperm.xlu1 %4394, %v2660_v39   ;;  %v2603_v29 = vrot.slane %v2595_v38, %v4756_v15  ;;  %v1436_v2 = vrot.slane %v6099_v55, %v4732_v58  ;;  %v2713_v43 = vcombine.low %v1492_v25, %v1496_v4  ;;  %v1440_v20 = vrot.slane %v6099_v55, %v4735_v10 }
 0x20e   :  { %v2720_v46 = vrot.slane %v2710_v19, %v4756_v15  ;;  %v2727_v16 = vrot.slane %v2711_v14, %v4756_v15  ;;  %v2610_v45 = vrot.slane %v2596_v0, %v4756_v15  ;;  %v2734_v32 = vrot.slane %v2712_v1, %v4756_v15 }
 0x20f   :  { %v1444_v51 = vrot.slane %v6099_v55, %v4738_v50  ;;  %v1448_v35 = vrot.slane %v6099_v55, %v4741_v56  ;;  %v2741_v60 = vrot.slane %v2713_v43, %v4756_v15  ;;  %v1452_v37 = vrot.slane %v6099_v55, %v4744_v57 }
 0x210   :  { %v2742_v54 = vcombine.low %v2720_v46, %v2727_v16  ;;  %v1456_v5 = vrot.slane %v6099_v55, %v4747_v11  ;;  %v2611_v47 = vcombine.low %v2603_v29, %v2610_v45  ;;  %v1460_v23 = vrot.slane %v6099_v55, %v4750_v12 }
 0x211   :  { %v1464_v7 = vrot.slane %v6099_v55, %v4753_v13  ;;  %v2661_v24 = vcombine.low %v1436_v2, %v1440_v20  ;;  %v2743_v48 = vcombine.low %v2734_v32, %v2741_v60  ;;  %v2662_v27 = vcombine.low %v1444_v51, %v1448_v35 }
 0x212   :  { %v2750_v6 = vrot.slane %v2742_v54, %v4756_v15  ;;  %v2663_v59 = vcombine.low %v1452_v37, %v1456_v5  ;;  %3672 = vperm.xlu1 %4394, %v2611_v47   ;;  %v1564_v53 = vrot.slane %v6100_v31, %v4732_v58  ;;  %v1568_v18 = vrot.slane %v6100_v31, %v4735_v10  ;;  %v6102_v5 = vld [vmem:[#allocation21_spill] sm:$0xff] }
 0x213   :  { %v2664_v34 = vcombine.low %v1460_v23, %v1464_v7  ;;  %v2671_v17 = vrot.slane %v2661_v24, %v4756_v15  ;;  %v2757_v22 = vrot.slane %v2743_v48, %v4756_v15  ;;  %v2678_v62 = vrot.slane %v2662_v27, %v4756_v15 }
 0x214   :  { %v2685_v41 = vrot.slane %v2663_v59, %v4756_v15  ;;  %v1572_v52 = vrot.slane %v6100_v31, %v4738_v50  ;;  %v1576_v33 = vrot.slane %v6100_v31, %v4741_v56  ;;  %v1580_v40 = vrot.slane %v6100_v31, %v4744_v57 }
 0x215   :  { %v2692_v26 = vrot.slane %v2664_v34, %v4756_v15  ;;  %v1584_v36 = vrot.slane %v6100_v31, %v4747_v11  ;;  %v2758_v42 = vcombine.low %v2750_v6, %v2757_v22  ;;  %v2693_v21 = vcombine.low %v2671_v17, %v2678_v62 }
 0x216   :  { %v1588_v61 = vrot.slane %v6100_v31, %v4750_v12  ;;  %v1592_v49 = vrot.slane %v6100_v31, %v4753_v13  ;;  %v2857_v63 = vcombine.low %v1564_v53, %v1568_v18  ;;  %v2858_v8 = vcombine.low %v1572_v52, %v1576_v33 }
 0x217   :  { %v2694_v30 = vcombine.low %v2685_v41, %v2692_v26  ;;  %v2859_v39 = vcombine.low %v1580_v40, %v1584_v36  ;;  %3681 = vperm.xlu1 %4394, %v2758_v42   ;;  %v2701_v28 = vrot.slane %v2693_v21, %v4756_v15  ;;  %v1628_v25 = vrot.slane %v6101_v44, %v4732_v58  ;;  %v6103_v42 = vld [vmem:[#allocation22_spill] sm:$0xff] }
 0x218   :  { %v2860_v38 = vcombine.low %v1588_v61, %v1592_v49  ;;  %v1632_v4 = vrot.slane %v6101_v44, %v4735_v10  ;;  %v2867_v14 = vrot.slane %v2857_v63, %v4756_v15  ;;  %v2874_v0 = vrot.slane %v2858_v8, %v4756_v15 }
 0x219   :  { %v2708_v19 = vrot.slane %v2694_v30, %v4756_v15  ;;  %v2881_v29 = vrot.slane %v2859_v39, %v4756_v15  ;;  %v1636_v55 = vrot.slane %v6101_v44, %v4738_v50  ;;  %v1640_v2 = vrot.slane %v6101_v44, %v4741_v56 }
 0x21a   :  { %v2888_v1 = vrot.slane %v2860_v38, %v4756_v15  ;;  %v1644_v43 = vrot.slane %v6101_v44, %v4744_v57  ;;  %v2889_v16 = vcombine.low %v2867_v14, %v2874_v0  ;;  %v1648_v20 = vrot.slane %v6101_v44, %v4747_v11 }
 0x21b   :  { %v2709_v46 = vcombine.low %v2701_v28, %v2708_v19  ;;  %v1652_v45 = vrot.slane %v6101_v44, %v4750_v12  ;;  %v1656_v51 = vrot.slane %v6101_v44, %v4753_v13  ;;  %v2955_v35 = vcombine.low %v1628_v25, %v1632_v4 }
 0x21c   :  { %v2890_v32 = vcombine.low %v2881_v29, %v2888_v1  ;;  %v2956_v60 = vcombine.low %v1636_v55, %v1640_v2  ;;  %v2897_v54 = vrot.slane %v2889_v16, %v4756_v15  ;;  %v2957_v37 = vcombine.low %v1644_v43, %v1648_v20 }
 0x21d   :  { %3678 = vperm.xlu1 %4394, %v2709_v46   ;;  %v1692_v47 = vrot.slane %v6102_v5, %v4732_v58  ;;  %v1696_v23 = vrot.slane %v6102_v5, %v4735_v10  ;;  %v2958_v24 = vcombine.low %v1652_v45, %v1656_v51  ;;  %v2965_v48 = vrot.slane %v2955_v35, %v4756_v15  ;;  %v6104_v45 = vld [vmem:[#allocation23_spill] sm:$0xff] }
 0x21e   :  { %v2904_v7 = vrot.slane %v2890_v32, %v4756_v15  ;;  %v2972_v6 = vrot.slane %v2956_v60, %v4756_v15  ;;  %v2979_v27 = vrot.slane %v2957_v37, %v4756_v15  ;;  %v1700_v59 = vrot.slane %v6102_v5, %v4738_v50 }
 0x21f   :  { %v1704_v34 = vrot.slane %v6102_v5, %v4741_v56  ;;  %v1708_v17 = vrot.slane %v6102_v5, %v4744_v57  ;;  %v2986_v53 = vrot.slane %v2958_v24, %v4756_v15  ;;  %v1712_v22 = vrot.slane %v6102_v5, %v4747_v11 }
 0x220   :  { %v2905_v31 = vcombine.low %v2897_v54, %v2904_v7  ;;  %v2987_v18 = vcombine.low %v2965_v48, %v2972_v6  ;;  %v1716_v62 = vrot.slane %v6102_v5, %v4750_v12  ;;  %v1720_v41 = vrot.slane %v6102_v5, %v4753_v13 }
 0x221   :  { %v3053_v52 = vcombine.low %v1692_v47, %v1696_v23  ;;  %v3054_v26 = vcombine.low %v1700_v59, %v1704_v34  ;;  %v2988_v33 = vcombine.low %v2979_v27, %v2986_v53  ;;  %v3055_v36 = vcombine.low %v1708_v17, %v1712_v22  ;;  %v6105_v22 = vld [vmem:[#allocation16_spill] sm:$0xff] }
 0x222   :  { %3690 = vperm.xlu1 %4394, %v2905_v31   ;;  %v2995_v40 = vrot.slane %v2987_v18, %v4756_v15  ;;  %v1756_v21 = vrot.slane %v6103_v42, %v4732_v58  ;;  %v3056_v61 = vcombine.low %v1716_v62, %v1720_v41  ;;  %v1760_v63 = vrot.slane %v6103_v42, %v4735_v10 }
 0x223   :  { %v3063_v49 = vrot.slane %v3053_v52, %v4756_v15  ;;  %v3070_v30 = vrot.slane %v3054_v26, %v4756_v15  ;;  %v3002_v8 = vrot.slane %v2988_v33, %v4756_v15  ;;  %v3077_v39 = vrot.slane %v3055_v36, %v4756_v15 }
 0x224   :  { %v1764_v28 = vrot.slane %v6103_v42, %v4738_v50  ;;  %v1768_v38 = vrot.slane %v6103_v42, %v4741_v56  ;;  %v3084_v44 = vrot.slane %v3056_v61, %v4756_v15  ;;  %v1772_v4 = vrot.slane %v6103_v42, %v4744_v57 }
 0x225   :  { %v3085_v25 = vcombine.low %v3063_v49, %v3070_v30  ;;  %v1776_v19 = vrot.slane %v6103_v42, %v4747_v11  ;;  %v3003_v14 = vcombine.low %v2995_v40, %v3002_v8  ;;  %v1780_v0 = vrot.slane %v6103_v42, %v4750_v12 }
 0x226   :  { %v1784_v29 = vrot.slane %v6103_v42, %v4753_v13  ;;  %v3151_v1 = vcombine.low %v1756_v21, %v1760_v63  ;;  %v3086_v55 = vcombine.low %v3077_v39, %v3084_v44  ;;  %v3152_v43 = vcombine.low %v1764_v28, %v1768_v38 }
 0x227   :  { %v3093_v2 = vrot.slane %v3085_v25, %v4756_v15  ;;  %v3153_v46 = vcombine.low %v1772_v4, %v1776_v19  ;;  %3696 = vperm.xlu1 %4394, %v3003_v14   ;;  %v1820_v32 = vrot.slane %v6104_v45, %v4732_v58  ;;  %v1824_v51 = vrot.slane %v6104_v45, %v4735_v10  ;;  %v6106_v19 = vld [vmem:[#allocation15_spill] sm:$0xff] }
 0x228   :  { %v3154_v16 = vcombine.low %v1780_v0, %v1784_v29  ;;  %v3161_v20 = vrot.slane %v3151_v1, %v4756_v15  ;;  %v3100_v35 = vrot.slane %v3086_v55, %v4756_v15  ;;  %v3168_v60 = vrot.slane %v3152_v43, %v4756_v15 }
 0x229   :  { %v3175_v54 = vrot.slane %v3153_v46, %v4756_v15  ;;  %v1828_v37 = vrot.slane %v6104_v45, %v4738_v50  ;;  %v1832_v47 = vrot.slane %v6104_v45, %v4741_v56  ;;  %v1836_v23 = vrot.slane %v6104_v45, %v4744_v57 }
 0x22a   :  { %v3182_v5 = vrot.slane %v3154_v16, %v4756_v15  ;;  %v1840_v7 = vrot.slane %v6104_v45, %v4747_v11  ;;  %v3101_v24 = vcombine.low %v3093_v2, %v3100_v35  ;;  %v3183_v48 = vcombine.low %v3161_v20, %v3168_v60 }
 0x22b   :  { %v1844_v6 = vrot.slane %v6104_v45, %v4750_v12  ;;  %v1848_v27 = vrot.slane %v6104_v45, %v4753_v13  ;;  %v3249_v34 = vcombine.low %v1820_v32, %v1824_v51  ;;  %v3250_v17 = vcombine.low %v1828_v37, %v1832_v47 }
 0x22c   :  { %v3184_v59 = vcombine.low %v3175_v54, %v3182_v5  ;;  %v3251_v31 = vcombine.low %v1836_v23, %v1840_v7  ;;  %3702 = vperm.xlu1 %4394, %v3101_v24   ;;  %v3191_v53 = vrot.slane %v3183_v48, %v4756_v15  ;;  %v1500_v62 = vrot.slane %v6105_v22, %v4732_v58 }
 0x22d   :  { %v3252_v18 = vcombine.low %v1844_v6, %v1848_v27  ;;  %v1504_v41 = vrot.slane %v6105_v22, %v4735_v10  ;;  %v3259_v26 = vrot.slane %v3249_v34, %v4756_v15  ;;  %v3266_v33 = vrot.slane %v3250_v17, %v4756_v15 }
 0x22e   :  { %v3198_v52 = vrot.slane %v3184_v59, %v4756_v15  ;;  %v3273_v40 = vrot.slane %v3251_v31, %v4756_v15  ;;  %v1508_v42 = vrot.slane %v6105_v22, %v4738_v50  ;;  %v1512_v21 = vrot.slane %v6105_v22, %v4741_v56 }
 0x22f   :  { %v3280_v36 = vrot.slane %v3252_v18, %v4756_v15  ;;  %v1516_v61 = vrot.slane %v6105_v22, %v4744_v57  ;;  %v3281_v30 = vcombine.low %v3259_v26, %v3266_v33  ;;  %v1520_v63 = vrot.slane %v6105_v22, %v4747_v11 }
 0x230   :  { %v3199_v49 = vcombine.low %v3191_v53, %v3198_v52  ;;  %v1524_v8 = vrot.slane %v6105_v22, %v4750_v12  ;;  %v1528_v28 = vrot.slane %v6105_v22, %v4753_v13  ;;  %v2759_v38 = vcombine.low %v1500_v62, %v1504_v41 }
 0x231   :  { %v3282_v39 = vcombine.low %v3273_v40, %v3280_v36  ;;  %v2760_v44 = vcombine.low %v1508_v42, %v1512_v21  ;;  %v3289_v25 = vrot.slane %v3281_v30, %v4756_v15  ;;  %v2761_v4 = vcombine.low %v1516_v61, %v1520_v63 }
 0x232   :  { %3708 = vperm.xlu1 %4394, %v3199_v49   ;;  %v1532_v14 = vrot.slane %v6106_v19, %v4732_v58  ;;  %v2762_v29 = vcombine.low %v1524_v8, %v1528_v28  ;;  %v2769_v1 = vrot.slane %v2759_v38, %v4756_v15  ;;  %v1536_v43 = vrot.slane %v6106_v19, %v4735_v10 }
 0x233   :  { %v3296_v0 = vrot.slane %v3282_v39, %v4756_v15  ;;  %v2776_v55 = vrot.slane %v2760_v44, %v4756_v15  ;;  %v2783_v2 = vrot.slane %v2761_v4, %v4756_v15  ;;  %v1540_v46 = vrot.slane %v6106_v19, %v4738_v50 }
 0x234   :  { %v2790_v20 = vrot.slane %v2762_v29, %v4756_v15  ;;  %v1544_v58 = vrot.slane %v6106_v19, %v4741_v56  ;;  %v1548_v32 = vrot.slane %v6106_v19, %v4744_v57  ;;  %v1552_v51 = vrot.slane %v6106_v19, %v4747_v11 }
 0x235   :  { %v3297_v16 = vcombine.low %v3289_v25, %v3296_v0  ;;  %v2791_v45 = vcombine.low %v2769_v1, %v2776_v55  ;;  %v1556_v35 = vrot.slane %v6106_v19, %v4750_v12  ;;  %v1560_v10 = vrot.slane %v6106_v19, %v4753_v13 }
 0x236   :  { %v2792_v50 = vcombine.low %v2783_v2, %v2790_v20  ;;  %v2808_v54 = vcombine.low %v1532_v14, %v1536_v43  ;;  %v2809_v37 = vcombine.low %v1540_v46, %v1544_v58  ;;  %v2810_v5 = vcombine.low %v1548_v32, %v1552_v51 }
 0x237   :  { %3714 = vperm.xlu1 %4394, %v3297_v16   ;;  %v2799_v60 = vrot.slane %v2791_v45, %v4756_v15  ;;  %v2811_v56 = vcombine.low %v1556_v35, %v1560_v10  ;;  %v3976_v59 = vrot.slane %v5442_v3, 4 }
 0x238   :  { %v2806_v47 = vrot.slane %v2792_v50, %v4756_v15  ;;  %v2818_v57 = vrot.slane %v2808_v54, %v4756_v15  ;;  %v2825_v11 = vrot.slane %v2809_v37, %v4756_v15  ;;  %v2832_v23 = vrot.slane %v2810_v5, %v4756_v15 }
 0x239   :  { %v2839_v12 = vrot.slane %v2811_v56, %v4756_v15  ;;  %v3977_v34 = vadd.f32 %v3976_v59, %v5442_v3 }
 0x23a   :  { %v2807_v7 = vcombine.low %v2799_v60, %v2806_v47  ;;  %v2840_v13 = vcombine.low %v2818_v57, %v2825_v11 }
 0x23b   :  { %v2841_v24 = vcombine.low %v2832_v23, %v2839_v12  ;;  %v3978_v17 = vrot.slane %v3977_v34, 2 }
 0x23c   :  { %3684 = vperm.xlu1 %4394, %v2807_v7   ;;  %v2848_v48 = vrot.slane %v2840_v13, %v4756_v15 }
 0x23d   :  { %v2855_v6 = vrot.slane %v2841_v24, %v4756_v15  ;;  %v3979_v31 = vadd.f32 %v3978_v17, %v3977_v34 }
 0x23f   :  { %v2856_v27 = vcombine.low %v2848_v48, %v2855_v6  ;;  %v3980_v53 = vrot.slane %v3979_v31, 1 }
 0x241   :  { %3687 = vperm.xlu1 %4394, %v2856_v27   ;;  %v3981_v18 = vadd.f32 %v3980_v53, %v3979_v31 }
 0x243   :  { %3982 = vst [vmem:[#allocation4] sm:$0x1] %v3981_v18 }
 0x244   :  { %4407 = shalt.err (!%p4404_p4)
}
 0x245   :  { %s4408_s29 = scalar_lea.hbm %s6029_s6, 16 }
 0x246   :  { %p4409_p5 = scmp.ne.s32.totalorder %s6029_s6, %s4408_s29  ;;  %p4412_p6 = scmp.lt.u32.totalorder %s4408_s29, %s6029_s6 }
 0x248   :  { %p4414_p7 = pnand %p4412_p6, %p4409_p5 }
 0x24a   :  { %4417 = shalt.err (!%p4414_p7)
}
 0x24b   :  { %4004 = dma.vmem_to_hbm [thread:$0]  %s4002_s25, 16, %s6029_s6, [#allocation5]   ;;  %v5793_v33 = vpop.permute.xlu1 %3645  ;;  %v3643_v14 = vpop.permute.xlu0 %3642  ;;  %v3741_v12 = vadd.s32 4294967288, %v4729_v9  ;;  %v3748_v13 = vadd.s32 4294967280, %v4729_v9  ;;  %v6107_v48 = vld [vmem:[#allocation8_spill] sm:$0xff]  ;;  %v3762_v59 = vadd.s32 4294967264, %v4729_v9 }
 0x24c   :  { %v3739_v34 = vsub.s32 %v4729_v9, %v6107_v48  ;;  %v3755_v53 = vadd.s32 4294967272, %v4729_v9  ;;  %vm3746_vm3 = vcmask 130112   ;;  %vm3753_vm4 = vcmask 195712  }
 0x24d   :  { %v3744_v6 = vsub.s32 %v3741_v12, %v6107_v48  ;;  %v3751_v27 = vsub.s32 %v3748_v13, %v6107_v48  ;;  %vm3760_vm5 = vcmask 261312   ;;  %vm3767_vm6 = vcmask 326912  }
 0x24e   :  { %vm3774_vm7 = vcmask 392512   ;;  %vm3788_vm8 = vcmask 523712   ;;  %vm3795_vm9 = vcmask 589312   ;;  %vm3802_vm10 = vcmask 654912  }
 0x24f   :  { %v5861_v55 = vpop.permute.xlu0 %3669  ;;  %v3745_v31 = vrot.slane %v5793_v33, %v3744_v6  ;;  %vm3809_vm11 = vcmask 720512   ;;  %vm3816_vm12 = vcmask 786112   ;;  %vm3823_vm13 = vcmask 851712  }
 0x250   :  { %v5803_v42 = vpop.permute.xlu1 %3651  ;;  %vm3830_vm14 = vcmask 917312   ;;  %vm3837_vm15 = vcmask 982912   ;;  %vm3844_vm1 = vcmask 1048512  }
 0x253   :  { %v5871_v46 = vpop.permute.xlu0 %3693 }
 0x255   :  { %v4295_v3 = vpop.f32.mrb[0].mxu1 }
 0x256   :  { %1024 = vst.msk [vmem:[%s6027_s4 + $0x38] sm:$0xff] %vm75_vm0, %v4295_v3  ;;  %v888_v22 = vpop.f32.mrb[1].mxu1  ;;  %v3765_v3 = vsub.s32 %v3762_v59, %v6107_v48 }
 0x257   :  { %1023 = vst.msk [vmem:[%s6027_s4 + $0x30] sm:$0xff] %vm75_vm0, %v888_v22  ;;  %v5883_v58 = vpop.permute.xlu0 %3699  ;;  %v3776_v22 = vadd.s32 4294967248, %v4729_v9 }
 0x258   :  { %v4286_v62 = vpop.f32.mrb[32].mxu0 }
 0x259   :  { %1018 = vst.msk [vmem:[%s6027_s4 + $0x8] sm:$0xff] %vm75_vm0, %v4286_v62  ;;  %v858_v41 = vpop.f32.mrb[33].mxu0  ;;  %v4298_v52 = vpop.f32.mrb[2].mxu1 }
 0x25a   :  { %1017 = vst.msk [vmem:[%s6027_s4] sm:$0xff] %vm75_vm0, %v858_v41  ;;  %1026 = vst.msk [vmem:[%s6027_s4 + $0x48] sm:$0xff] %vm75_vm0, %v4298_v52  ;;  %v898_v26 = vpop.f32.mrb[3].mxu1  ;;  %v3740_v41 = vrot.slane %v3643_v14, %v3739_v34 }
 0x25b   :  { %1025 = vst.msk [vmem:[%s6027_s4 + $0x40] sm:$0xff] %vm75_vm0, %v898_v26  ;;  %v5897_v50 = vpop.permute.xlu0 %3705  ;;  %v3797_v26 = vadd.s32 4294967224, %v4729_v9 }
 0x25c   :  { %v3747_v33 = vsel %vm3746_vm3, %v3745_v31, %v3740_v41 }
 0x25d   :  { %v4301_v40 = vpop.f32.mrb[4].mxu1  ;;  %v5813_v30 = vpop.permute.xlu1 %3648 }
 0x25e   :  { %1028 = vst.msk [vmem:[%s6027_s4 + $0x58] sm:$0xff] %vm75_vm0, %v4301_v40  ;;  %v908_v36 = vpop.f32.mrb[5].mxu1  ;;  %v3752_v18 = vrot.slane %v5813_v30, %v3751_v27  ;;  %v3769_v40 = vadd.s32 4294967256, %v4729_v9 }
 0x25f   :  { %1027 = vst.msk [vmem:[%s6027_s4 + $0x50] sm:$0xff] %vm75_vm0, %v908_v36  ;;  %v5909_v56 = vpop.permute.xlu0 %3711 }
 0x261   :  { %v4304_v21 = vpop.f32.mrb[6].mxu1 }
 0x262   :  { %1030 = vst.msk [vmem:[%s6027_s4 + $0x68] sm:$0xff] %vm75_vm0, %v4304_v21  ;;  %v918_v61 = vpop.f32.mrb[7].mxu1  ;;  %v3853_v21 = vrot.slane %v5871_v46, %v3744_v6 }
 0x263   :  { %1029 = vst.msk [vmem:[%s6027_s4 + $0x60] sm:$0xff] %vm75_vm0, %v918_v61  ;;  %v5921_v11 = vpop.permute.xlu0 %3717  ;;  %v3758_v61 = vsub.s32 %v3755_v53, %v6107_v48 }
 0x265   :  { %v4307_v49 = vpop.f32.mrb[8].mxu1 }
 0x266   :  { %1032 = vst.msk [vmem:[%s6027_s4 + $0x78] sm:$0xff] %vm75_vm0, %v4307_v49  ;;  %v928_v63 = vpop.f32.mrb[9].mxu1 }
 0x267   :  { %1031 = vst.msk [vmem:[%s6027_s4 + $0x70] sm:$0xff] %vm75_vm0, %v928_v63  ;;  %v5926_v7 = vpop.permute.xlu0 %3723  ;;  %v3754_v63 = vsel %vm3753_vm4, %v3752_v18, %v3747_v33 }
 0x269   :  { %v4310_v8 = vpop.f32.mrb[10].mxu1  ;;  %v5831_v28 = vpop.permute.xlu1 %3657 }
 0x26a   :  { %1034 = vst.msk [vmem:[%s6027_s4 + $0x88] sm:$0xff] %vm75_vm0, %v4310_v8  ;;  %v938_v39 = vpop.f32.mrb[11].mxu1 }
 0x26b   :  { %1033 = vst.msk [vmem:[%s6027_s4 + $0x80] sm:$0xff] %vm75_vm0, %v938_v39  ;;  %v5934_v17 = vpop.permute.xlu0 %3720  ;;  %v3779_v39 = vsub.s32 %v3776_v22, %v6107_v48  ;;  %v3839_v22 = vadd.s32 4294967176, %v4729_v9 }
 0x26d   :  { %v4313_v38 = vpop.f32.mrb[12].mxu1 }
 0x26e   :  { %1036 = vst.msk [vmem:[%s6027_s4 + $0x98] sm:$0xff] %vm75_vm0, %v4313_v38  ;;  %v948_v44 = vpop.f32.mrb[13].mxu1  ;;  %v3790_v38 = vadd.s32 4294967232, %v4729_v9 }
 0x26f   :  { %1035 = vst.msk [vmem:[%s6027_s4 + $0x90] sm:$0xff] %vm75_vm0, %v948_v44  ;;  %v5946_v30 = vpop.permute.xlu0 %3729 }
 0x270   :  { %v5841_v4 = vpop.permute.xlu1 %3654 }
 0x271   :  { %v4316_v25 = vpop.f32.mrb[14].mxu1  ;;  %v3766_v8 = vrot.slane %v5841_v4, %v3765_v3  ;;  %v3772_v4 = vsub.s32 %v3769_v40, %v6107_v48 }
 0x272   :  { %1038 = vst.msk [vmem:[%s6027_s4 + $0xa8] sm:$0xff] %vm75_vm0, %v4316_v25  ;;  %v958_v19 = vpop.f32.mrb[15].mxu1  ;;  %v3759_v25 = vrot.slane %v5803_v42, %v3758_v61  ;;  %v3783_v42 = vadd.s32 4294967240, %v4729_v9 }
 0x273   :  { %1037 = vst.msk [vmem:[%s6027_s4 + $0xa0] sm:$0xff] %vm75_vm0, %v958_v19 }
 0x274   :  { %v3761_v46 = vsel %vm3760_vm5, %v3759_v25, %v3754_v63  ;;  %v3842_v63 = vsub.s32 %v3839_v22, %v6107_v48 }
 0x275   :  { %v4319_v0 = vpop.f32.mrb[16].mxu1  ;;  %v5859_v1 = vpop.permute.xlu1 %3663 }
 0x276   :  { %1040 = vst.msk [vmem:[%s6027_s4 + $0xb8] sm:$0xff] %vm75_vm0, %v4319_v0  ;;  %v968_v29 = vpop.f32.mrb[17].mxu1 }
 0x277   :  { %1039 = vst.msk [vmem:[%s6027_s4 + $0xb0] sm:$0xff] %vm75_vm0, %v968_v29 }
 0x27a   :  { %v4322_v2 = vpop.f32.mrb[18].mxu1 }
 0x27b   :  { %1042 = vst.msk [vmem:[%s6027_s4 + $0xc8] sm:$0xff] %vm75_vm0, %v4322_v2  ;;  %v978_v43 = vpop.f32.mrb[19].mxu1  ;;  %v3800_v2 = vsub.s32 %v3797_v26, %v6107_v48 }
 0x27c   :  { %1041 = vst.msk [vmem:[%s6027_s4 + $0xc0] sm:$0xff] %vm75_vm0, %v978_v43  ;;  %v3863_v43 = vrot.slane %v5883_v58, %v3758_v61  ;;  %v3811_v58 = vadd.s32 4294967208, %v4729_v9 }
 0x27e   :  { %v3814_v41 = vsub.s32 %v3811_v58, %v6107_v48 }
 0x280   :  { %v4289_v20 = vpop.f32.mrb[34].mxu0 }
 0x281   :  { %1020 = vst.msk [vmem:[%s6027_s4 + $0x18] sm:$0xff] %vm75_vm0, %v4289_v20  ;;  %v868_v45 = vpop.f32.mrb[35].mxu0  ;;  %v3768_v20 = vsel %vm3767_vm6, %v3766_v8, %v3761_v46 }
 0x282   :  { %v5873_v16 = vpop.permute.xlu1 %3660  ;;  %1019 = vst.msk [vmem:[%s6027_s4 + $0x10] sm:$0xff] %vm75_vm0, %v868_v45 }
 0x283   :  { %v4325_v32 = vpop.f32.mrb[20].mxu1  ;;  %v3780_v45 = vrot.slane %v5873_v16, %v3779_v39  ;;  %v3818_v16 = vadd.s32 4294967200, %v4729_v9 }
 0x284   :  { %1044 = vst.msk [vmem:[%s6027_s4 + $0xd8] sm:$0xff] %vm75_vm0, %v4325_v32  ;;  %v988_v35 = vpop.f32.mrb[21].mxu1  ;;  %v3793_v32 = vsub.s32 %v3790_v38, %v6107_v48 }
 0x285   :  { %1043 = vst.msk [vmem:[%s6027_s4 + $0xd0] sm:$0xff] %vm75_vm0, %v988_v35  ;;  %v3773_v35 = vrot.slane %v5831_v28, %v3772_v4 }
 0x286   :  { %v5885_v51 = vpop.permute.xlu1 %3666 }
 0x287   :  { %v3775_v6 = vsel %vm3774_vm7, %v3773_v35, %v3768_v20 }
 0x28c   :  { %v5895_v10 = vpop.permute.xlu1 %3675 }
 0x28d   :  { %v4292_v60 = vpop.f32.mrb[36].mxu0 }
 0x28e   :  { %1022 = vst.msk [vmem:[%s6027_s4 + $0x28] sm:$0xff] %vm75_vm0, %v4292_v60  ;;  %v878_v54 = vpop.f32.mrb[37].mxu0 }
 0x28f   :  { %1021 = vst.msk [vmem:[%s6027_s4 + $0x20] sm:$0xff] %vm75_vm0, %v878_v54  ;;  %v3873_v54 = vrot.slane %v5897_v50, %v3772_v4  ;;  %v3794_v50 = vrot.slane %v5885_v51, %v3793_v32  ;;  %v3821_v51 = vsub.s32 %v3818_v16, %v6107_v48 }
 0x290   :  { %v4328_v5 = vpop.f32.mrb[22].mxu1 }
 0x291   :  { %v5903_v37 = vpop.permute.xlu1 %3672  ;;  %1046 = vst.msk [vmem:[%s6027_s4 + $0xe8] sm:$0xff] %vm75_vm0, %v4328_v5  ;;  %v998_v47 = vpop.f32.mrb[23].mxu1  ;;  %v3804_v5 = vadd.s32 4294967216, %v4729_v9 }
 0x292   :  { %1045 = vst.msk [vmem:[%s6027_s4 + $0xe0] sm:$0xff] %vm75_vm0, %v998_v47  ;;  %v3727_v47 = vpop.permute.xlu0 %3726 }
 0x293   :  { %v3807_v18 = vsub.s32 %v3804_v5, %v6107_v48 }
 0x295   :  { %v3898_v61 = vrot.slane %v5934_v17, %v3807_v18  ;;  %v3815_v17 = vrot.slane %v5895_v10, %v3814_v41 }
 0x296   :  { %v5919_v57 = vpop.permute.xlu1 %3681  ;;  %v3733_v26 = vpop.permute.xlu0 %3732 }
 0x29c   :  { %v5923_v23 = vpop.permute.xlu1 %3678 }
 0x29d   :  { %v3822_v25 = vrot.slane %v5923_v23, %v3821_v51 }
 0x2a1   :  { %v3691_v24 = vpop.permute.xlu1 %3690 }
 0x2a2   :  { %v3849_v52 = vrot.slane %v3691_v24, %v3739_v34  ;;  %v3786_v24 = vsub.s32 %v3783_v42, %v6107_v48  ;;  %v3825_v34 = vadd.s32 4294967192, %v4729_v9 }
 0x2a4   :  { %v3854_v19 = vsel %vm3746_vm3, %v3853_v21, %v3849_v52  ;;  %v3787_v31 = vrot.slane %v5859_v1, %v3786_v24  ;;  %v3828_v21 = vsub.s32 %v3825_v34, %v6107_v48 }
 0x2a6   :  { %v3697_v62 = vpop.permute.xlu1 %3696 }
 0x2a7   :  { %v3858_v36 = vrot.slane %v3697_v62, %v3751_v27  ;;  %v4331_v49 = vpop.f32.mrb[24].mxu1  ;;  %v3801_v27 = vrot.slane %v5861_v55, %v3800_v2  ;;  %v3883_v62 = vrot.slane %v5909_v56, %v3786_v24 }
 0x2a8   :  { %1048 = vst.msk [vmem:[%s6027_s4 + $0xf8] sm:$0xff] %vm75_vm0, %v4331_v49  ;;  %v1008_v44 = vpop.f32.mrb[25].mxu1 }
 0x2a9   :  { %1047 = vst.msk [vmem:[%s6027_s4 + $0xf0] sm:$0xff] %vm75_vm0, %v1008_v44  ;;  %v3859_v0 = vsel %vm3753_vm4, %v3858_v36, %v3854_v19  ;;  %vm3781_vm0 = vcmask 458112   ;;  %v3808_v36 = vrot.slane %v5903_v37, %v3807_v18  ;;  %v3908_v44 = vrot.slane %v3727_v47, %v3821_v51  ;;  %s4449_s4 = smov [#allocation2]  }
 0x2aa   :  { %v3864_v60 = vsel %vm3760_vm5, %v3863_v43, %v3859_v0  ;;  %v3782_v59 = vsel %vm3781_vm0, %v3780_v45, %v3775_v6  ;;  %v3829_v45 = vrot.slane %v5919_v57, %v3828_v21  ;;  %s3991_s6 = sshll.u32 %s4449_s4, 4  ;;  %v6108_v47 = vlaneseq  ;;  %s3992_s6 = int_to_ptr.vmem [resolvable:$true] %s3991_s6 }
 0x2ab   :  { %v3703_v14 = vpop.permute.xlu1 %3702  ;;  %v3789_v52 = vsel %vm3788_vm8, %v3787_v31, %v3782_v59  ;;  %s4418_s16 = scalar_lea.vmem %s3992_s6, 32  ;;  %p4423_p9 = scmp.lt.s32.totalorder %s3992_s6, %s3992_s6 }
 0x2ac   :  { %v3868_v29 = vrot.slane %v3703_v14, %v3765_v3  ;;  %v3832_v3 = vadd.s32 4294967184, %v4729_v9  ;;  %v3796_v40 = vsel %vm3795_vm9, %v3794_v50, %v3789_v52  ;;  %v3893_v9 = vrot.slane %v5921_v11, %v3800_v2  ;;  %p4419_p8 = scmp.ne.s32.totalorder %s3992_s6, %s4418_s16  ;;  %p4424_p10 = scmp.lt.s32.totalorder %s4418_s16, %s4418_s16 }
 0x2ad   :  { %v3803_v38 = vsel %vm3802_vm10, %v3801_v27, %v3796_v40  ;;  %v3913_v14 = vrot.slane %v5946_v30, %v3828_v21  ;;  %vm3942_vm2 = vcmp.lt.s32.totalorder %v6108_v47, 256 }
 0x2ae   :  { %v3869_v12 = vsel %vm3767_vm6, %v3868_v29, %v3864_v60  ;;  %v3835_v49 = vsub.s32 %v3832_v3, %v6107_v48  ;;  %v3810_v11 = vsel %vm3809_vm11, %v3808_v36, %v3803_v38  ;;  %v3736_v29 = vpop.permute.xlu0 %3735  ;;  %p4425_p11 = por %p4424_p10, %p4423_p9 }
 0x2af   :  { %v3874_v53 = vsel %vm3774_vm7, %v3873_v54, %v3869_v12  ;;  %v3923_v23 = vrot.slane %v3736_v29, %v3842_v63 }
 0x2b0   :  { %v3918_v48 = vrot.slane %v3733_v26, %v3835_v49  ;;  %p4426_p12 = pnand %p4425_p11, %p4419_p8 }
 0x2b1   :  { %v3709_v13 = vpop.permute.xlu1 %3708 }
 0x2b2   :  { %v3878_v28 = vrot.slane %v3709_v13, %v3779_v39  ;;  %v3903_v39 = vrot.slane %v5926_v7, %v3814_v41  ;;  %v3817_v7 = vsel %vm3816_vm12, %v3815_v17, %v3810_v11 }
 0x2b3   :  { %v3824_v42 = vsel %vm3823_vm13, %v3822_v25, %v3817_v7 }
 0x2b4   :  { %v3879_v55 = vsel %vm3781_vm0, %v3878_v28, %v3874_v53 }
 0x2b5   :  { %v3884_v56 = vsel %vm3788_vm8, %v3883_v62, %v3879_v55 }
 0x2b6   :  { %v3715_v1 = vpop.permute.xlu1 %3714 }
 0x2b7   :  { %v3888_v33 = vrot.slane %v3715_v1, %v3793_v32  ;;  %v3831_v32 = vsel %vm3830_vm14, %v3829_v45, %v3824_v42 }
 0x2b9   :  { %v3889_v8 = vsel %vm3795_vm9, %v3888_v33, %v3884_v56 }
 0x2ba   :  { %v3894_v37 = vsel %vm3802_vm10, %v3893_v9, %v3889_v8 }
 0x2bb   :  { %v3899_v19 = vsel %vm3809_vm11, %v3898_v61, %v3894_v37  ;;  %v3685_v0 = vpop.permute.xlu1 %3684 }
 0x2bc   :  { %v3904_v4 = vsel %vm3816_vm12, %v3903_v39, %v3899_v19  ;;  %v3836_v46 = vrot.slane %v3685_v0, %v3835_v49 }
 0x2bd   :  { %v3909_v2 = vsel %vm3823_vm13, %v3908_v44, %v3904_v4 }
 0x2be   :  { %v3914_v43 = vsel %vm3830_vm14, %v3913_v14, %v3909_v2  ;;  %v3838_v60 = vsel %vm3837_vm15, %v3836_v46, %v3831_v32 }
 0x2bf   :  { %v3919_v20 = vsel %vm3837_vm15, %v3918_v48, %v3914_v43 }
 0x2c0   :  { %v3688_v30 = vpop.permute.xlu1 %3687  ;;  %v3924_v10 = vsel %vm3844_vm1, %v3923_v23, %v3919_v20 }
 0x2c1   :  { %v3843_v35 = vrot.slane %v3688_v30, %v3842_v63 }
 0x2c3   :  { %v3845_v54 = vsel %vm3844_vm1, %v3843_v35, %v3838_v60 }
 0x2c4   :  { %v3925_v58 = vcombine.low %v3845_v54, %v3924_v10 }
 0x2c6   :  { %v3932_v5 = vrot.slane %v3925_v58, %v4756_v15 }
 0x2c8   :  { %v3939_v12 = vrot.slane %v3932_v5, %v4756_v15 }
 0x2ca   :  { %3944 = vst.msk [vmem:[#allocation2] sm:$0x3] %vm3942_vm2, %v3939_v12 }
 0x2cb   :  { %4429 = shalt.err (!%p4426_p12)
}
 0x2cc   :  { %s4430_s19 = scalar_lea.hbm %s6028_s5, 32 }
 0x2cd   :  { %p4431_p13 = scmp.ne.s32.totalorder %s6028_s5, %s4430_s19  ;;  %p4434_p0 = scmp.lt.u32.totalorder %s4430_s19, %s6028_s5 }
 0x2cf   :  { %p4436_p1 = pnand %p4434_p0, %p4431_p13 }
 0x2d1   :  { %4439 = shalt.err (!%p4436_p1)
}
 0x2d2   :  { %3994 = dma.vmem_to_hbm [thread:$0]  %s3992_s6, 32, %s6028_s5, [#allocation3]  }
 0x2d3   :  { %4440 = dma.done.wait [#allocation3], 32  }
 0x2d4   :  { %4441 = vsyncadd [#allocation3], 4294967264 }
 0x2d5   :  { %4442 = dma.done.wait [#allocation5], 16  }
 0x2d6   :  { %4443 = vsyncadd [#allocation5], 4294967280 }
 0x2d7   :  { %4013 = vsyncpa [#allocation3], 1 }
 0x2d8   :  { %4014 = vsyncpa [#allocation5], 1 }

// kernel: tpu_custom_call.1
= control target key start
LH: loop header
LB: loop body
LE: loop exit
PB: predicated region body
PF: predicated region fallthrough
CT: control target
= control target key end

     0   :  { %12 = vsyncpa [#allocation3], 0  ;;  %vm75_vm0 = vcmask 261120   ;;  %s6023_s0 = inlined_call_operand.vmem [shape: f32[256,32], index: 0, kind: input, shape index: {}]   ;;  %s6024_s1 = inlined_call_operand.vmem [shape: f32[32,128], index: 1, kind: input, shape index: {}]   ;;  %s6025_s2 = inlined_call_operand.vmem [shape: f32[128,32], index: 2, kind: input, shape index: {}]   ;;  %s6026_s3 = inlined_call_operand.vmem [shape: f32[1,128], index: 3, kind: input, shape index: {}]   ;;  %s6027_s4 = inlined_call_operand.vmem [shape: f32[256,32], index: 4, kind: output, shape index: {0}]   ;;  %s6028_s5 = inlined_call_operand.hbm [shape: s32[1,256], index: 5, kind: output, shape index: {1}]   ;;  %s6029_s6 = inlined_call_operand.hbm [shape: f32[1,1,128], index: 6, kind: output, shape index: {2}]  }
   0x1   :  { %v54_v0 = vld [vmem:[%s6024_s1] sm:$0xff]  ;;  %v55_v1 = vld [vmem:[%s6024_s1 + $0x8] sm:$0xff]  ;;  %v56_v2 = vld [vmem:[%s6024_s1 + $0x10] sm:$0xff] }
   0x2   :  { %v4332_v3 = vpack.c.bf16 %v55_v1, %v54_v0  ;;  %v57_v4 = vld [vmem:[%s6024_s1 + $0x18] sm:$0xff]  ;;  %v22_v5 = vld [vmem:[%s6023_s0] sm:$0xff]  ;;  %v23_v7 = vld [vmem:[%s6023_s0 + $0x8] sm:$0xff] }
   0x3   :  { %v4336_v6 = vpack.c.bf16 %v57_v4, %v56_v2  ;;  %4204 = vmatprep.mubr.msk.f32.mxu0 %vm75_vm0, %v22_v5  ;;  %v24_v8 = vld [vmem:[%s6023_s0 + $0x10] sm:$0xff]  ;;  %v25_v9 = vld [vmem:[%s6023_s0 + $0x18] sm:$0xff] }
   0x4   :  { %4333 = vmatprep.subr.bf16.mxu0 %v4332_v3 }
   0x5   :  { %4335 = vmatpush3.bf16.msra.mxu0 %v4332_v3 }
   0x6   :  { %4337 = vmatprep.subr.bf16.mxu0 %v4336_v6 }
   0x9   :  { %4339 = vmatpush3.bf16.msra.mxu0 %v4336_v6 }
   0xc   :  { %4205 = vmatmul.mubr.msk.f32.vlgmr.msra.gmra.mrb[0].mxu0 %vm75_vm0, %v23_v7 }
   0xd   :  { %4207 = vmatprep.mubr.msk.f32.mxu0 %vm75_vm0, %v24_v8 }
   0xe   :  { %13 = vsyncpa [#allocation5], 0  ;;  %v26_v10 = vld [vmem:[%s6023_s0 + $0x20] sm:$0xff]  ;;  %v27_v11 = vld [vmem:[%s6023_s0 + $0x28] sm:$0xff] }
   0xf   :  { %v28_v12 = vld [vmem:[%s6023_s0 + $0x30] sm:$0xff]  ;;  %v29_v13 = vld [vmem:[%s6023_s0 + $0x38] sm:$0xff]  ;;  %v30_v14 = vld [vmem:[%s6023_s0 + $0x40] sm:$0xff] }
  0x10   :  { %4208 = vmatmul.mubr.msk.f32.gmra.mrb[2].mxu0 %vm75_vm0, %v25_v9  ;;  %v31_v15 = vld [vmem:[%s6023_s0 + $0x48] sm:$0xff]  ;;  %v32_v16 = vld [vmem:[%s6023_s0 + $0x50] sm:$0xff]  ;;  %v33_v17 = vld [vmem:[%s6023_s0 + $0x58] sm:$0xff] }
  0x11   :  { %4210 = vmatprep.mubr.msk.f32.mxu0 %vm75_vm0, %v26_v10  ;;  %v34_v18 = vld [vmem:[%s6023_s0 + $0x60] sm:$0xff]  ;;  %v35_v19 = vld [vmem:[%s6023_s0 + $0x68] sm:$0xff]  ;;  %v36_v20 = vld [vmem:[%s6023_s0 + $0x70] sm:$0xff] }
  0x12   :  { %v37_v21 = vld [vmem:[%s6023_s0 + $0x78] sm:$0xff]  ;;  %v38_v22 = vld [vmem:[%s6023_s0 + $0x80] sm:$0xff]  ;;  %v39_v23 = vld [vmem:[%s6023_s0 + $0x88] sm:$0xff] }
  0x13   :  { %v40_v24 = vld [vmem:[%s6023_s0 + $0x90] sm:$0xff]  ;;  %v41_v25 = vld [vmem:[%s6023_s0 + $0x98] sm:$0xff]  ;;  %v42_v26 = vld [vmem:[%s6023_s0 + $0xa0] sm:$0xff] }
  0x14   :  { %4211 = vmatmul.mubr.msk.f32.gmra.mrb[4].mxu0 %vm75_vm0, %v27_v11  ;;  %v43_v27 = vld [vmem:[%s6023_s0 + $0xa8] sm:$0xff]  ;;  %v44_v28 = vld [vmem:[%s6023_s0 + $0xb0] sm:$0xff]  ;;  %v45_v29 = vld [vmem:[%s6023_s0 + $0xb8] sm:$0xff] }
  0x15   :  { %4213 = vmatprep.mubr.msk.f32.mxu0 %vm75_vm0, %v28_v12  ;;  %v46_v30 = vld [vmem:[%s6023_s0 + $0xc0] sm:$0xff]  ;;  %v47_v31 = vld [vmem:[%s6023_s0 + $0xc8] sm:$0xff]  ;;  %v48_v32 = vld [vmem:[%s6023_s0 + $0xd0] sm:$0xff] }
  0x16   :  { %v49_v33 = vld [vmem:[%s6023_s0 + $0xd8] sm:$0xff]  ;;  %v50_v34 = vld [vmem:[%s6023_s0 + $0xe0] sm:$0xff]  ;;  %v51_v35 = vld [vmem:[%s6023_s0 + $0xe8] sm:$0xff] }
  0x17   :  { %v52_v36 = vld [vmem:[%s6023_s0 + $0xf0] sm:$0xff]  ;;  %v53_v37 = vld [vmem:[%s6023_s0 + $0xf8] sm:$0xff]  ;;  %v58_v38 = vld [vmem:[%s6025_s2] sm:$0xff] }
  0x18   :  { %4214 = vmatmul.mubr.msk.f32.gmra.mrb[6].mxu0 %vm75_vm0, %v29_v13  ;;  %v59_v39 = vld [vmem:[%s6025_s2 + $0x8] sm:$0xff]  ;;  %v60_v40 = vld [vmem:[%s6025_s2 + $0x10] sm:$0xff]  ;;  %v61_v42 = vld [vmem:[%s6025_s2 + $0x18] sm:$0xff] }
  0x19   :  { %4216 = vmatprep.mubr.msk.f32.mxu0 %vm75_vm0, %v30_v14  ;;  %v4340_v41 = vpack.c.bf16 %v59_v39, %v58_v38  ;;  %v4344_v43 = vpack.c.bf16 %v61_v42, %v60_v40  ;;  %v62_v44 = vld [vmem:[%s6025_s2 + $0x20] sm:$0xff]  ;;  %v63_v45 = vld [vmem:[%s6025_s2 + $0x28] sm:$0xff]  ;;  %v64_v47 = vld [vmem:[%s6025_s2 + $0x30] sm:$0xff] }
  0x1a   :  { %v4348_v46 = vpack.c.bf16 %v63_v45, %v62_v44  ;;  %v65_v48 = vld [vmem:[%s6025_s2 + $0x38] sm:$0xff]  ;;  %v4652_v50 = vld [vmem:[%s6026_s3] ss:$0 sm:$0xff]  ;;  %v67_v0 = vld [vmem:[%s6025_s2 + $0x48] sm:$0xff] }
  0x1b   :  { %4372 = vmatprep.subr.bf16.mxu1 %v4340_v41  ;;  %4341 = vmatprep.subr.bf16.mxu0 %v4340_v41  ;;  %v4352_v49 = vpack.c.bf16 %v65_v48, %v64_v47  ;;  %v66_v63 = vld [vmem:[%s6025_s2 + $0x40] sm:$0xff]  ;;  %v68_v5 = vld [vmem:[%s6025_s2 + $0x50] sm:$0xff]  ;;  %v69_v6 = vld [vmem:[%s6025_s2 + $0x58] sm:$0xff] }
  0x1c   :  { %4217 = vmatmul.mubr.msk.f32.gmra.mrb[8].mxu0 %vm75_vm0, %v31_v15  ;;  %4380 = vmatpush3.bf16.msra.mxu1 %v4340_v41  ;;  %v4356_v4 = vpack.c.bf16 %v67_v0, %v66_v63  ;;  %v70_v7 = vld [vmem:[%s6025_s2 + $0x60] sm:$0xff]  ;;  %v4360_v9 = vpack.c.bf16 %v69_v6, %v68_v5  ;;  %v71_v10 = vld [vmem:[%s6025_s2 + $0x68] sm:$0xff]  ;;  %v4445_v5 = vmov 1966171168  }
  0x1d   :  { %4219 = vmatprep.mubr.msk.f32.mxu0 %vm75_vm0, %v32_v16  ;;  %4343 = vmatpush3.bf16.msra.mxu0 %v4340_v41  ;;  %v4364_v14 = vpack.c.bf16 %v71_v10, %v70_v7  ;;  %v2078_v6 = vunpack.c.l.s4 %v4445_v5 }
  0x1e   :  { %4373 = vmatprep.subr.bf16.mxu1 %v4344_v43  ;;  %4345 = vmatprep.subr.bf16.mxu0 %v4344_v43 }
  0x20   :  { %4220 = vmatmul.mubr.msk.f32.gmra.mrb[10].mxu0 %vm75_vm0, %v33_v17  ;;  %4381 = vmatpush3.bf16.msra.mxu1 %v4344_v43 }
  0x21   :  { %4222 = vmatprep.mubr.msk.f32.mxu0 %vm75_vm0, %v34_v18  ;;  %4347 = vmatpush3.bf16.msra.mxu0 %v4344_v43 }
  0x22   :  { %4374 = vmatprep.subr.bf16.mxu1 %v4348_v46  ;;  %4349 = vmatprep.subr.bf16.mxu0 %v4348_v46 }
  0x24   :  { %4223 = vmatmul.mubr.msk.f32.gmra.mrb[12].mxu0 %vm75_vm0, %v35_v19  ;;  %4382 = vmatpush3.bf16.msra.mxu1 %v4348_v46 }
  0x25   :  { %4225 = vmatprep.mubr.msk.f32.mxu0 %vm75_vm0, %v36_v20  ;;  %4351 = vmatpush3.bf16.msra.mxu0 %v4348_v46 }
  0x26   :  { %4375 = vmatprep.subr.bf16.mxu1 %v4352_v49  ;;  %4353 = vmatprep.subr.bf16.mxu0 %v4352_v49 }
  0x28   :  { %4226 = vmatmul.mubr.msk.f32.gmra.mrb[14].mxu0 %vm75_vm0, %v37_v21  ;;  %4383 = vmatpush3.bf16.msra.mxu1 %v4352_v49 }
  0x29   :  { %4228 = vmatprep.mubr.msk.f32.mxu0 %vm75_vm0, %v38_v22  ;;  %4355 = vmatpush3.bf16.msra.mxu0 %v4352_v49 }
  0x2a   :  { %4376 = vmatprep.subr.bf16.mxu1 %v4356_v4  ;;  %4357 = vmatprep.subr.bf16.mxu0 %v4356_v4 }
  0x2c   :  { %4229 = vmatmul.mubr.msk.f32.gmra.mrb[16].mxu0 %vm75_vm0, %v39_v23  ;;  %4384 = vmatpush3.bf16.msra.mxu1 %v4356_v4  ;;  %v4444_v23 = vmov 0  }
  0x2d   :  { %4231 = vmatprep.mubr.msk.f32.mxu0 %vm75_vm0, %v40_v24  ;;  %4359 = vmatpush3.bf16.msra.mxu0 %v4356_v4  ;;  %v72_v24 = vld [vmem:[%s6025_s2 + $0x70] sm:$0xff] }
  0x2e   :  { %4377 = vmatprep.subr.bf16.mxu1 %v4360_v9  ;;  %4361 = vmatprep.subr.bf16.mxu0 %v4360_v9 }
  0x2f   :  { %4395 = vset.pattern.permute.xlu0 %v4444_v23  ;;  %4394 = vset.pattern.permute.xlu1 %v4444_v23 }
  0x30   :  { %4232 = vmatmul.mubr.msk.f32.gmra.mrb[18].mxu0 %vm75_vm0, %v41_v25  ;;  %4385 = vmatpush3.bf16.msra.mxu1 %v4360_v9  ;;  %v73_v25 = vld [vmem:[%s6025_s2 + $0x78] sm:$0xff]  ;;  %s4448_s2 = smov [#allocation4]  }
  0x31   :  { %4234 = vmatprep.mubr.msk.f32.mxu0 %vm75_vm0, %v42_v26  ;;  %4363 = vmatpush3.bf16.msra.mxu0 %v4360_v9  ;;  %s4001_s25 = sshll.u32 %s4448_s2, 4  ;;  %s4002_s25 = int_to_ptr.vmem [resolvable:$true] %s4001_s25 }
  0x32   :  { %4378 = vmatprep.subr.bf16.mxu1 %v4364_v14  ;;  %4365 = vmatprep.subr.bf16.mxu0 %v4364_v14  ;;  %s4396_s0 = scalar_lea.vmem %s4002_s25, 16  ;;  %s4400_s26 = scalar_lea.vmem %s4002_s25, 32 }
  0x33   :  { %p4397_p0 = scmp.ne.s32.totalorder %s4002_s25, %s4396_s0  ;;  %p4401_p1 = scmp.lt.s32.totalorder %s4002_s25, %s4002_s25 }
  0x34   :  { %4235 = vmatmul.mubr.msk.f32.gmra.mrb[20].mxu0 %vm75_vm0, %v43_v27  ;;  %4386 = vmatpush3.bf16.msra.mxu1 %v4364_v14  ;;  %p4402_p2 = scmp.lt.s32.totalorder %s4400_s26, %s4396_s0 }
  0x35   :  { %4237 = vmatprep.mubr.msk.f32.mxu0 %vm75_vm0, %v44_v28  ;;  %4367 = vmatpush3.bf16.msra.mxu0 %v4364_v14  ;;  %v4368_v28 = vpack.c.bf16 %v73_v25, %v72_v24 }
  0x36   :  { %p4403_p3 = por %p4402_p2, %p4401_p1 }
  0x37   :  { %4379 = vmatprep.subr.bf16.mxu1 %v4368_v28  ;;  %4369 = vmatprep.subr.bf16.mxu0 %v4368_v28 }
  0x38   :  { %4238 = vmatmul.mubr.msk.f32.gmra.mrb[22].mxu0 %vm75_vm0, %v45_v29  ;;  %4387 = vmatpush3.bf16.msra.mxu1 %v4368_v28  ;;  %p4404_p4 = pnand %p4403_p3, %p4397_p0 }
  0x39   :  { %4240 = vmatprep.mubr.msk.f32.mxu0 %vm75_vm0, %v46_v30  ;;  %4371 = vmatpush3.bf16.msra.mxu0 %v4368_v28 }
  0x3c   :  { %4241 = vmatmul.mubr.msk.f32.gmra.mrb[24].mxu0 %vm75_vm0, %v47_v31 }
  0x3d   :  { %4243 = vmatprep.mubr.msk.f32.mxu0 %vm75_vm0, %v48_v32 }
  0x40   :  { %4244 = vmatmul.mubr.msk.f32.gmra.mrb[26].mxu0 %vm75_vm0, %v49_v33 }
  0x41   :  { %4246 = vmatprep.mubr.msk.f32.mxu0 %vm75_vm0, %v50_v34 }
  0x44   :  { %4247 = vmatmul.mubr.msk.f32.gmra.mrb[28].mxu0 %vm75_vm0, %v51_v35 }
  0x45   :  { %4249 = vmatprep.mubr.msk.f32.mxu0 %vm75_vm0, %v52_v36 }
  0x48   :  { %4250 = vmatmul.mubr.msk.f32.gmra.mrb[30].mxu0 %vm75_vm0, %v53_v37 }
  0xdf   :  { %v4206_v51 = vpop.f32.mrb[0].mxu0 }
  0xe0   :  { %v238_v52 = vpop.f32.mrb[1].mxu0  ;;  %v404_v11 = vsub.f32 %v4206_v51, %v4652_v50 }
  0xe1   :  { %v403_v53 = vsub.f32 %v238_v52, %v4652_v50 }
  0xe3   :  { %435 = vmax.index.xlane.f32.xlu0 %v403_v53  ;;  %v4655_v54 = vpop.f32.mrb[2].mxu0 }
  0xe4   :  { %v4657_v55 = vpop.f32.mrb[3].mxu0  ;;  %v406_v63 = vsub.f32 %v4655_v54, %v4652_v50  ;;  %v6030_v54 = vlaneseq }
  0xe6   :  { %v4726_v7 = vshrl.u32 %v6030_v54, 7  ;;  %v4729_v9 = vand.u32 127, %v6030_v54 }
  0xe7   :  { %v4659_v56 = vpop.f32.mrb[4].mxu0 }
  0xe8   :  { %v408_v57 = vsub.f32 %v4659_v56, %v4652_v50  ;;  %v4663_v58 = vpop.f32.mrb[5].mxu0  ;;  %6065 = vst [vmem:[#allocation8_spill] sm:$0xff] %v4726_v7  ;;  %v4735_v10 = vsub.s32 1, %v4726_v7  ;;  %v4741_v56 = vsub.s32 3, %v4726_v7 }
  0xe9   :  { %v407_v4 = vsub.f32 %v4663_v58, %v4652_v50  ;;  %v4732_v58 = vsub.s32 0, %v4726_v7 }
  0xeb   :  { %v4215_v59 = vpop.f32.mrb[6].mxu0 }
  0xec   :  { %v410_v60 = vsub.f32 %v4215_v59, %v4652_v50  ;;  %v268_v61 = vpop.f32.mrb[7].mxu0  ;;  %v405_v59 = vsub.f32 %v4657_v55, %v4652_v50 }
  0xed   :  { %v409_v1 = vsub.f32 %v268_v61, %v4652_v50 }
  0xee   :  { %449 = vmax.index.xlane.f32.xlu0 %v410_v60 }
  0xef   :  { %v4218_v62 = vpop.f32.mrb[8].mxu0 }
  0xf0   :  { %v278_v2 = vpop.f32.mrb[9].mxu0  ;;  %v412_v3 = vsub.f32 %v4218_v62, %v4652_v50 }
  0xf1   :  { %v411_v12 = vsub.f32 %v278_v2, %v4652_v50 }
  0xf2   :  { %447 = vmax.index.xlane.f32.xlu0 %v409_v1  ;;  %453 = vmax.index.xlane.f32.xlu1 %v412_v3 }
  0xf3   :  { %v4221_v8 = vpop.f32.mrb[10].mxu0 }
  0xf4   :  { %v288_v13 = vpop.f32.mrb[11].mxu0  ;;  %v414_v15 = vsub.f32 %v4221_v8, %v4652_v50  ;;  %v2079_v8 = vunpack.c.0.s8 %v2078_v6 }
  0xf5   :  { %v413_v16 = vsub.f32 %v288_v13, %v4652_v50  ;;  %v4753_v13 = vsub.s32 7, %v4726_v7 }
  0xf6   :  { %437 = vmax.index.xlane.f32.xlu0 %v404_v11  ;;  %451 = vmax.index.xlane.f32.xlu1 %v411_v12  ;;  %v4747_v11 = vsub.s32 5, %v4726_v7  ;;  %v4750_v12 = vsub.s32 6, %v4726_v7 }
  0xf7   :  { %v4224_v17 = vpop.f32.mrb[12].mxu0 }
  0xf8   :  { %v298_v18 = vpop.f32.mrb[13].mxu0  ;;  %v416_v19 = vsub.f32 %v4224_v17, %v4652_v50 }
  0xf9   :  { %v415_v20 = vsub.f32 %v298_v18, %v4652_v50 }
  0xfa   :  { %457 = vmax.index.xlane.f32.xlu1 %v414_v15  ;;  %455 = vmax.index.xlane.f32.xlu0 %v413_v16  ;;  %v4756_v15 = vsub.s32 %v2079_v8, %v4726_v7 }
  0xfb   :  { %v4227_v21 = vpop.f32.mrb[14].mxu0 }
  0xfc   :  { %v308_v22 = vpop.f32.mrb[15].mxu0  ;;  %v418_v26 = vsub.f32 %v4227_v21, %v4652_v50 }
  0xfd   :  { %v417_v27 = vsub.f32 %v308_v22, %v4652_v50 }
  0xfe   :  { %461 = vmax.index.xlane.f32.xlu1 %v416_v19  ;;  %459 = vmax.index.xlane.f32.xlu0 %v415_v20  ;;  %v6033_v19 = vmov 1.0  }
  0xff   :  { %v4230_v29 = vpop.f32.mrb[16].mxu0 }
 0x100   :  { %v318_v30 = vpop.f32.mrb[17].mxu0  ;;  %v420_v31 = vsub.f32 %v4230_v29, %v4652_v50 }
 0x101   :  { %v419_v32 = vsub.f32 %v318_v30, %v4652_v50 }
 0x102   :  { %465 = vmax.index.xlane.f32.xlu1 %v418_v26  ;;  %463 = vmax.index.xlane.f32.xlu0 %v417_v27 }
 0x103   :  { %v4233_v33 = vpop.f32.mrb[18].mxu0 }
 0x104   :  { %v328_v34 = vpop.f32.mrb[19].mxu0  ;;  %v422_v35 = vsub.f32 %v4233_v33, %v4652_v50 }
 0x105   :  { %v421_v36 = vsub.f32 %v328_v34, %v4652_v50 }
 0x106   :  { %469 = vmax.index.xlane.f32.xlu1 %v420_v31  ;;  %467 = vmax.index.xlane.f32.xlu0 %v419_v32 }
 0x107   :  { %v4236_v37 = vpop.f32.mrb[20].mxu0 }
 0x108   :  { %v338_v38 = vpop.f32.mrb[21].mxu0  ;;  %v424_v39 = vsub.f32 %v4236_v37, %v4652_v50 }
 0x109   :  { %v423_v40 = vsub.f32 %v338_v38, %v4652_v50 }
 0x10a   :  { %473 = vmax.index.xlane.f32.xlu1 %v422_v35  ;;  %471 = vmax.index.xlane.f32.xlu0 %v421_v36 }
 0x10b   :  { %v4239_v41 = vpop.f32.mrb[22].mxu0 }
 0x10c   :  { %v348_v42 = vpop.f32.mrb[23].mxu0  ;;  %v426_v43 = vsub.f32 %v4239_v41, %v4652_v50  ;;  %v6031_v41 = vmov 0.0  }
 0x10d   :  { %v425_v44 = vsub.f32 %v348_v42, %v4652_v50 }
 0x10e   :  { %477 = vmax.index.xlane.f32.xlu1 %v424_v39  ;;  %475 = vmax.index.xlane.f32.xlu0 %v423_v40 }
 0x10f   :  { %v4242_v45 = vpop.f32.mrb[24].mxu0 }
 0x110   :  { %v358_v46 = vpop.f32.mrb[25].mxu0  ;;  %v428_v47 = vsub.f32 %v4242_v45, %v4652_v50 }
 0x111   :  { %v427_v48 = vsub.f32 %v358_v46, %v4652_v50 }
 0x112   :  { %481 = vmax.index.xlane.f32.xlu1 %v426_v43  ;;  %479 = vmax.index.xlane.f32.xlu0 %v425_v44 }
 0x113   :  { %v4245_v49 = vpop.f32.mrb[26].mxu0 }
 0x114   :  { %v368_v51 = vpop.f32.mrb[27].mxu0  ;;  %v430_v52 = vsub.f32 %v4245_v49, %v4652_v50 }
 0x115   :  { %v429_v0 = vsub.f32 %v368_v51, %v4652_v50 }
 0x116   :  { %485 = vmax.index.xlane.f32.xlu1 %v428_v47  ;;  %483 = vmax.index.xlane.f32.xlu0 %v427_v48 }
 0x117   :  { %v4248_v53 = vpop.f32.mrb[28].mxu0 }
 0x118   :  { %v378_v60 = vpop.f32.mrb[29].mxu0  ;;  %v432_v55 = vsub.f32 %v4248_v53, %v4652_v50 }
 0x119   :  { %v431_v61 = vsub.f32 %v378_v60, %v4652_v50 }
 0x11a   :  { %439 = vmax.index.xlane.f32.xlu0 %v405_v59  ;;  %489 = vmax.index.xlane.f32.xlu1 %v430_v52 }
 0x11b   :  { %v4251_v62 = vpop.f32.mrb[30].mxu0 }
 0x11c   :  { %v434_v1 = vsub.f32 %v4251_v62, %v4652_v50  ;;  %v388_v2 = vpop.f32.mrb[31].mxu0 }
 0x11d   :  { %v433_v3 = vsub.f32 %v388_v2, %v4652_v50  ;;  %v4738_v50 = vsub.s32 2, %v4726_v7 }
 0x11e   :  { %441 = vmax.index.xlane.f32.xlu0 %v406_v63  ;;  %487 = vmax.index.xlane.f32.xlu1 %v429_v0 }
 0x122   :  { %443 = vmax.index.xlane.f32.xlu0 %v407_v4  ;;  %493 = vmax.index.xlane.f32.xlu1 %v432_v55 }
 0x126   :  { %445 = vmax.index.xlane.f32.xlu0 %v408_v57  ;;  %491 = vmax.index.xlane.f32.xlu1 %v431_v61  ;;  %v4744_v57 = vsub.s32 4, %v4726_v7 }
 0x12a   :  { %495 = vmax.index.xlane.f32.xlu1 %v433_v3 }
 0x12e   :  { %497 = vmax.index.xlane.f32.xlu1 %v434_v1 }
 0x170   :  { %v436_v14 = vpop.xlane.xlu0 %435 }
 0x171   :  { %vm600_vm1 = vcmp.eq.s32.totalorder %v4729_v9, %v436_v14  ;;  %v1052_v16 = vrot.slane %v436_v14, %v4732_v58  ;;  %v1056_v17 = vrot.slane %v436_v14, %v4735_v10  ;;  %v1060_v18 = vrot.slane %v436_v14, %v4738_v50 }
 0x172   :  { %4284 = vmatprep.mubr.msk.f32.mxu0 %vm600_vm1, %v6033_v19  ;;  %v1064_v20 = vrot.slane %v436_v14, %v4741_v56  ;;  %v1068_v21 = vrot.slane %v436_v14, %v4744_v57  ;;  %v1072_v22 = vrot.slane %v436_v14, %v4747_v11  ;;  %v1076_v23 = vrot.slane %v436_v14, %v4750_v12 }
 0x173   :  { %v1080_v24 = vrot.slane %v436_v14, %v4753_v13  ;;  %v2073_v25 = vcombine.low %v1052_v16, %v1056_v17  ;;  %v4787_v42 = vsel %vm600_vm1, 1.0, %v6031_v41 }
 0x174   :  { %v2074_v26 = vcombine.low %v1060_v18, %v1064_v20  ;;  %v2075_v27 = vcombine.low %v1068_v21, %v1072_v22 }
 0x175   :  { %v2076_v28 = vcombine.low %v1076_v23, %v1080_v24  ;;  %v2083_v29 = vrot.slane %v2073_v25, %v4756_v15 }
 0x176   :  { %v2090_v30 = vrot.slane %v2074_v26, %v4756_v15  ;;  %v2097_v31 = vrot.slane %v2075_v27, %v4756_v15 }
 0x177   :  { %v2104_v32 = vrot.slane %v2076_v28, %v4756_v15 }
 0x178   :  { %v2105_v33 = vcombine.low %v2083_v29, %v2090_v30 }
 0x179   :  { %v2106_v34 = vcombine.low %v2097_v31, %v2104_v32 }
 0x17a   :  { %v2113_v35 = vrot.slane %v2105_v33, %v4756_v15 }
 0x17b   :  { %v4775_v36 = vpop.xlane.xlu0 %449  ;;  %v2120_v37 = vrot.slane %v2106_v34, %v4756_v15 }
 0x17c   :  { %vm607_vm2 = vcmp.eq.s32.totalorder %v4729_v9, %v4775_v36  ;;  %v1276_v39 = vrot.slane %v4775_v36, %v4732_v58  ;;  %v1280_v40 = vrot.slane %v4775_v36, %v4735_v10  ;;  %v1284_v44 = vrot.slane %v4775_v36, %v4738_v50 }
 0x17d   :  { %v2121_v38 = vcombine.low %v2113_v35, %v2120_v37  ;;  %v4793_v43 = vsel %vm607_vm2, 1.0, %v6031_v41  ;;  %v1288_v47 = vrot.slane %v4775_v36, %v4741_v56  ;;  %v1292_v48 = vrot.slane %v4775_v36, %v4744_v57 }
 0x17e   :  { %v1296_v49 = vrot.slane %v4775_v36, %v4747_v11  ;;  %v1300_v51 = vrot.slane %v4775_v36, %v4750_v12  ;;  %v1304_v59 = vrot.slane %v4775_v36, %v4753_v13  ;;  %v4817_v62 = vcombine.low %v1276_v39, %v1280_v40 }
 0x17f   :  { %3642 = vperm.xlu0 %4395, %v2121_v38   ;;  %v4797_v45 = vpop.xlane.xlu0 %447  ;;  %v454_v46 = vpop.xlane.xlu1 %453  ;;  %v4832_v8 = vcombine.low %v1284_v44, %v1288_v47 }
 0x180   :  { %6066 = vst [vmem:[#allocation9_spill] sm:$0xff] %v4797_v45  ;;  %vm606_vm3 = vcmp.eq.s32.totalorder %v4729_v9, %v4797_v45  ;;  %v1340_v52 = vrot.slane %v454_v46, %v4732_v58  ;;  %v1344_v53 = vrot.slane %v454_v46, %v4735_v10  ;;  %vm609_vm4 = vcmp.eq.s32.totalorder %v4729_v9, %v454_v46 }
 0x181   :  { %4293 = vmatprep.mubr.msk.f32.mxu1 %vm606_vm3, %v6033_v19  ;;  %v1348_v60 = vrot.slane %v454_v46, %v4738_v50  ;;  %v1352_v61 = vrot.slane %v454_v46, %v4741_v56  ;;  %v1356_v63 = vrot.slane %v454_v46, %v4744_v57  ;;  %v1360_v0 = vrot.slane %v454_v46, %v4747_v11 }
 0x182   :  { %4294 = vmatmul.mubr.msk.f32.vlgmr.msra.gmra.mrb[0].mxu1 %vm607_vm2, %v6033_v19  ;;  %v1364_v1 = vrot.slane %v454_v46, %v4750_v12  ;;  %v1368_v2 = vrot.slane %v454_v46, %v4753_v13  ;;  %v4828_v3 = vsel %vm606_vm3, 1.0, %v6031_v41  ;;  %v2514_v5 = vcombine.low %v1340_v52, %v1344_v53 }
 0x183   :  { %v438_v55 = vpop.xlane.xlu0 %437  ;;  %v4830_v4 = vpop.xlane.xlu1 %451  ;;  %v2515_v6 = vcombine.low %v1348_v60, %v1352_v61  ;;  %v2516_v14 = vcombine.low %v1356_v63, %v1360_v0  ;;  %v4847_v17 = vsel %vm609_vm4, 1.0, %v6031_v41  ;;  %v2418_v36 = vcombine.low %v1292_v48, %v1296_v49 }
 0x184   :  { %6067 = vst [vmem:[#allocation10_spill] sm:$0xff] %v4830_v4  ;;  %vm601_vm5 = vcmp.eq.s32.totalorder %v4729_v9, %v438_v55  ;;  %vm608_vm6 = vcmp.eq.s32.totalorder %v4729_v9, %v4830_v4  ;;  %v2517_v16 = vcombine.low %v1364_v1, %v1368_v2  ;;  %v2524_v18 = vrot.slane %v2514_v5, %v4756_v15 }
 0x185   :  { %4285 = vmatmul.mubr.msk.f32.vlgmr.msra.gmra.mrb[32].mxu0 %vm601_vm5, %v6033_v19  ;;  %4296 = vmatprep.mubr.msk.f32.mxu1 %vm608_vm6, %v6033_v19  ;;  %v2531_v20 = vrot.slane %v2515_v6, %v4756_v15  ;;  %v1084_v21 = vrot.slane %v438_v55, %v4732_v58  ;;  %v2538_v22 = vrot.slane %v2516_v14, %v4756_v15  ;;  %v4049_v48 = vsel %vm601_vm5, 1.0, %v6031_v41 }
 0x186   :  { %4297 = vmatmul.mubr.msk.f32.gmra.mrb[2].mxu1 %vm609_vm4, %v6033_v19  ;;  %v2545_v23 = vrot.slane %v2517_v16, %v4756_v15  ;;  %v1088_v24 = vrot.slane %v438_v55, %v4735_v10  ;;  %v1092_v25 = vrot.slane %v438_v55, %v4738_v50  ;;  %v1096_v29 = vrot.slane %v438_v55, %v4741_v56 }
 0x187   :  { %v4859_v26 = vpop.xlane.xlu1 %457  ;;  %v4861_v27 = vpop.xlane.xlu0 %455  ;;  %v2546_v28 = vcombine.low %v2524_v18, %v2531_v20  ;;  %v1100_v30 = vrot.slane %v438_v55, %v4744_v57  ;;  %v1104_v31 = vrot.slane %v438_v55, %v4747_v11  ;;  %v1108_v33 = vrot.slane %v438_v55, %v4750_v12 }
 0x188   :  { %6068 = vst [vmem:[#allocation11_spill] sm:$0xff] %v4859_v26  ;;  %6069 = vst [vmem:[#allocation12_spill] sm:$0xff] %v4861_v27  ;;  %vm610_vm7 = vcmp.eq.s32.totalorder %v4729_v9, %v4861_v27  ;;  %vm611_vm8 = vcmp.eq.s32.totalorder %v4729_v9, %v4859_v26  ;;  %v2547_v32 = vcombine.low %v2538_v22, %v2545_v23  ;;  %v4902_v60 = vsel %vm608_vm6, 1.0, %v6031_v41 }
 0x189   :  { %4299 = vmatprep.mubr.msk.f32.mxu1 %vm610_vm7, %v6033_v19  ;;  %v2554_v34 = vrot.slane %v2546_v28, %v4756_v15  ;;  %v1112_v35 = vrot.slane %v438_v55, %v4753_v13  ;;  %v2419_v37 = vcombine.low %v1300_v51, %v1304_v59  ;;  %v2122_v39 = vcombine.low %v1084_v21, %v1088_v24 }
 0x18a   :  { %4300 = vmatmul.mubr.msk.f32.gmra.mrb[4].mxu1 %vm611_vm8, %v6033_v19  ;;  %v2561_v38 = vrot.slane %v2547_v32, %v4756_v15  ;;  %v2123_v40 = vcombine.low %v1092_v25, %v1096_v29  ;;  %v2124_v44 = vcombine.low %v1100_v30, %v1104_v31  ;;  %v2426_v49 = vrot.slane %v4817_v62, %v4756_v15 }
 0x18b   :  { %v4882_v46 = vpop.xlane.xlu1 %461  ;;  %v4884_v47 = vpop.xlane.xlu0 %459  ;;  %v2125_v52 = vcombine.low %v1108_v33, %v1112_v35  ;;  %v2433_v51 = vrot.slane %v4832_v8, %v4756_v15  ;;  %v2132_v59 = vrot.slane %v2122_v39, %v4756_v15  ;;  %v4908_v61 = vsel %vm610_vm7, 1.0, %v6031_v41 }
 0x18c   :  { %6070 = vst [vmem:[#allocation13_spill] sm:$0xff] %v4882_v46  ;;  %6071 = vst [vmem:[#allocation14_spill] sm:$0xff] %v4884_v47  ;;  %v2562_v53 = vcombine.low %v2554_v34, %v2561_v38  ;;  %vm612_vm9 = vcmp.eq.s32.totalorder %v4729_v9, %v4884_v47  ;;  %vm613_vm10 = vcmp.eq.s32.totalorder %v4729_v9, %v4882_v46  ;;  %v4917_v0 = vsel %vm611_vm8, 1.0, %v6031_v41 }
 0x18d   :  { %4302 = vmatprep.mubr.msk.f32.mxu1 %vm612_vm9, %v6033_v19  ;;  %v2139_v62 = vrot.slane %v2123_v40, %v4756_v15  ;;  %v2146_v63 = vrot.slane %v2124_v44, %v4756_v15  ;;  %v2153_v1 = vrot.slane %v2125_v52, %v4756_v15  ;;  %v4925_v2 = vadd.f32 %v4049_v48, %v4787_v42 }
 0x18e   :  { %3669 = vperm.xlu0 %4395, %v2562_v53   ;;  %4303 = vmatmul.mubr.msk.f32.gmra.mrb[6].mxu1 %vm613_vm10, %v6033_v19  ;;  %v2440_v55 = vrot.slane %v2418_v36, %v4756_v15  ;;  %v4929_v5 = vsel %vm612_vm9, 1.0, %v6031_v41  ;;  %v2447_v16 = vrot.slane %v2419_v37, %v4756_v15  ;;  %v4936_v18 = vcombine.low %v2426_v49, %v2433_v51 }
 0x18f   :  { %v4931_v6 = vpop.xlane.xlu1 %465  ;;  %v4933_v8 = vpop.xlane.xlu0 %463  ;;  %v2154_v14 = vcombine.low %v2132_v59, %v2139_v62  ;;  %v4942_v42 = vsel %vm613_vm10, 1.0, %v6031_v41  ;;  %v2155_v20 = vcombine.low %v2146_v63, %v2153_v1 }
 0x190   :  { %6072 = vst [vmem:[#allocation15_spill] sm:$0xff] %v4931_v6  ;;  %6073 = vst [vmem:[#allocation16_spill] sm:$0xff] %v4933_v8  ;;  %vm614_vm11 = vcmp.eq.s32.totalorder %v4729_v9, %v4933_v8  ;;  %vm615_vm12 = vcmp.eq.s32.totalorder %v4729_v9, %v4931_v6  ;;  %v4950_v22 = vcombine.low %v2440_v55, %v2447_v16 }
 0x191   :  { %6074 = vst [vmem:[#allocation17_spill] sm:$0xff] %v4936_v18  ;;  %v2162_v21 = vrot.slane %v2154_v14, %v4756_v15  ;;  %4305 = vmatprep.mubr.msk.f32.mxu1 %vm614_vm11, %v6033_v19  ;;  %v2169_v25 = vrot.slane %v2155_v20, %v4756_v15  ;;  %v4958_v28 = vsel %vm614_vm11, 1.0, %v6031_v41  ;;  %v4961_v29 = vsel %vm615_vm12, 1.0, %v6031_v41 }
 0x192   :  { %6075 = vst [vmem:[#allocation18_spill] sm:$0xff] %v4950_v22  ;;  %4306 = vmatmul.mubr.msk.f32.gmra.mrb[8].mxu1 %vm615_vm12, %v6033_v19 }
 0x193   :  { %v470_v31 = vpop.xlane.xlu1 %469  ;;  %v4966_v32 = vpop.xlane.xlu0 %467  ;;  %v2170_v37 = vcombine.low %v2162_v21, %v2169_v25 }
 0x194   :  { %6076 = vst [vmem:[#allocation19_spill] sm:$0xff] %v4966_v32  ;;  %vm616_vm13 = vcmp.eq.s32.totalorder %v4729_v9, %v4966_v32  ;;  %vm617_vm14 = vcmp.eq.s32.totalorder %v4729_v9, %v470_v31  ;;  %v1596_v38 = vrot.slane %v470_v31, %v4732_v58  ;;  %v1600_v39 = vrot.slane %v470_v31, %v4735_v10 }
 0x195   :  { %4308 = vmatprep.mubr.msk.f32.mxu1 %vm616_vm13, %v6033_v19  ;;  %v1604_v40 = vrot.slane %v470_v31, %v4738_v50  ;;  %3645 = vperm.xlu1 %4394, %v2170_v37   ;;  %v4988_v48 = vsel %vm616_vm13, 1.0, %v6031_v41  ;;  %v1608_v49 = vrot.slane %v470_v31, %v4741_v56  ;;  %v1612_v51 = vrot.slane %v470_v31, %v4744_v57 }
 0x196   :  { %4309 = vmatmul.mubr.msk.f32.gmra.mrb[10].mxu1 %vm617_vm14, %v6033_v19  ;;  %v1616_v53 = vrot.slane %v470_v31, %v4747_v11  ;;  %v4995_v59 = vsel %vm617_vm14, 1.0, %v6031_v41  ;;  %v1620_v1 = vrot.slane %v470_v31, %v4750_v12  ;;  %v1624_v55 = vrot.slane %v470_v31, %v4753_v13 }
 0x197   :  { %v474_v62 = vpop.xlane.xlu1 %473  ;;  %v4997_v63 = vpop.xlane.xlu0 %471  ;;  %v2906_v14 = vcombine.low %v1596_v38, %v1600_v39  ;;  %v2907_v16 = vcombine.low %v1604_v40, %v1608_v49 }
 0x198   :  { %6077 = vst [vmem:[#allocation20_spill] sm:$0xff] %v4997_v63  ;;  %vm618_vm15 = vcmp.eq.s32.totalorder %v4729_v9, %v4997_v63  ;;  %vm619_vm1 = vcmp.eq.s32.totalorder %v4729_v9, %v474_v62  ;;  %v2908_v20 = vcombine.low %v1612_v51, %v1616_v53  ;;  %v2909_v37 = vcombine.low %v1620_v1, %v1624_v55 }
 0x199   :  { %v5005_v21 = vsel %vm618_vm15, 1.0, %v6031_v41  ;;  %4311 = vmatprep.mubr.msk.f32.mxu1 %vm618_vm15, %v6033_v19  ;;  %v5009_v25 = vsel %vm619_vm1, 1.0, %v6031_v41  ;;  %v2916_v54 = vrot.slane %v2906_v14, %v4756_v15  ;;  %v2923_v31 = vrot.slane %v2907_v16, %v4756_v15 }
 0x19a   :  { %4312 = vmatmul.mubr.msk.f32.gmra.mrb[12].mxu1 %vm619_vm1, %v6033_v19  ;;  %v2930_v38 = vrot.slane %v2908_v20, %v4756_v15  ;;  %v1660_v39 = vrot.slane %v474_v62, %v4732_v58  ;;  %v1664_v40 = vrot.slane %v474_v62, %v4735_v10  ;;  %v2937_v53 = vrot.slane %v2909_v37, %v4756_v15 }
 0x19b   :  { %v478_v49 = vpop.xlane.xlu1 %477  ;;  %v5017_v51 = vpop.xlane.xlu0 %475  ;;  %v1668_v52 = vrot.slane %v474_v62, %v4738_v50  ;;  %v1672_v1 = vrot.slane %v474_v62, %v4741_v56  ;;  %v1676_v55 = vrot.slane %v474_v62, %v4744_v57  ;;  %v2938_v14 = vcombine.low %v2916_v54, %v2923_v31 }
 0x19c   :  { %6078 = vst [vmem:[#allocation21_spill] sm:$0xff] %v5017_v51  ;;  %vm620_vm2 = vcmp.eq.s32.totalorder %v4729_v9, %v5017_v51  ;;  %vm621_vm3 = vcmp.eq.s32.totalorder %v4729_v9, %v478_v49  ;;  %v1680_v16 = vrot.slane %v474_v62, %v4747_v11  ;;  %v2939_v36 = vcombine.low %v2930_v38, %v2937_v53 }
 0x19d   :  { %v5028_v20 = vsel %vm620_vm2, 1.0, %v6031_v41  ;;  %4314 = vmatprep.mubr.msk.f32.mxu1 %vm620_vm2, %v6033_v19  ;;  %v5032_v37 = vsel %vm621_vm3, 1.0, %v6031_v41  ;;  %v1684_v44 = vrot.slane %v474_v62, %v4750_v12  ;;  %v2946_v34 = vrot.slane %v2938_v14, %v4756_v15 }
 0x19e   :  { %4315 = vmatmul.mubr.msk.f32.gmra.mrb[14].mxu1 %vm621_vm3, %v6033_v19  ;;  %v1688_v35 = vrot.slane %v474_v62, %v4753_v13  ;;  %v3004_v54 = vcombine.low %v1660_v39, %v1664_v40  ;;  %v3005_v31 = vcombine.low %v1668_v52, %v1672_v1  ;;  %v2953_v30 = vrot.slane %v2939_v36, %v4756_v15 }
 0x19f   :  { %v5038_v23 = vpop.xlane.xlu1 %481  ;;  %v5040_v24 = vpop.xlane.xlu0 %479  ;;  %v3006_v33 = vcombine.low %v1676_v55, %v1680_v16  ;;  %v1724_v41 = vrot.slane %v478_v49, %v4732_v58  ;;  %v1728_v38 = vrot.slane %v478_v49, %v4735_v10  ;;  %v6080_v40 = vmov 0.0  }
 0x1a0   :  { %6079 = vst [vmem:[#allocation22_spill] sm:$0xff] %v5040_v24  ;;  %vm622_vm4 = vcmp.eq.s32.totalorder %v4729_v9, %v5040_v24  ;;  %vm623_vm5 = vcmp.eq.s32.totalorder %v4729_v9, %v5038_v23  ;;  %v3007_v62 = vcombine.low %v1684_v44, %v1688_v35  ;;  %v3014_v52 = vrot.slane %v3004_v54, %v4756_v15 }
 0x1a1   :  { %v2954_v39 = vcombine.low %v2946_v34, %v2953_v30  ;;  %v5051_v53 = vsel %vm622_vm4, 1.0, %v6080_v40  ;;  %4317 = vmatprep.mubr.msk.f32.mxu1 %vm622_vm4, %v6033_v19  ;;  %v5055_v36 = vsel %vm623_vm5, 1.0, %v6080_v40  ;;  %v3021_v1 = vrot.slane %v3005_v31, %v4756_v15 }
 0x1a2   :  { %4318 = vmatmul.mubr.msk.f32.gmra.mrb[16].mxu1 %vm623_vm5, %v6033_v19  ;;  %v3028_v55 = vrot.slane %v3006_v33, %v4756_v15  ;;  %v3035_v14 = vrot.slane %v3007_v62, %v4756_v15  ;;  %v1732_v35 = vrot.slane %v478_v49, %v4738_v50  ;;  %v1736_v30 = vrot.slane %v478_v49, %v4741_v56 }
 0x1a3   :  { %3693 = vperm.xlu0 %4395, %v2954_v39   ;;  %v5063_v34 = vpop.xlane.xlu1 %485  ;;  %v5065_v44 = vpop.xlane.xlu0 %483  ;;  %v3036_v16 = vcombine.low %v3014_v52, %v3021_v1  ;;  %v1740_v54 = vrot.slane %v478_v49, %v4744_v57  ;;  %v1744_v31 = vrot.slane %v478_v49, %v4747_v11  ;;  %v1748_v19 = vrot.slane %v478_v49, %v4750_v12 }
 0x1a4   :  { %6081 = vst [vmem:[#allocation23_spill] sm:$0xff] %v5065_v44  ;;  %v3037_v7 = vcombine.low %v3028_v55, %v3035_v14  ;;  %vm624_vm6 = vcmp.eq.s32.totalorder %v4729_v9, %v5065_v44  ;;  %vm625_vm7 = vcmp.eq.s32.totalorder %v4729_v9, %v5063_v34  ;;  %v1752_v33 = vrot.slane %v478_v49, %v4753_v13 }
 0x1a5   :  { %v3044_v62 = vrot.slane %v3036_v16, %v4756_v15  ;;  %v5077_v39 = vsel %vm624_vm6, 1.0, %v6080_v40  ;;  %v6082_v52 = vmov 1.0   ;;  %v5081_v1 = vsel %vm625_vm7, 1.0, %v6080_v40 }
 0x1a6   :  { %4320 = vmatprep.mubr.msk.f32.mxu1 %vm624_vm6, %v6082_v52  ;;  %v3102_v6 = vcombine.low %v1724_v41, %v1728_v38  ;;  %v3051_v55 = vrot.slane %v3037_v7, %v4756_v15  ;;  %v3103_v14 = vcombine.low %v1732_v35, %v1736_v30  ;;  %v3104_v8 = vcombine.low %v1740_v54, %v1744_v31 }
 0x1a7   :  { %4321 = vmatmul.mubr.msk.f32.gmra.mrb[18].mxu1 %vm625_vm7, %v6082_v52  ;;  %v3105_v44 = vcombine.low %v1748_v19, %v1752_v33  ;;  %v5085_v24 = vpop.xlane.xlu0 %439  ;;  %v5087_v49 = vpop.xlane.xlu1 %489  ;;  %v1788_v51 = vrot.slane %v5038_v23, %v4732_v58  ;;  %v1792_v63 = vrot.slane %v5038_v23, %v4735_v10  ;;  %v1796_v7 = vrot.slane %v5038_v23, %v4738_v50 }
 0x1a8   :  { %v3112_v16 = vrot.slane %v3102_v6, %v4756_v15  ;;  %v3052_v41 = vcombine.low %v3044_v62, %v3051_v55  ;;  %v3119_v38 = vrot.slane %v3103_v14, %v4756_v15  ;;  %v3126_v19 = vrot.slane %v3104_v8, %v4756_v15 }
 0x1a9   :  { %v3133_v35 = vrot.slane %v3105_v44, %v4756_v15  ;;  %vm602_vm8 = vcmp.eq.s32.totalorder %v4729_v9, %v5085_v24  ;;  %v1800_v6 = vrot.slane %v5038_v23, %v4741_v56  ;;  %v1804_v30 = vrot.slane %v5038_v23, %v4744_v57 }
 0x1aa   :  { %v1808_v54 = vrot.slane %v5038_v23, %v4747_v11  ;;  %3699 = vperm.xlu0 %4395, %v3052_v41   ;;  %v3134_v31 = vcombine.low %v3112_v16, %v3119_v38  ;;  %v4050_v62 = vsel %vm602_vm8, 1.0, %v6080_v40  ;;  %4287 = vmatprep.mubr.msk.f32.mxu0 %vm602_vm8, %v6082_v52  ;;  %v1812_v8 = vrot.slane %v5038_v23, %v4750_v12 }
 0x1ab   :  { %v3135_v33 = vcombine.low %v3126_v19, %v3133_v35  ;;  %v3946_v44 = vadd.f32 %v4050_v62, %v4925_v2  ;;  %v5112_v55 = vpop.xlane.xlu0 %441  ;;  %v5114_v14 = vpop.xlane.xlu1 %487  ;;  %v1816_v32 = vrot.slane %v5038_v23, %v4753_v13  ;;  %v3200_v47 = vcombine.low %v1788_v51, %v1792_v63 }
 0x1ac   :  { %v3201_v41 = vcombine.low %v1796_v7, %v1800_v6  ;;  %v3142_v16 = vrot.slane %v3134_v31, %v4756_v15  ;;  %v3202_v19 = vcombine.low %v1804_v30, %v1808_v54  ;;  %vm603_vm9 = vcmp.eq.s32.totalorder %v4729_v9, %v5112_v55 }
 0x1ad   :  { %v3149_v38 = vrot.slane %v3135_v33, %v4756_v15  ;;  %v3203_v35 = vcombine.low %v1812_v8, %v1816_v32  ;;  %v3210_v2 = vrot.slane %v3200_v47, %v4756_v15  ;;  %v4051_v46 = vsel %vm603_vm9, 1.0, %v6080_v40  ;;  %4288 = vmatmul.mubr.msk.f32.gmra.mrb[34].mxu0 %vm603_vm9, %v6082_v52 }
 0x1ae   :  { %v3217_v62 = vrot.slane %v3201_v41, %v4756_v15  ;;  %v3224_v63 = vrot.slane %v3202_v19, %v4756_v15  ;;  %v3947_v51 = vadd.f32 %v4051_v46, %v3946_v44  ;;  %vm626_vm10 = vcmp.eq.s32.totalorder %v4729_v9, %v5114_v14 }
 0x1af   :  { %v3150_v23 = vcombine.low %v3142_v16, %v3149_v38  ;;  %v3231_v7 = vrot.slane %v3203_v35, %v4756_v15  ;;  %v5131_v32 = vsel %vm626_vm10, 1.0, %v6080_v40  ;;  %4323 = vmatprep.mubr.msk.f32.mxu1 %vm626_vm10, %v6082_v52  ;;  %vm627_vm11 = vcmp.eq.s32.totalorder %v4729_v9, %v5087_v49  ;;  %v5140_v46 = vpop.xlane.xlu0 %443  ;;  %v5142_v30 = vpop.xlane.xlu1 %493 }
 0x1b0   :  { %v3232_v6 = vcombine.low %v3210_v2, %v3217_v62  ;;  %v5137_v47 = vsel %vm627_vm11, 1.0, %v6080_v40  ;;  %4324 = vmatmul.mubr.msk.f32.gmra.mrb[20].mxu1 %vm627_vm11, %v6082_v52  ;;  %v1852_v54 = vrot.slane %v5063_v34, %v4732_v58  ;;  %v1856_v31 = vrot.slane %v5063_v34, %v4735_v10 }
 0x1b1   :  { %3705 = vperm.xlu0 %4395, %v3150_v23   ;;  %v1860_v33 = vrot.slane %v5063_v34, %v4738_v50  ;;  %v3233_v8 = vcombine.low %v3224_v63, %v3231_v7  ;;  %v1864_v41 = vrot.slane %v5063_v34, %v4741_v56  ;;  %v1868_v16 = vrot.slane %v5063_v34, %v4744_v57 }
 0x1b2   :  { %v3240_v44 = vrot.slane %v3232_v6, %v4756_v15  ;;  %v1872_v38 = vrot.slane %v5063_v34, %v4747_v11  ;;  %v1876_v19 = vrot.slane %v5063_v34, %v4750_v12  ;;  %v1880_v35 = vrot.slane %v5063_v34, %v4753_v13 }
 0x1b3   :  { %v3298_v2 = vcombine.low %v1852_v54, %v1856_v31  ;;  %v3247_v62 = vrot.slane %v3233_v8, %v4756_v15  ;;  %v3299_v23 = vcombine.low %v1860_v33, %v1864_v41  ;;  %vm604_vm12 = vcmp.eq.s32.totalorder %v4729_v9, %v5140_v46  ;;  %v5174_v41 = vpop.xlane.xlu0 %445 }
 0x1b4   :  { %v1916_v63 = vrot.slane %v5087_v49, %v4732_v58  ;;  %v3300_v7 = vcombine.low %v1868_v16, %v1872_v38  ;;  %v3301_v6 = vcombine.low %v1876_v19, %v1880_v35  ;;  %v4052_v26 = vsel %vm604_vm12, 1.0, %v6080_v40  ;;  %4290 = vmatprep.mubr.msk.f32.mxu0 %vm604_vm12, %v6082_v52  ;;  %v5176_v16 = vpop.xlane.xlu1 %491 }
 0x1b5   :  { %v3308_v27 = vrot.slane %v3298_v2, %v4756_v15  ;;  %v3248_v4 = vcombine.low %v3240_v44, %v3247_v62  ;;  %v3315_v34 = vrot.slane %v3299_v23, %v4756_v15  ;;  %v3948_v54 = vadd.f32 %v4052_v26, %v3947_v51 }
 0x1b6   :  { %v1920_v31 = vrot.slane %v5087_v49, %v4735_v10  ;;  %v3322_v33 = vrot.slane %v3300_v7, %v4756_v15  ;;  %v3329_v8 = vrot.slane %v3301_v6, %v4756_v15  ;;  %v1924_v38 = vrot.slane %v5087_v49, %v4738_v50 }
 0x1b7   :  { %v1928_v44 = vrot.slane %v5087_v49, %v4741_v56  ;;  %3711 = vperm.xlu0 %4395, %v3248_v4   ;;  %v3330_v19 = vcombine.low %v3308_v27, %v3315_v34  ;;  %v1932_v26 = vrot.slane %v5087_v49, %v4744_v57  ;;  %v1936_v51 = vrot.slane %v5087_v49, %v4747_v11 }
 0x1b8   :  { %v1940_v35 = vrot.slane %v5087_v49, %v4750_v12  ;;  %v3331_v2 = vcombine.low %v3322_v33, %v3329_v8  ;;  %v1944_v62 = vrot.slane %v5087_v49, %v4753_v13  ;;  %v3396_v23 = vcombine.low %v1916_v63, %v1920_v31 }
 0x1b9   :  { %v3397_v7 = vcombine.low %v1924_v38, %v1928_v44  ;;  %v3338_v6 = vrot.slane %v3330_v19, %v4756_v15  ;;  %v3398_v45 = vcombine.low %v1932_v26, %v1936_v51  ;;  %vm605_vm13 = vcmp.eq.s32.totalorder %v4729_v9, %v5174_v41 }
 0x1ba   :  { %vm628_vm14 = vcmp.eq.s32.totalorder %v4729_v9, %v5176_v16  ;;  %v3345_v4 = vrot.slane %v3331_v2, %v4756_v15  ;;  %v3399_v27 = vcombine.low %v1940_v35, %v1944_v62  ;;  %v3406_v34 = vrot.slane %v3396_v23, %v4756_v15  ;;  %4291 = vmatmul.mubr.msk.f32.gmra.mrb[36].mxu0 %vm605_vm13, %v6082_v52 }
 0x1bb   :  { %v3413_v33 = vrot.slane %v3397_v7, %v4756_v15  ;;  %v3420_v49 = vrot.slane %v3398_v45, %v4756_v15  ;;  %v4053_v63 = vsel %vm605_vm13, 1.0, %v6080_v40  ;;  %v5202_v31 = vsel %vm628_vm14, 1.0, %v6080_v40  ;;  %4326 = vmatprep.mubr.msk.f32.mxu1 %vm628_vm14, %v6082_v52 }
 0x1bc   :  { %vm629_vm15 = vcmp.eq.s32.totalorder %v4729_v9, %v5142_v30  ;;  %v3346_v8 = vcombine.low %v3338_v6, %v3345_v4  ;;  %v3427_v38 = vrot.slane %v3399_v27, %v4756_v15  ;;  %v3949_v19 = vadd.f32 %v4053_v63, %v3948_v54 }
 0x1bd   :  { %v3428_v44 = vcombine.low %v3406_v34, %v3413_v33  ;;  %4327 = vmatmul.mubr.msk.f32.gmra.mrb[22].mxu1 %vm629_vm15, %v6082_v52  ;;  %v5210_v26 = vsel %vm629_vm15, 1.0, %v6080_v40  ;;  %v1884_v45 = vrot.slane %v5114_v14, %v4732_v58  ;;  %v1888_v51 = vrot.slane %v5114_v14, %v4735_v10 }
 0x1be   :  { %v1892_v35 = vrot.slane %v5114_v14, %v4738_v50  ;;  %3717 = vperm.xlu0 %4395, %v3346_v8   ;;  %v3429_v2 = vcombine.low %v3420_v49, %v3427_v38  ;;  %v3950_v54 = vadd.f32 %v4828_v3, %v3949_v19  ;;  %v1896_v23 = vrot.slane %v5114_v14, %v4741_v56 }
 0x1bf   :  { %v3436_v62 = vrot.slane %v3428_v44, %v4756_v15  ;;  %v1900_v7 = vrot.slane %v5114_v14, %v4744_v57  ;;  %v1904_v6 = vrot.slane %v5114_v14, %v4747_v11  ;;  %v1908_v4 = vrot.slane %v5114_v14, %v4750_v12 }
 0x1c0   :  { %v1912_v27 = vrot.slane %v5114_v14, %v4753_v13  ;;  %v3443_v34 = vrot.slane %v3429_v2, %v4756_v15  ;;  %v3951_v33 = vadd.f32 %v4793_v43, %v3950_v54  ;;  %v3347_v3 = vcombine.low %v1884_v45, %v1888_v51 }
 0x1c1   :  { %v3348_v49 = vcombine.low %v1892_v35, %v1896_v23  ;;  %v3349_v63 = vcombine.low %v1900_v7, %v1904_v6  ;;  %v1148_v38 = vrot.slane %v5112_v55, %v4732_v58  ;;  %v1152_v44 = vrot.slane %v5112_v55, %v4735_v10 }
 0x1c2   :  { %v3350_v8 = vcombine.low %v1908_v4, %v1912_v27  ;;  %v3444_v19 = vcombine.low %v3436_v62, %v3443_v34  ;;  %v3952_v18 = vadd.f32 %v4902_v60, %v3951_v33  ;;  %v3357_v22 = vrot.slane %v3347_v3, %v4756_v15  ;;  %v5246_v62 = vpop.xlane.xlu1 %495 }
 0x1c3   :  { %v3364_v14 = vrot.slane %v3348_v49, %v4756_v15  ;;  %v3371_v2 = vrot.slane %v3349_v63, %v4756_v15  ;;  %v1156_v45 = vrot.slane %v5112_v55, %v4738_v50  ;;  %v1160_v51 = vrot.slane %v5112_v55, %v4741_v56 }
 0x1c4   :  { %v3378_v43 = vrot.slane %v3350_v8, %v4756_v15  ;;  %3723 = vperm.xlu0 %4395, %v3444_v19   ;;  %v3953_v35 = vadd.f32 %v4847_v17, %v3952_v18  ;;  %v1164_v54 = vrot.slane %v5112_v55, %v4744_v57  ;;  %v1168_v23 = vrot.slane %v5112_v55, %v4747_v11 }
 0x1c5   :  { %v3379_v60 = vcombine.low %v3357_v22, %v3364_v14  ;;  %v1172_v6 = vrot.slane %v5112_v55, %v4750_v12  ;;  %v1176_v4 = vrot.slane %v5112_v55, %v4753_v13  ;;  %v2220_v27 = vcombine.low %v1148_v38, %v1152_v44 }
 0x1c6   :  { %v3380_v7 = vcombine.low %v3371_v2, %v3378_v43  ;;  %v3954_v34 = vadd.f32 %v4908_v61, %v3953_v35  ;;  %v2221_v18 = vcombine.low %v1156_v45, %v1160_v51  ;;  %v2222_v22 = vcombine.low %v1164_v54, %v1168_v23 }
 0x1c7   :  { %v3387_v17 = vrot.slane %v3379_v60, %v4756_v15  ;;  %v2223_v3 = vcombine.low %v1172_v6, %v1176_v4  ;;  %v2230_v49 = vrot.slane %v2220_v27, %v4756_v15  ;;  %vm630_vm1 = vcmp.eq.s32.totalorder %v4729_v9, %v5246_v62 }
 0x1c8   :  { %v3394_v33 = vrot.slane %v3380_v7, %v4756_v15  ;;  %v3955_v63 = vadd.f32 %v4917_v0, %v3954_v34  ;;  %v2237_v8 = vrot.slane %v2221_v18, %v4756_v15  ;;  %v2244_v55 = vrot.slane %v2222_v22, %v4756_v15  ;;  %4329 = vmatprep.mubr.msk.f32.mxu1 %vm630_vm1, %v6082_v52 }
 0x1c9   :  { %v5266_v61 = vsel %vm630_vm1, 1.0, %v6080_v40  ;;  %v2251_v44 = vrot.slane %v2223_v3, %v4756_v15  ;;  %v1980_v19 = vrot.slane %v5142_v30, %v4732_v58  ;;  %v1984_v14 = vrot.slane %v5142_v30, %v4735_v10 }
 0x1ca   :  { %v3395_v38 = vcombine.low %v3387_v17, %v3394_v33  ;;  %v3956_v0 = vadd.f32 %v4929_v5, %v3955_v63  ;;  %v2252_v2 = vcombine.low %v2230_v49, %v2237_v8  ;;  %v1988_v43 = vrot.slane %v5142_v30, %v4738_v50 }
 0x1cb   :  { %v1992_v45 = vrot.slane %v5142_v30, %v4741_v56  ;;  %v2253_v51 = vcombine.low %v2244_v55, %v2251_v44  ;;  %v1996_v35 = vrot.slane %v5142_v30, %v4744_v57  ;;  %v2000_v60 = vrot.slane %v5142_v30, %v4747_v11  ;;  %v5301_v55 = vpop.xlane.xlu1 %497 }
 0x1cc   :  { %3720 = vperm.xlu0 %4395, %v3395_v38   ;;  %v2004_v54 = vrot.slane %v5142_v30, %v4750_v12  ;;  %v3957_v5 = vadd.f32 %v4942_v42, %v3956_v0  ;;  %v2260_v23 = vrot.slane %v2252_v2, %v4756_v15  ;;  %v2008_v7 = vrot.slane %v5142_v30, %v4753_v13 }
 0x1cd   :  { %v3494_v6 = vcombine.low %v1980_v19, %v1984_v14  ;;  %v2267_v4 = vrot.slane %v2253_v51, %v4756_v15  ;;  %v3495_v27 = vcombine.low %v1988_v43, %v1992_v45  ;;  %v3496_v34 = vcombine.low %v1996_v35, %v2000_v60 }
 0x1ce   :  { %v1116_v17 = vrot.slane %v5085_v24, %v4732_v58  ;;  %v3958_v18 = vadd.f32 %v4958_v28, %v3957_v5  ;;  %v3497_v22 = vcombine.low %v2004_v54, %v2008_v7  ;;  %v1120_v42 = vrot.slane %v5085_v24, %v4735_v10 }
 0x1cf   :  { %v3504_v33 = vrot.slane %v3494_v6, %v4756_v15  ;;  %v2268_v3 = vcombine.low %v2260_v23, %v2267_v4  ;;  %v3511_v49 = vrot.slane %v3495_v27, %v4756_v15  ;;  %v3518_v30 = vrot.slane %v3496_v34, %v4756_v15 }
 0x1d0   :  { %v1124_v63 = vrot.slane %v5085_v24, %v4738_v50  ;;  %v3959_v8 = vadd.f32 %v4961_v29, %v3958_v18  ;;  %v3525_v28 = vrot.slane %v3497_v22, %v4756_v15  ;;  %v1128_v38 = vrot.slane %v5085_v24, %v4741_v56 }
 0x1d1   :  { %v1132_v44 = vrot.slane %v5085_v24, %v4744_v57  ;;  %3651 = vperm.xlu1 %4394, %v2268_v3   ;;  %v3526_v19 = vcombine.low %v3504_v33, %v3511_v49  ;;  %v1136_v14 = vrot.slane %v5085_v24, %v4747_v11  ;;  %v1140_v0 = vrot.slane %v5085_v24, %v4750_v12 }
 0x1d2   :  { %v1144_v29 = vrot.slane %v5085_v24, %v4753_v13  ;;  %v3960_v2 = vadd.f32 %v4988_v48, %v3959_v8  ;;  %v3527_v43 = vcombine.low %v3518_v30, %v3525_v28  ;;  %v2171_v45 = vcombine.low %v1116_v17, %v1120_v42 }
 0x1d3   :  { %v2172_v51 = vcombine.low %v1124_v63, %v1128_v38  ;;  %v3534_v35 = vrot.slane %v3526_v19, %v4756_v15  ;;  %v2173_v60 = vcombine.low %v1132_v44, %v1136_v14  ;;  %vm631_vm2 = vcmp.eq.s32.totalorder %v4729_v9, %v5301_v55 }
 0x1d4   :  { %v2174_v54 = vcombine.low %v1140_v0, %v1144_v29  ;;  %v3961_v5 = vadd.f32 %v4995_v59, %v3960_v2  ;;  %v3541_v23 = vrot.slane %v3527_v43, %v4756_v15  ;;  %v2181_v7 = vrot.slane %v2171_v45, %v4756_v15  ;;  %4330 = vmatmul.mubr.msk.f32.gmra.mrb[24].mxu1 %vm631_vm2, %v6082_v52 }
 0x1d5   :  { %v2188_v24 = vrot.slane %v2172_v51, %v4756_v15  ;;  %v2195_v48 = vrot.slane %v2173_v60, %v4756_v15  ;;  %v5326_v4 = vsel %vm631_vm2, 1.0, %v6080_v40  ;;  %v1948_v27 = vrot.slane %v5176_v16, %v4732_v58 }
 0x1d6   :  { %v2202_v6 = vrot.slane %v2174_v54, %v4756_v15  ;;  %v3962_v59 = vadd.f32 %v5005_v21, %v3961_v5  ;;  %v3542_v34 = vcombine.low %v3534_v35, %v3541_v23  ;;  %v1952_v18 = vrot.slane %v5176_v16, %v4735_v10 }
 0x1d7   :  { %v2203_v17 = vcombine.low %v2181_v7, %v2188_v24  ;;  %v1956_v52 = vrot.slane %v5176_v16, %v4738_v50  ;;  %v1960_v33 = vrot.slane %v5176_v16, %v4741_v56  ;;  %v1964_v40 = vrot.slane %v5176_v16, %v4744_v57 }
 0x1d8   :  { %v2204_v22 = vcombine.low %v2195_v48, %v2202_v6  ;;  %v3963_v42 = vadd.f32 %v5009_v25, %v3962_v59  ;;  %3729 = vperm.xlu0 %4395, %v3542_v34   ;;  %v1968_v3 = vrot.slane %v5176_v16, %v4747_v11  ;;  %v1972_v49 = vrot.slane %v5176_v16, %v4750_v12 }
 0x1d9   :  { %v2211_v21 = vrot.slane %v2203_v17, %v4756_v15  ;;  %v1976_v63 = vrot.slane %v5176_v16, %v4753_v13  ;;  %v3445_v8 = vcombine.low %v1948_v27, %v1952_v18  ;;  %v3446_v28 = vcombine.low %v1956_v52, %v1960_v33 }
 0x1da   :  { %v2218_v30 = vrot.slane %v2204_v22, %v4756_v15  ;;  %v3964_v38 = vadd.f32 %v5028_v20, %v3963_v42  ;;  %v3447_v44 = vcombine.low %v1964_v40, %v1968_v3  ;;  %v1212_v25 = vrot.slane %v5174_v41, %v4732_v58 }
 0x1db   :  { %v1216_v19 = vrot.slane %v5174_v41, %v4735_v10  ;;  %v3448_v0 = vcombine.low %v1972_v49, %v1976_v63  ;;  %v3455_v29 = vrot.slane %v3445_v8, %v4756_v15  ;;  %v3462_v2 = vrot.slane %v3446_v28, %v4756_v15 }
 0x1dc   :  { %v2219_v14 = vcombine.low %v2211_v21, %v2218_v30  ;;  %v3965_v43 = vadd.f32 %v5032_v37, %v3964_v38  ;;  %v3469_v16 = vrot.slane %v3447_v44, %v4756_v15  ;;  %v1220_v20 = vrot.slane %v5174_v41, %v4738_v50 }
 0x1dd   :  { %v1224_v45 = vrot.slane %v5174_v41, %v4741_v56  ;;  %v3476_v51 = vrot.slane %v3448_v0, %v4756_v15  ;;  %v3477_v35 = vcombine.low %v3455_v29, %v3462_v2  ;;  %v1228_v60 = vrot.slane %v5174_v41, %v4744_v57 }
 0x1de   :  { %3648 = vperm.xlu1 %4394, %v2219_v14   ;;  %v1232_v54 = vrot.slane %v5174_v41, %v4747_v11  ;;  %v3966_v37 = vadd.f32 %v5051_v53, %v3965_v43  ;;  %v1236_v5 = vrot.slane %v5174_v41, %v4750_v12  ;;  %v1240_v23 = vrot.slane %v5174_v41, %v4753_v13 }
 0x1df   :  { %v2318_v7 = vcombine.low %v1212_v25, %v1216_v19  ;;  %v3478_v24 = vcombine.low %v3469_v16, %v3476_v51  ;;  %v3485_v48 = vrot.slane %v3477_v35, %v4756_v15  ;;  %v2319_v6 = vcombine.low %v1220_v20, %v1224_v45 }
 0x1e0   :  { %v2320_v27 = vcombine.low %v1228_v60, %v1232_v54  ;;  %v3967_v59 = vadd.f32 %v5055_v36, %v3966_v37  ;;  %v2321_v34 = vcombine.low %v1236_v5, %v1240_v23  ;;  %v1180_v53 = vrot.slane %v5140_v46, %v4732_v58 }
 0x1e1   :  { %v2328_v17 = vrot.slane %v2318_v7, %v4756_v15  ;;  %v3492_v18 = vrot.slane %v3478_v24, %v4756_v15  ;;  %v2335_v22 = vrot.slane %v2319_v6, %v4756_v15  ;;  %v1184_v52 = vrot.slane %v5140_v46, %v4735_v10 }
 0x1e2   :  { %v2342_v41 = vrot.slane %v2320_v27, %v4756_v15  ;;  %v3968_v33 = vadd.f32 %v5077_v39, %v3967_v59  ;;  %v2349_v40 = vrot.slane %v2321_v34, %v4756_v15  ;;  %v1188_v36 = vrot.slane %v5140_v46, %v4738_v50 }
 0x1e3   :  { %v1192_v42 = vrot.slane %v5140_v46, %v4741_v56  ;;  %v3493_v21 = vcombine.low %v3485_v48, %v3492_v18  ;;  %v2350_v3 = vcombine.low %v2328_v17, %v2335_v22  ;;  %v1196_v49 = vrot.slane %v5140_v46, %v4744_v57 }
 0x1e4   :  { %v1200_v30 = vrot.slane %v5140_v46, %v4747_v11  ;;  %v3969_v63 = vadd.f32 %v5081_v1, %v3968_v33  ;;  %v2351_v8 = vcombine.low %v2342_v41, %v2349_v40  ;;  %v1204_v39 = vrot.slane %v5140_v46, %v4750_v12 }
 0x1e5   :  { %v1208_v28 = vrot.slane %v5140_v46, %v4753_v13  ;;  %3726 = vperm.xlu0 %4395, %v3493_v21   ;;  %v2358_v38 = vrot.slane %v2350_v3, %v4756_v15  ;;  %v2269_v44 = vcombine.low %v1180_v53, %v1184_v52  ;;  %v2270_v25 = vcombine.low %v1188_v36, %v1192_v42 }
 0x1e6   :  { %v2271_v19 = vcombine.low %v1196_v49, %v1200_v30  ;;  %v3970_v14 = vadd.f32 %v5131_v32, %v3969_v63  ;;  %v2365_v0 = vrot.slane %v2351_v8, %v4756_v15  ;;  %v2012_v1 = vrot.slane %v5246_v62, %v4732_v58 }
 0x1e7   :  { %v2272_v29 = vcombine.low %v1204_v39, %v1208_v28  ;;  %v2279_v2 = vrot.slane %v2269_v44, %v4756_v15  ;;  %v2286_v43 = vrot.slane %v2270_v25, %v4756_v15  ;;  %v2016_v16 = vrot.slane %v5246_v62, %v4735_v10  ;;  %v6083_v44 = vld [vmem:[#allocation18_spill] sm:$0xff] }
 0x1e8   :  { %v2293_v46 = vrot.slane %v2271_v19, %v4756_v15  ;;  %v3971_v20 = vadd.f32 %v5137_v47, %v3970_v14  ;;  %v2366_v45 = vcombine.low %v2358_v38, %v2365_v0  ;;  %v2020_v51 = vrot.slane %v5246_v62, %v4738_v50 }
 0x1e9   :  { %v2300_v32 = vrot.slane %v2272_v29, %v4756_v15  ;;  %v2301_v35 = vcombine.low %v2279_v2, %v2286_v43  ;;  %v2024_v60 = vrot.slane %v5246_v62, %v4741_v56  ;;  %v2028_v54 = vrot.slane %v5246_v62, %v4744_v57  ;;  %v6087_v29 = vld [vmem:[#allocation9_spill] sm:$0xff] }
 0x1ea   :  { %v2032_v37 = vrot.slane %v5246_v62, %v4747_v11  ;;  %v3972_v5 = vadd.f32 %v5202_v31, %v3971_v20  ;;  %3657 = vperm.xlu1 %4394, %v2366_v45   ;;  %v2036_v23 = vrot.slane %v5246_v62, %v4750_v12  ;;  %v2040_v7 = vrot.slane %v5246_v62, %v4753_v13 }
 0x1eb   :  { %v2302_v47 = vcombine.low %v2293_v46, %v2300_v32  ;;  %v2309_v24 = vrot.slane %v2301_v35, %v4756_v15  ;;  %v3543_v48 = vcombine.low %v2012_v1, %v2016_v16  ;;  %v3544_v6 = vcombine.low %v2020_v51, %v2024_v60 }
 0x1ec   :  { %v3545_v27 = vcombine.low %v2028_v54, %v2032_v37  ;;  %v3973_v59 = vadd.f32 %v5210_v26, %v3972_v5  ;;  %v3546_v17 = vcombine.low %v2036_v23, %v2040_v7  ;;  %v2044_v31 = vrot.slane %v5301_v55, %v4732_v58 }
 0x1ed   :  { %v2316_v34 = vrot.slane %v2302_v47, %v4756_v15  ;;  %v3553_v53 = vrot.slane %v3543_v48, %v4756_v15  ;;  %v3560_v18 = vrot.slane %v3544_v6, %v4756_v15  ;;  %v2048_v62 = vrot.slane %v5301_v55, %v4735_v10  ;;  %v6095_v48 = vld [vmem:[#allocation10_spill] sm:$0xff] }
 0x1ee   :  { %v3567_v22 = vrot.slane %v3545_v27, %v4756_v15  ;;  %v3974_v41 = vadd.f32 %v5266_v61, %v3973_v59  ;;  %v3574_v26 = vrot.slane %v3546_v17, %v4756_v15  ;;  %v2052_v33 = vrot.slane %v5301_v55, %v4738_v50 }
 0x1ef   :  { %v2317_v52 = vcombine.low %v2309_v24, %v2316_v34  ;;  %v3575_v40 = vcombine.low %v3553_v53, %v3560_v18  ;;  %v2056_v36 = vrot.slane %v5301_v55, %v4741_v56  ;;  %v2060_v42 = vrot.slane %v5301_v55, %v4744_v57 }
 0x1f0   :  { %v2064_v21 = vrot.slane %v5301_v55, %v4747_v11  ;;  %v5442_v3 = vadd.f32 %v5326_v4, %v3974_v41  ;;  %v3576_v61 = vcombine.low %v3567_v22, %v3574_v26  ;;  %v2068_v49 = vrot.slane %v5301_v55, %v4750_v12  ;;  %v6085_v4 = vld [vmem:[#allocation17_spill] sm:$0xff] }
 0x1f1   :  { %3654 = vperm.xlu1 %4394, %v2317_v52   ;;  %v2072_v30 = vrot.slane %v5301_v55, %v4753_v13  ;;  %v3583_v63 = vrot.slane %v3575_v40, %v4756_v15  ;;  %v3592_v8 = vcombine.low %v2044_v31, %v2048_v62  ;;  %v3593_v39 = vcombine.low %v2052_v33, %v2056_v36 }
 0x1f2   :  { %v3594_v28 = vcombine.low %v2060_v42, %v2064_v21  ;;  %v3590_v38 = vrot.slane %v3576_v61, %v4756_v15  ;;  %v6084_v25 = vrot.slane %v6083_v44, %v4756_v15  ;;  %v6086_v19 = vrot.slane %v6085_v4, %v4756_v15 }
 0x1f3   :  { %v3595_v0 = vcombine.low %v2068_v49, %v2072_v30  ;;  %v1272_v1 = vrot.slane %v6087_v29, %v4753_v13  ;;  %v3602_v55 = vrot.slane %v3592_v8, %v4756_v15  ;;  %v3609_v2 = vrot.slane %v3593_v39, %v4756_v15 }
 0x1f4   :  { %v2464_v14 = vcombine.low %v6086_v19, %v6084_v25  ;;  %v3616_v43 = vrot.slane %v3594_v28, %v4756_v15  ;;  %v6088_v46 = vrot.slane %v6087_v29, %v4735_v10  ;;  %v6089_v16 = vrot.slane %v6087_v29, %v4732_v58  ;;  %v6096_v28 = vld [vmem:[#allocation11_spill] sm:$0xff] }
 0x1f5   :  { %v3591_v45 = vcombine.low %v3583_v63, %v3590_v38  ;;  %v3623_v32 = vrot.slane %v3595_v0, %v4756_v15  ;;  %v6090_v51 = vrot.slane %v6087_v29, %v4741_v56  ;;  %v6091_v35 = vrot.slane %v6087_v29, %v4738_v50 }
 0x1f6   :  { %v2367_v20 = vcombine.low %v6089_v16, %v6088_v46  ;;  %3663 = vperm.xlu1 %4394, %v2464_v14   ;;  %v6092_v54 = vrot.slane %v6087_v29, %v4747_v11  ;;  %v6093_v37 = vrot.slane %v6087_v29, %v4744_v57  ;;  %v3624_v47 = vcombine.low %v3602_v55, %v3609_v2 }
 0x1f7   :  { %v2368_v60 = vcombine.low %v6091_v35, %v6090_v51  ;;  %v6094_v23 = vrot.slane %v6087_v29, %v4750_v12  ;;  %v1308_v6 = vrot.slane %v6095_v48, %v4732_v58  ;;  %3732 = vperm.xlu0 %4395, %v3591_v45   ;;  %v3625_v27 = vcombine.low %v3616_v43, %v3623_v32  ;;  %v6097_v32 = vld [vmem:[#allocation12_spill] sm:$0xff] }
 0x1f8   :  { %v2369_v5 = vcombine.low %v6093_v37, %v6092_v54  ;;  %v2377_v24 = vrot.slane %v2367_v20, %v4756_v15  ;;  %v1312_v17 = vrot.slane %v6095_v48, %v4735_v10  ;;  %v3632_v31 = vrot.slane %v3624_v47, %v4756_v15 }
 0x1f9   :  { %v2370_v7 = vcombine.low %v6094_v23, %v1272_v1  ;;  %v2384_v59 = vrot.slane %v2368_v60, %v4756_v15  ;;  %v1316_v18 = vrot.slane %v6095_v48, %v4738_v50  ;;  %v1320_v22 = vrot.slane %v6095_v48, %v4741_v56 }
 0x1fa   :  { %v2391_v34 = vrot.slane %v2369_v5, %v4756_v15  ;;  %v3639_v62 = vrot.slane %v3625_v27, %v4756_v15  ;;  %v1324_v52 = vrot.slane %v6095_v48, %v4744_v57  ;;  %v1328_v26 = vrot.slane %v6095_v48, %v4747_v11 }
 0x1fb   :  { %v2398_v53 = vrot.slane %v2370_v7, %v4756_v15  ;;  %v2399_v41 = vcombine.low %v2377_v24, %v2384_v59  ;;  %v1332_v40 = vrot.slane %v6095_v48, %v4750_v12  ;;  %v1336_v36 = vrot.slane %v6095_v48, %v4753_v13 }
 0x1fc   :  { %v2465_v42 = vcombine.low %v1308_v6, %v1312_v17  ;;  %v3640_v21 = vcombine.low %v3632_v31, %v3639_v62  ;;  %v2466_v49 = vcombine.low %v1316_v18, %v1320_v22  ;;  %v2467_v30 = vcombine.low %v1324_v52, %v1328_v26  ;;  %v6098_v26 = vld [vmem:[#allocation13_spill] sm:$0xff] }
 0x1fd   :  { %v2400_v33 = vcombine.low %v2391_v34, %v2398_v53  ;;  %v2407_v61 = vrot.slane %v2399_v41, %v4756_v15  ;;  %v2468_v8 = vcombine.low %v1332_v40, %v1336_v36  ;;  %v1404_v38 = vrot.slane %v6096_v28, %v4732_v58 }
 0x1fe   :  { %v2475_v39 = vrot.slane %v2465_v42, %v4756_v15  ;;  %3735 = vperm.xlu0 %4395, %v3640_v21   ;;  %v2482_v44 = vrot.slane %v2466_v49, %v4756_v15  ;;  %v2489_v25 = vrot.slane %v2467_v30, %v4756_v15  ;;  %v1408_v4 = vrot.slane %v6096_v28, %v4735_v10 }
 0x1ff   :  { %v2414_v63 = vrot.slane %v2400_v33, %v4756_v15  ;;  %v1412_v19 = vrot.slane %v6096_v28, %v4738_v50  ;;  %v2496_v0 = vrot.slane %v2468_v8, %v4756_v15  ;;  %v1416_v29 = vrot.slane %v6096_v28, %v4741_v56 }
 0x200   :  { %v1420_v1 = vrot.slane %v6096_v28, %v4744_v57  ;;  %v2497_v55 = vcombine.low %v2475_v39, %v2482_v44  ;;  %v1424_v2 = vrot.slane %v6096_v28, %v4747_v11  ;;  %v1428_v43 = vrot.slane %v6096_v28, %v4750_v12 }
 0x201   :  { %v2415_v14 = vcombine.low %v2407_v61, %v2414_v63  ;;  %v1432_v46 = vrot.slane %v6096_v28, %v4753_v13  ;;  %v2498_v16 = vcombine.low %v2489_v25, %v2496_v0  ;;  %v2612_v20 = vcombine.low %v1404_v38, %v1408_v4 }
 0x202   :  { %v2613_v45 = vcombine.low %v1412_v19, %v1416_v29  ;;  %v1372_v51 = vrot.slane %v6097_v32, %v4732_v58  ;;  %v2505_v35 = vrot.slane %v2497_v55, %v4756_v15  ;;  %v2614_v60 = vcombine.low %v1420_v1, %v1424_v2  ;;  %v6099_v55 = vld [vmem:[#allocation14_spill] sm:$0xff] }
 0x203   :  { %3660 = vperm.xlu1 %4394, %v2415_v14   ;;  %v2615_v54 = vcombine.low %v1428_v43, %v1432_v46  ;;  %v1376_v37 = vrot.slane %v6097_v32, %v4735_v10  ;;  %v2512_v5 = vrot.slane %v2498_v16, %v4756_v15  ;;  %v2622_v47 = vrot.slane %v2612_v20, %v4756_v15 }
 0x204   :  { %v2629_v23 = vrot.slane %v2613_v45, %v4756_v15  ;;  %v1380_v7 = vrot.slane %v6097_v32, %v4738_v50  ;;  %v2636_v24 = vrot.slane %v2614_v60, %v4756_v15  ;;  %v1384_v6 = vrot.slane %v6097_v32, %v4741_v56 }
 0x205   :  { %v2643_v48 = vrot.slane %v2615_v54, %v4756_v15  ;;  %v1388_v27 = vrot.slane %v6097_v32, %v4744_v57  ;;  %v2513_v59 = vcombine.low %v2505_v35, %v2512_v5  ;;  %v1392_v17 = vrot.slane %v6097_v32, %v4747_v11 }
 0x206   :  { %v2644_v34 = vcombine.low %v2622_v47, %v2629_v23  ;;  %v1396_v31 = vrot.slane %v6097_v32, %v4750_v12  ;;  %v1400_v18 = vrot.slane %v6097_v32, %v4753_v13  ;;  %v2563_v22 = vcombine.low %v1372_v51, %v1376_v37 }
 0x207   :  { %v2645_v53 = vcombine.low %v2636_v24, %v2643_v48  ;;  %v2564_v62 = vcombine.low %v1380_v7, %v1384_v6  ;;  %3666 = vperm.xlu1 %4394, %v2513_v59   ;;  %v2565_v52 = vcombine.low %v1388_v27, %v1392_v17  ;;  %v1468_v33 = vrot.slane %v6098_v26, %v4732_v58 }
 0x208   :  { %v2652_v41 = vrot.slane %v2644_v34, %v4756_v15  ;;  %v1472_v40 = vrot.slane %v6098_v26, %v4735_v10  ;;  %v2566_v42 = vcombine.low %v1396_v31, %v1400_v18  ;;  %v2573_v21 = vrot.slane %v2563_v22, %v4756_v15  ;;  %v6100_v31 = vld [vmem:[#allocation19_spill] sm:$0xff] }
 0x209   :  { %v2659_v36 = vrot.slane %v2645_v53, %v4756_v15  ;;  %v2580_v61 = vrot.slane %v2564_v62, %v4756_v15  ;;  %v2587_v49 = vrot.slane %v2565_v52, %v4756_v15  ;;  %v1476_v30 = vrot.slane %v6098_v26, %v4738_v50 }
 0x20a   :  { %v1480_v63 = vrot.slane %v6098_v26, %v4741_v56  ;;  %v1484_v8 = vrot.slane %v6098_v26, %v4744_v57  ;;  %v2594_v28 = vrot.slane %v2566_v42, %v4756_v15  ;;  %v1488_v44 = vrot.slane %v6098_v26, %v4747_v11 }
 0x20b   :  { %v2660_v39 = vcombine.low %v2652_v41, %v2659_v36  ;;  %v2595_v38 = vcombine.low %v2573_v21, %v2580_v61  ;;  %v1492_v25 = vrot.slane %v6098_v26, %v4750_v12  ;;  %v1496_v4 = vrot.slane %v6098_v26, %v4753_v13 }
 0x20c   :  { %v2710_v19 = vcombine.low %v1468_v33, %v1472_v40  ;;  %v2711_v14 = vcombine.low %v1476_v30, %v1480_v63  ;;  %v2596_v0 = vcombine.low %v2587_v49, %v2594_v28  ;;  %v2712_v1 = vcombine.low %v1484_v8, %v1488_v44  ;;  %v6101_v44 = vld [vmem:[#allocation20_spill] sm:$0xff] }
 0x20d   :  { %3675 = vperm.xlu1 %4394, %v2660_v39   ;;  %v2603_v29 = vrot.slane %v2595_v38, %v4756_v15  ;;  %v1436_v2 = vrot.slane %v6099_v55, %v4732_v58  ;;  %v2713_v43 = vcombine.low %v1492_v25, %v1496_v4  ;;  %v1440_v20 = vrot.slane %v6099_v55, %v4735_v10 }
 0x20e   :  { %v2720_v46 = vrot.slane %v2710_v19, %v4756_v15  ;;  %v2727_v16 = vrot.slane %v2711_v14, %v4756_v15  ;;  %v2610_v45 = vrot.slane %v2596_v0, %v4756_v15  ;;  %v2734_v32 = vrot.slane %v2712_v1, %v4756_v15 }
 0x20f   :  { %v1444_v51 = vrot.slane %v6099_v55, %v4738_v50  ;;  %v1448_v35 = vrot.slane %v6099_v55, %v4741_v56  ;;  %v2741_v60 = vrot.slane %v2713_v43, %v4756_v15  ;;  %v1452_v37 = vrot.slane %v6099_v55, %v4744_v57 }
 0x210   :  { %v2742_v54 = vcombine.low %v2720_v46, %v2727_v16  ;;  %v1456_v5 = vrot.slane %v6099_v55, %v4747_v11  ;;  %v2611_v47 = vcombine.low %v2603_v29, %v2610_v45  ;;  %v1460_v23 = vrot.slane %v6099_v55, %v4750_v12 }
 0x211   :  { %v1464_v7 = vrot.slane %v6099_v55, %v4753_v13  ;;  %v2661_v24 = vcombine.low %v1436_v2, %v1440_v20  ;;  %v2743_v48 = vcombine.low %v2734_v32, %v2741_v60  ;;  %v2662_v27 = vcombine.low %v1444_v51, %v1448_v35 }
 0x212   :  { %v2750_v6 = vrot.slane %v2742_v54, %v4756_v15  ;;  %v2663_v59 = vcombine.low %v1452_v37, %v1456_v5  ;;  %3672 = vperm.xlu1 %4394, %v2611_v47   ;;  %v1564_v53 = vrot.slane %v6100_v31, %v4732_v58  ;;  %v1568_v18 = vrot.slane %v6100_v31, %v4735_v10  ;;  %v6102_v5 = vld [vmem:[#allocation21_spill] sm:$0xff] }
 0x213   :  { %v2664_v34 = vcombine.low %v1460_v23, %v1464_v7  ;;  %v2671_v17 = vrot.slane %v2661_v24, %v4756_v15  ;;  %v2757_v22 = vrot.slane %v2743_v48, %v4756_v15  ;;  %v2678_v62 = vrot.slane %v2662_v27, %v4756_v15 }
 0x214   :  { %v2685_v41 = vrot.slane %v2663_v59, %v4756_v15  ;;  %v1572_v52 = vrot.slane %v6100_v31, %v4738_v50  ;;  %v1576_v33 = vrot.slane %v6100_v31, %v4741_v56  ;;  %v1580_v40 = vrot.slane %v6100_v31, %v4744_v57 }
 0x215   :  { %v2692_v26 = vrot.slane %v2664_v34, %v4756_v15  ;;  %v1584_v36 = vrot.slane %v6100_v31, %v4747_v11  ;;  %v2758_v42 = vcombine.low %v2750_v6, %v2757_v22  ;;  %v2693_v21 = vcombine.low %v2671_v17, %v2678_v62 }
 0x216   :  { %v1588_v61 = vrot.slane %v6100_v31, %v4750_v12  ;;  %v1592_v49 = vrot.slane %v6100_v31, %v4753_v13  ;;  %v2857_v63 = vcombine.low %v1564_v53, %v1568_v18  ;;  %v2858_v8 = vcombine.low %v1572_v52, %v1576_v33 }
 0x217   :  { %v2694_v30 = vcombine.low %v2685_v41, %v2692_v26  ;;  %v2859_v39 = vcombine.low %v1580_v40, %v1584_v36  ;;  %3681 = vperm.xlu1 %4394, %v2758_v42   ;;  %v2701_v28 = vrot.slane %v2693_v21, %v4756_v15  ;;  %v1628_v25 = vrot.slane %v6101_v44, %v4732_v58  ;;  %v6103_v42 = vld [vmem:[#allocation22_spill] sm:$0xff] }
 0x218   :  { %v2860_v38 = vcombine.low %v1588_v61, %v1592_v49  ;;  %v1632_v4 = vrot.slane %v6101_v44, %v4735_v10  ;;  %v2867_v14 = vrot.slane %v2857_v63, %v4756_v15  ;;  %v2874_v0 = vrot.slane %v2858_v8, %v4756_v15 }
 0x219   :  { %v2708_v19 = vrot.slane %v2694_v30, %v4756_v15  ;;  %v2881_v29 = vrot.slane %v2859_v39, %v4756_v15  ;;  %v1636_v55 = vrot.slane %v6101_v44, %v4738_v50  ;;  %v1640_v2 = vrot.slane %v6101_v44, %v4741_v56 }
 0x21a   :  { %v2888_v1 = vrot.slane %v2860_v38, %v4756_v15  ;;  %v1644_v43 = vrot.slane %v6101_v44, %v4744_v57  ;;  %v2889_v16 = vcombine.low %v2867_v14, %v2874_v0  ;;  %v1648_v20 = vrot.slane %v6101_v44, %v4747_v11 }
 0x21b   :  { %v2709_v46 = vcombine.low %v2701_v28, %v2708_v19  ;;  %v1652_v45 = vrot.slane %v6101_v44, %v4750_v12  ;;  %v1656_v51 = vrot.slane %v6101_v44, %v4753_v13  ;;  %v2955_v35 = vcombine.low %v1628_v25, %v1632_v4 }
 0x21c   :  { %v2890_v32 = vcombine.low %v2881_v29, %v2888_v1  ;;  %v2956_v60 = vcombine.low %v1636_v55, %v1640_v2  ;;  %v2897_v54 = vrot.slane %v2889_v16, %v4756_v15  ;;  %v2957_v37 = vcombine.low %v1644_v43, %v1648_v20 }
 0x21d   :  { %3678 = vperm.xlu1 %4394, %v2709_v46   ;;  %v1692_v47 = vrot.slane %v6102_v5, %v4732_v58  ;;  %v1696_v23 = vrot.slane %v6102_v5, %v4735_v10  ;;  %v2958_v24 = vcombine.low %v1652_v45, %v1656_v51  ;;  %v2965_v48 = vrot.slane %v2955_v35, %v4756_v15  ;;  %v6104_v45 = vld [vmem:[#allocation23_spill] sm:$0xff] }
 0x21e   :  { %v2904_v7 = vrot.slane %v2890_v32, %v4756_v15  ;;  %v2972_v6 = vrot.slane %v2956_v60, %v4756_v15  ;;  %v2979_v27 = vrot.slane %v2957_v37, %v4756_v15  ;;  %v1700_v59 = vrot.slane %v6102_v5, %v4738_v50 }
 0x21f   :  { %v1704_v34 = vrot.slane %v6102_v5, %v4741_v56  ;;  %v1708_v17 = vrot.slane %v6102_v5, %v4744_v57  ;;  %v2986_v53 = vrot.slane %v2958_v24, %v4756_v15  ;;  %v1712_v22 = vrot.slane %v6102_v5, %v4747_v11 }
 0x220   :  { %v2905_v31 = vcombine.low %v2897_v54, %v2904_v7  ;;  %v2987_v18 = vcombine.low %v2965_v48, %v2972_v6  ;;  %v1716_v62 = vrot.slane %v6102_v5, %v4750_v12  ;;  %v1720_v41 = vrot.slane %v6102_v5, %v4753_v13 }
 0x221   :  { %v3053_v52 = vcombine.low %v1692_v47, %v1696_v23  ;;  %v3054_v26 = vcombine.low %v1700_v59, %v1704_v34  ;;  %v2988_v33 = vcombine.low %v2979_v27, %v2986_v53  ;;  %v3055_v36 = vcombine.low %v1708_v17, %v1712_v22  ;;  %v6105_v22 = vld [vmem:[#allocation16_spill] sm:$0xff] }
 0x222   :  { %3690 = vperm.xlu1 %4394, %v2905_v31   ;;  %v2995_v40 = vrot.slane %v2987_v18, %v4756_v15  ;;  %v1756_v21 = vrot.slane %v6103_v42, %v4732_v58  ;;  %v3056_v61 = vcombine.low %v1716_v62, %v1720_v41  ;;  %v1760_v63 = vrot.slane %v6103_v42, %v4735_v10 }
 0x223   :  { %v3063_v49 = vrot.slane %v3053_v52, %v4756_v15  ;;  %v3070_v30 = vrot.slane %v3054_v26, %v4756_v15  ;;  %v3002_v8 = vrot.slane %v2988_v33, %v4756_v15  ;;  %v3077_v39 = vrot.slane %v3055_v36, %v4756_v15 }
 0x224   :  { %v1764_v28 = vrot.slane %v6103_v42, %v4738_v50  ;;  %v1768_v38 = vrot.slane %v6103_v42, %v4741_v56  ;;  %v3084_v44 = vrot.slane %v3056_v61, %v4756_v15  ;;  %v1772_v4 = vrot.slane %v6103_v42, %v4744_v57 }
 0x225   :  { %v3085_v25 = vcombine.low %v3063_v49, %v3070_v30  ;;  %v1776_v19 = vrot.slane %v6103_v42, %v4747_v11  ;;  %v3003_v14 = vcombine.low %v2995_v40, %v3002_v8  ;;  %v1780_v0 = vrot.slane %v6103_v42, %v4750_v12 }
 0x226   :  { %v1784_v29 = vrot.slane %v6103_v42, %v4753_v13  ;;  %v3151_v1 = vcombine.low %v1756_v21, %v1760_v63  ;;  %v3086_v55 = vcombine.low %v3077_v39, %v3084_v44  ;;  %v3152_v43 = vcombine.low %v1764_v28, %v1768_v38 }
 0x227   :  { %v3093_v2 = vrot.slane %v3085_v25, %v4756_v15  ;;  %v3153_v46 = vcombine.low %v1772_v4, %v1776_v19  ;;  %3696 = vperm.xlu1 %4394, %v3003_v14   ;;  %v1820_v32 = vrot.slane %v6104_v45, %v4732_v58  ;;  %v1824_v51 = vrot.slane %v6104_v45, %v4735_v10  ;;  %v6106_v19 = vld [vmem:[#allocation15_spill] sm:$0xff] }
 0x228   :  { %v3154_v16 = vcombine.low %v1780_v0, %v1784_v29  ;;  %v3161_v20 = vrot.slane %v3151_v1, %v4756_v15  ;;  %v3100_v35 = vrot.slane %v3086_v55, %v4756_v15  ;;  %v3168_v60 = vrot.slane %v3152_v43, %v4756_v15 }
 0x229   :  { %v3175_v54 = vrot.slane %v3153_v46, %v4756_v15  ;;  %v1828_v37 = vrot.slane %v6104_v45, %v4738_v50  ;;  %v1832_v47 = vrot.slane %v6104_v45, %v4741_v56  ;;  %v1836_v23 = vrot.slane %v6104_v45, %v4744_v57 }
 0x22a   :  { %v3182_v5 = vrot.slane %v3154_v16, %v4756_v15  ;;  %v1840_v7 = vrot.slane %v6104_v45, %v4747_v11  ;;  %v3101_v24 = vcombine.low %v3093_v2, %v3100_v35  ;;  %v3183_v48 = vcombine.low %v3161_v20, %v3168_v60 }
 0x22b   :  { %v1844_v6 = vrot.slane %v6104_v45, %v4750_v12  ;;  %v1848_v27 = vrot.slane %v6104_v45, %v4753_v13  ;;  %v3249_v34 = vcombine.low %v1820_v32, %v1824_v51  ;;  %v3250_v17 = vcombine.low %v1828_v37, %v1832_v47 }
 0x22c   :  { %v3184_v59 = vcombine.low %v3175_v54, %v3182_v5  ;;  %v3251_v31 = vcombine.low %v1836_v23, %v1840_v7  ;;  %3702 = vperm.xlu1 %4394, %v3101_v24   ;;  %v3191_v53 = vrot.slane %v3183_v48, %v4756_v15  ;;  %v1500_v62 = vrot.slane %v6105_v22, %v4732_v58 }
 0x22d   :  { %v3252_v18 = vcombine.low %v1844_v6, %v1848_v27  ;;  %v1504_v41 = vrot.slane %v6105_v22, %v4735_v10  ;;  %v3259_v26 = vrot.slane %v3249_v34, %v4756_v15  ;;  %v3266_v33 = vrot.slane %v3250_v17, %v4756_v15 }
 0x22e   :  { %v3198_v52 = vrot.slane %v3184_v59, %v4756_v15  ;;  %v3273_v40 = vrot.slane %v3251_v31, %v4756_v15  ;;  %v1508_v42 = vrot.slane %v6105_v22, %v4738_v50  ;;  %v1512_v21 = vrot.slane %v6105_v22, %v4741_v56 }
 0x22f   :  { %v3280_v36 = vrot.slane %v3252_v18, %v4756_v15  ;;  %v1516_v61 = vrot.slane %v6105_v22, %v4744_v57  ;;  %v3281_v30 = vcombine.low %v3259_v26, %v3266_v33  ;;  %v1520_v63 = vrot.slane %v6105_v22, %v4747_v11 }
 0x230   :  { %v3199_v49 = vcombine.low %v3191_v53, %v3198_v52  ;;  %v1524_v8 = vrot.slane %v6105_v22, %v4750_v12  ;;  %v1528_v28 = vrot.slane %v6105_v22, %v4753_v13  ;;  %v2759_v38 = vcombine.low %v1500_v62, %v1504_v41 }
 0x231   :  { %v3282_v39 = vcombine.low %v3273_v40, %v3280_v36  ;;  %v2760_v44 = vcombine.low %v1508_v42, %v1512_v21  ;;  %v3289_v25 = vrot.slane %v3281_v30, %v4756_v15  ;;  %v2761_v4 = vcombine.low %v1516_v61, %v1520_v63 }
 0x232   :  { %3708 = vperm.xlu1 %4394, %v3199_v49   ;;  %v1532_v14 = vrot.slane %v6106_v19, %v4732_v58  ;;  %v2762_v29 = vcombine.low %v1524_v8, %v1528_v28  ;;  %v2769_v1 = vrot.slane %v2759_v38, %v4756_v15  ;;  %v1536_v43 = vrot.slane %v6106_v19, %v4735_v10 }
 0x233   :  { %v3296_v0 = vrot.slane %v3282_v39, %v4756_v15  ;;  %v2776_v55 = vrot.slane %v2760_v44, %v4756_v15  ;;  %v2783_v2 = vrot.slane %v2761_v4, %v4756_v15  ;;  %v1540_v46 = vrot.slane %v6106_v19, %v4738_v50 }
 0x234   :  { %v2790_v20 = vrot.slane %v2762_v29, %v4756_v15  ;;  %v1544_v58 = vrot.slane %v6106_v19, %v4741_v56  ;;  %v1548_v32 = vrot.slane %v6106_v19, %v4744_v57  ;;  %v1552_v51 = vrot.slane %v6106_v19, %v4747_v11 }
 0x235   :  { %v3297_v16 = vcombine.low %v3289_v25, %v3296_v0  ;;  %v2791_v45 = vcombine.low %v2769_v1, %v2776_v55  ;;  %v1556_v35 = vrot.slane %v6106_v19, %v4750_v12  ;;  %v1560_v10 = vrot.slane %v6106_v19, %v4753_v13 }
 0x236   :  { %v2792_v50 = vcombine.low %v2783_v2, %v2790_v20  ;;  %v2808_v54 = vcombine.low %v1532_v14, %v1536_v43  ;;  %v2809_v37 = vcombine.low %v1540_v46, %v1544_v58  ;;  %v2810_v5 = vcombine.low %v1548_v32, %v1552_v51 }
 0x237   :  { %3714 = vperm.xlu1 %4394, %v3297_v16   ;;  %v2799_v60 = vrot.slane %v2791_v45, %v4756_v15  ;;  %v2811_v56 = vcombine.low %v1556_v35, %v1560_v10  ;;  %v3976_v59 = vrot.slane %v5442_v3, 4 }
 0x238   :  { %v2806_v47 = vrot.slane %v2792_v50, %v4756_v15  ;;  %v2818_v57 = vrot.slane %v2808_v54, %v4756_v15  ;;  %v2825_v11 = vrot.slane %v2809_v37, %v4756_v15  ;;  %v2832_v23 = vrot.slane %v2810_v5, %v4756_v15 }
 0x239   :  { %v2839_v12 = vrot.slane %v2811_v56, %v4756_v15  ;;  %v3977_v34 = vadd.f32 %v3976_v59, %v5442_v3 }
 0x23a   :  { %v2807_v7 = vcombine.low %v2799_v60, %v2806_v47  ;;  %v2840_v13 = vcombine.low %v2818_v57, %v2825_v11 }
 0x23b   :  { %v2841_v24 = vcombine.low %v2832_v23, %v2839_v12  ;;  %v3978_v17 = vrot.slane %v3977_v34, 2 }
 0x23c   :  { %3684 = vperm.xlu1 %4394, %v2807_v7   ;;  %v2848_v48 = vrot.slane %v2840_v13, %v4756_v15 }
 0x23d   :  { %v2855_v6 = vrot.slane %v2841_v24, %v4756_v15  ;;  %v3979_v31 = vadd.f32 %v3978_v17, %v3977_v34 }
 0x23f   :  { %v2856_v27 = vcombine.low %v2848_v48, %v2855_v6  ;;  %v3980_v53 = vrot.slane %v3979_v31, 1 }
 0x241   :  { %3687 = vperm.xlu1 %4394, %v2856_v27   ;;  %v3981_v18 = vadd.f32 %v3980_v53, %v3979_v31 }
 0x243   :  { %3982 = vst [vmem:[#allocation4] sm:$0x1] %v3981_v18 }
 0x244   :  { %4407 = shalt.err (!%p4404_p4)
}
 0x245   :  { %s4408_s29 = scalar_lea.hbm %s6029_s6, 16 }
 0x246   :  { %p4409_p5 = scmp.ne.s32.totalorder %s6029_s6, %s4408_s29  ;;  %p4412_p6 = scmp.lt.u32.totalorder %s4408_s29, %s6029_s6 }
 0x248   :  { %p4414_p7 = pnand %p4412_p6, %p4409_p5 }
 0x24a   :  { %4417 = shalt.err (!%p4414_p7)
}
 0x24b   :  { %4004 = dma.vmem_to_hbm [thread:$0]  %s4002_s25, 16, %s6029_s6, [#allocation5]   ;;  %v5793_v33 = vpop.permute.xlu1 %3645  ;;  %v3643_v14 = vpop.permute.xlu0 %3642  ;;  %v3741_v12 = vadd.s32 4294967288, %v4729_v9  ;;  %v3748_v13 = vadd.s32 4294967280, %v4729_v9  ;;  %v6107_v48 = vld [vmem:[#allocation8_spill] sm:$0xff]  ;;  %v3762_v59 = vadd.s32 4294967264, %v4729_v9 }
 0x24c   :  { %v3739_v34 = vsub.s32 %v4729_v9, %v6107_v48  ;;  %v3755_v53 = vadd.s32 4294967272, %v4729_v9  ;;  %vm3746_vm3 = vcmask 130112   ;;  %vm3753_vm4 = vcmask 195712  }
 0x24d   :  { %v3744_v6 = vsub.s32 %v3741_v12, %v6107_v48  ;;  %v3751_v27 = vsub.s32 %v3748_v13, %v6107_v48  ;;  %vm3760_vm5 = vcmask 261312   ;;  %vm3767_vm6 = vcmask 326912  }
 0x24e   :  { %vm3774_vm7 = vcmask 392512   ;;  %vm3788_vm8 = vcmask 523712   ;;  %vm3795_vm9 = vcmask 589312   ;;  %vm3802_vm10 = vcmask 654912  }
 0x24f   :  { %v5861_v55 = vpop.permute.xlu0 %3669  ;;  %v3745_v31 = vrot.slane %v5793_v33, %v3744_v6  ;;  %vm3809_vm11 = vcmask 720512   ;;  %vm3816_vm12 = vcmask 786112   ;;  %vm3823_vm13 = vcmask 851712  }
 0x250   :  { %v5803_v42 = vpop.permute.xlu1 %3651  ;;  %vm3830_vm14 = vcmask 917312   ;;  %vm3837_vm15 = vcmask 982912   ;;  %vm3844_vm1 = vcmask 1048512  }
 0x253   :  { %v5871_v46 = vpop.permute.xlu0 %3693 }
 0x255   :  { %v4295_v3 = vpop.f32.mrb[0].mxu1 }
 0x256   :  { %1024 = vst.msk [vmem:[%s6027_s4 + $0x38] sm:$0xff] %vm75_vm0, %v4295_v3  ;;  %v888_v22 = vpop.f32.mrb[1].mxu1  ;;  %v3765_v3 = vsub.s32 %v3762_v59, %v6107_v48 }
 0x257   :  { %1023 = vst.msk [vmem:[%s6027_s4 + $0x30] sm:$0xff] %vm75_vm0, %v888_v22  ;;  %v5883_v58 = vpop.permute.xlu0 %3699  ;;  %v3776_v22 = vadd.s32 4294967248, %v4729_v9 }
 0x258   :  { %v4286_v62 = vpop.f32.mrb[32].mxu0 }
 0x259   :  { %1018 = vst.msk [vmem:[%s6027_s4 + $0x8] sm:$0xff] %vm75_vm0, %v4286_v62  ;;  %v858_v41 = vpop.f32.mrb[33].mxu0  ;;  %v4298_v52 = vpop.f32.mrb[2].mxu1 }
 0x25a   :  { %1017 = vst.msk [vmem:[%s6027_s4] sm:$0xff] %vm75_vm0, %v858_v41  ;;  %1026 = vst.msk [vmem:[%s6027_s4 + $0x48] sm:$0xff] %vm75_vm0, %v4298_v52  ;;  %v898_v26 = vpop.f32.mrb[3].mxu1  ;;  %v3740_v41 = vrot.slane %v3643_v14, %v3739_v34 }
 0x25b   :  { %1025 = vst.msk [vmem:[%s6027_s4 + $0x40] sm:$0xff] %vm75_vm0, %v898_v26  ;;  %v5897_v50 = vpop.permute.xlu0 %3705  ;;  %v3797_v26 = vadd.s32 4294967224, %v4729_v9 }
 0x25c   :  { %v3747_v33 = vsel %vm3746_vm3, %v3745_v31, %v3740_v41 }
 0x25d   :  { %v4301_v40 = vpop.f32.mrb[4].mxu1  ;;  %v5813_v30 = vpop.permute.xlu1 %3648 }
 0x25e   :  { %1028 = vst.msk [vmem:[%s6027_s4 + $0x58] sm:$0xff] %vm75_vm0, %v4301_v40  ;;  %v908_v36 = vpop.f32.mrb[5].mxu1  ;;  %v3752_v18 = vrot.slane %v5813_v30, %v3751_v27  ;;  %v3769_v40 = vadd.s32 4294967256, %v4729_v9 }
 0x25f   :  { %1027 = vst.msk [vmem:[%s6027_s4 + $0x50] sm:$0xff] %vm75_vm0, %v908_v36  ;;  %v5909_v56 = vpop.permute.xlu0 %3711 }
 0x261   :  { %v4304_v21 = vpop.f32.mrb[6].mxu1 }
 0x262   :  { %1030 = vst.msk [vmem:[%s6027_s4 + $0x68] sm:$0xff] %vm75_vm0, %v4304_v21  ;;  %v918_v61 = vpop.f32.mrb[7].mxu1  ;;  %v3853_v21 = vrot.slane %v5871_v46, %v3744_v6 }
 0x263   :  { %1029 = vst.msk [vmem:[%s6027_s4 + $0x60] sm:$0xff] %vm75_vm0, %v918_v61  ;;  %v5921_v11 = vpop.permute.xlu0 %3717  ;;  %v3758_v61 = vsub.s32 %v3755_v53, %v6107_v48 }
 0x265   :  { %v4307_v49 = vpop.f32.mrb[8].mxu1 }
 0x266   :  { %1032 = vst.msk [vmem:[%s6027_s4 + $0x78] sm:$0xff] %vm75_vm0, %v4307_v49  ;;  %v928_v63 = vpop.f32.mrb[9].mxu1 }
 0x267   :  { %1031 = vst.msk [vmem:[%s6027_s4 + $0x70] sm:$0xff] %vm75_vm0, %v928_v63  ;;  %v5926_v7 = vpop.permute.xlu0 %3723  ;;  %v3754_v63 = vsel %vm3753_vm4, %v3752_v18, %v3747_v33 }
 0x269   :  { %v4310_v8 = vpop.f32.mrb[10].mxu1  ;;  %v5831_v28 = vpop.permute.xlu1 %3657 }
 0x26a   :  { %1034 = vst.msk [vmem:[%s6027_s4 + $0x88] sm:$0xff] %vm75_vm0, %v4310_v8  ;;  %v938_v39 = vpop.f32.mrb[11].mxu1 }
 0x26b   :  { %1033 = vst.msk [vmem:[%s6027_s4 + $0x80] sm:$0xff] %vm75_vm0, %v938_v39  ;;  %v5934_v17 = vpop.permute.xlu0 %3720  ;;  %v3779_v39 = vsub.s32 %v3776_v22, %v6107_v48  ;;  %v3839_v22 = vadd.s32 4294967176, %v4729_v9 }
 0x26d   :  { %v4313_v38 = vpop.f32.mrb[12].mxu1 }
 0x26e   :  { %1036 = vst.msk [vmem:[%s6027_s4 + $0x98] sm:$0xff] %vm75_vm0, %v4313_v38  ;;  %v948_v44 = vpop.f32.mrb[13].mxu1  ;;  %v3790_v38 = vadd.s32 4294967232, %v4729_v9 }
 0x26f   :  { %1035 = vst.msk [vmem:[%s6027_s4 + $0x90] sm:$0xff] %vm75_vm0, %v948_v44  ;;  %v5946_v30 = vpop.permute.xlu0 %3729 }
 0x270   :  { %v5841_v4 = vpop.permute.xlu1 %3654 }
 0x271   :  { %v4316_v25 = vpop.f32.mrb[14].mxu1  ;;  %v3766_v8 = vrot.slane %v5841_v4, %v3765_v3  ;;  %v3772_v4 = vsub.s32 %v3769_v40, %v6107_v48 }
 0x272   :  { %1038 = vst.msk [vmem:[%s6027_s4 + $0xa8] sm:$0xff] %vm75_vm0, %v4316_v25  ;;  %v958_v19 = vpop.f32.mrb[15].mxu1  ;;  %v3759_v25 = vrot.slane %v5803_v42, %v3758_v61  ;;  %v3783_v42 = vadd.s32 4294967240, %v4729_v9 }
 0x273   :  { %1037 = vst.msk [vmem:[%s6027_s4 + $0xa0] sm:$0xff] %vm75_vm0, %v958_v19 }
 0x274   :  { %v3761_v46 = vsel %vm3760_vm5, %v3759_v25, %v3754_v63  ;;  %v3842_v63 = vsub.s32 %v3839_v22, %v6107_v48 }
 0x275   :  { %v4319_v0 = vpop.f32.mrb[16].mxu1  ;;  %v5859_v1 = vpop.permute.xlu1 %3663 }
 0x276   :  { %1040 = vst.msk [vmem:[%s6027_s4 + $0xb8] sm:$0xff] %vm75_vm0, %v4319_v0  ;;  %v968_v29 = vpop.f32.mrb[17].mxu1 }
 0x277   :  { %1039 = vst.msk [vmem:[%s6027_s4 + $0xb0] sm:$0xff] %vm75_vm0, %v968_v29 }
 0x27a   :  { %v4322_v2 = vpop.f32.mrb[18].mxu1 }
 0x27b   :  { %1042 = vst.msk [vmem:[%s6027_s4 + $0xc8] sm:$0xff] %vm75_vm0, %v4322_v2  ;;  %v978_v43 = vpop.f32.mrb[19].mxu1  ;;  %v3800_v2 = vsub.s32 %v3797_v26, %v6107_v48 }
 0x27c   :  { %1041 = vst.msk [vmem:[%s6027_s4 + $0xc0] sm:$0xff] %vm75_vm0, %v978_v43  ;;  %v3863_v43 = vrot.slane %v5883_v58, %v3758_v61  ;;  %v3811_v58 = vadd.s32 4294967208, %v4729_v9 }
 0x27e   :  { %v3814_v41 = vsub.s32 %v3811_v58, %v6107_v48 }
 0x280   :  { %v4289_v20 = vpop.f32.mrb[34].mxu0 }
 0x281   :  { %1020 = vst.msk [vmem:[%s6027_s4 + $0x18] sm:$0xff] %vm75_vm0, %v4289_v20  ;;  %v868_v45 = vpop.f32.mrb[35].mxu0  ;;  %v3768_v20 = vsel %vm3767_vm6, %v3766_v8, %v3761_v46 }
 0x282   :  { %v5873_v16 = vpop.permute.xlu1 %3660  ;;  %1019 = vst.msk [vmem:[%s6027_s4 + $0x10] sm:$0xff] %vm75_vm0, %v868_v45 }
 0x283   :  { %v4325_v32 = vpop.f32.mrb[20].mxu1  ;;  %v3780_v45 = vrot.slane %v5873_v16, %v3779_v39  ;;  %v3818_v16 = vadd.s32 4294967200, %v4729_v9 }
 0x284   :  { %1044 = vst.msk [vmem:[%s6027_s4 + $0xd8] sm:$0xff] %vm75_vm0, %v4325_v32  ;;  %v988_v35 = vpop.f32.mrb[21].mxu1  ;;  %v3793_v32 = vsub.s32 %v3790_v38, %v6107_v48 }
 0x285   :  { %1043 = vst.msk [vmem:[%s6027_s4 + $0xd0] sm:$0xff] %vm75_vm0, %v988_v35  ;;  %v3773_v35 = vrot.slane %v5831_v28, %v3772_v4 }
 0x286   :  { %v5885_v51 = vpop.permute.xlu1 %3666 }
 0x287   :  { %v3775_v6 = vsel %vm3774_vm7, %v3773_v35, %v3768_v20 }
 0x28c   :  { %v5895_v10 = vpop.permute.xlu1 %3675 }
 0x28d   :  { %v4292_v60 = vpop.f32.mrb[36].mxu0 }
 0x28e   :  { %1022 = vst.msk [vmem:[%s6027_s4 + $0x28] sm:$0xff] %vm75_vm0, %v4292_v60  ;;  %v878_v54 = vpop.f32.mrb[37].mxu0 }
 0x28f   :  { %1021 = vst.msk [vmem:[%s6027_s4 + $0x20] sm:$0xff] %vm75_vm0, %v878_v54  ;;  %v3873_v54 = vrot.slane %v5897_v50, %v3772_v4  ;;  %v3794_v50 = vrot.slane %v5885_v51, %v3793_v32  ;;  %v3821_v51 = vsub.s32 %v3818_v16, %v6107_v48 }
 0x290   :  { %v4328_v5 = vpop.f32.mrb[22].mxu1 }
 0x291   :  { %v5903_v37 = vpop.permute.xlu1 %3672  ;;  %1046 = vst.msk [vmem:[%s6027_s4 + $0xe8] sm:$0xff] %vm75_vm0, %v4328_v5  ;;  %v998_v47 = vpop.f32.mrb[23].mxu1  ;;  %v3804_v5 = vadd.s32 4294967216, %v4729_v9 }
 0x292   :  { %1045 = vst.msk [vmem:[%s6027_s4 + $0xe0] sm:$0xff] %vm75_vm0, %v998_v47  ;;  %v3727_v47 = vpop.permute.xlu0 %3726 }
 0x293   :  { %v3807_v18 = vsub.s32 %v3804_v5, %v6107_v48 }
 0x295   :  { %v3898_v61 = vrot.slane %v5934_v17, %v3807_v18  ;;  %v3815_v17 = vrot.slane %v5895_v10, %v3814_v41 }
 0x296   :  { %v5919_v57 = vpop.permute.xlu1 %3681  ;;  %v3733_v26 = vpop.permute.xlu0 %3732 }
 0x29c   :  { %v5923_v23 = vpop.permute.xlu1 %3678 }
 0x29d   :  { %v3822_v25 = vrot.slane %v5923_v23, %v3821_v51 }
 0x2a1   :  { %v3691_v24 = vpop.permute.xlu1 %3690 }
 0x2a2   :  { %v3849_v52 = vrot.slane %v3691_v24, %v3739_v34  ;;  %v3786_v24 = vsub.s32 %v3783_v42, %v6107_v48  ;;  %v3825_v34 = vadd.s32 4294967192, %v4729_v9 }
 0x2a4   :  { %v3854_v19 = vsel %vm3746_vm3, %v3853_v21, %v3849_v52  ;;  %v3787_v31 = vrot.slane %v5859_v1, %v3786_v24  ;;  %v3828_v21 = vsub.s32 %v3825_v34, %v6107_v48 }
 0x2a6   :  { %v3697_v62 = vpop.permute.xlu1 %3696 }
 0x2a7   :  { %v3858_v36 = vrot.slane %v3697_v62, %v3751_v27  ;;  %v4331_v49 = vpop.f32.mrb[24].mxu1  ;;  %v3801_v27 = vrot.slane %v5861_v55, %v3800_v2  ;;  %v3883_v62 = vrot.slane %v5909_v56, %v3786_v24 }
 0x2a8   :  { %1048 = vst.msk [vmem:[%s6027_s4 + $0xf8] sm:$0xff] %vm75_vm0, %v4331_v49  ;;  %v1008_v44 = vpop.f32.mrb[25].mxu1 }
 0x2a9   :  { %1047 = vst.msk [vmem:[%s6027_s4 + $0xf0] sm:$0xff] %vm75_vm0, %v1008_v44  ;;  %v3859_v0 = vsel %vm3753_vm4, %v3858_v36, %v3854_v19  ;;  %vm3781_vm0 = vcmask 458112   ;;  %v3808_v36 = vrot.slane %v5903_v37, %v3807_v18  ;;  %v3908_v44 = vrot.slane %v3727_v47, %v3821_v51  ;;  %s4449_s4 = smov [#allocation2]  }
 0x2aa   :  { %v3864_v60 = vsel %vm3760_vm5, %v3863_v43, %v3859_v0  ;;  %v3782_v59 = vsel %vm3781_vm0, %v3780_v45, %v3775_v6  ;;  %v3829_v45 = vrot.slane %v5919_v57, %v3828_v21  ;;  %s3991_s6 = sshll.u32 %s4449_s4, 4  ;;  %v6108_v47 = vlaneseq  ;;  %s3992_s6 = int_to_ptr.vmem [resolvable:$true] %s3991_s6 }
 0x2ab   :  { %v3703_v14 = vpop.permute.xlu1 %3702  ;;  %v3789_v52 = vsel %vm3788_vm8, %v3787_v31, %v3782_v59  ;;  %s4418_s16 = scalar_lea.vmem %s3992_s6, 32  ;;  %p4423_p9 = scmp.lt.s32.totalorder %s3992_s6, %s3992_s6 }
 0x2ac   :  { %v3868_v29 = vrot.slane %v3703_v14, %v3765_v3  ;;  %v3832_v3 = vadd.s32 4294967184, %v4729_v9  ;;  %v3796_v40 = vsel %vm3795_vm9, %v3794_v50, %v3789_v52  ;;  %v3893_v9 = vrot.slane %v5921_v11, %v3800_v2  ;;  %p4419_p8 = scmp.ne.s32.totalorder %s3992_s6, %s4418_s16  ;;  %p4424_p10 = scmp.lt.s32.totalorder %s4418_s16, %s4418_s16 }
 0x2ad   :  { %v3803_v38 = vsel %vm3802_vm10, %v3801_v27, %v3796_v40  ;;  %v3913_v14 = vrot.slane %v5946_v30, %v3828_v21  ;;  %vm3942_vm2 = vcmp.lt.s32.totalorder %v6108_v47, 256 }
 0x2ae   :  { %v3869_v12 = vsel %vm3767_vm6, %v3868_v29, %v3864_v60  ;;  %v3835_v49 = vsub.s32 %v3832_v3, %v6107_v48  ;;  %v3810_v11 = vsel %vm3809_vm11, %v3808_v36, %v3803_v38  ;;  %v3736_v29 = vpop.permute.xlu0 %3735  ;;  %p4425_p11 = por %p4424_p10, %p4423_p9 }
 0x2af   :  { %v3874_v53 = vsel %vm3774_vm7, %v3873_v54, %v3869_v12  ;;  %v3923_v23 = vrot.slane %v3736_v29, %v3842_v63 }
 0x2b0   :  { %v3918_v48 = vrot.slane %v3733_v26, %v3835_v49  ;;  %p4426_p12 = pnand %p4425_p11, %p4419_p8 }
 0x2b1   :  { %v3709_v13 = vpop.permute.xlu1 %3708 }
 0x2b2   :  { %v3878_v28 = vrot.slane %v3709_v13, %v3779_v39  ;;  %v3903_v39 = vrot.slane %v5926_v7, %v3814_v41  ;;  %v3817_v7 = vsel %vm3816_vm12, %v3815_v17, %v3810_v11 }
 0x2b3   :  { %v3824_v42 = vsel %vm3823_vm13, %v3822_v25, %v3817_v7 }
 0x2b4   :  { %v3879_v55 = vsel %vm3781_vm0, %v3878_v28, %v3874_v53 }
 0x2b5   :  { %v3884_v56 = vsel %vm3788_vm8, %v3883_v62, %v3879_v55 }
 0x2b6   :  { %v3715_v1 = vpop.permute.xlu1 %3714 }
 0x2b7   :  { %v3888_v33 = vrot.slane %v3715_v1, %v3793_v32  ;;  %v3831_v32 = vsel %vm3830_vm14, %v3829_v45, %v3824_v42 }
 0x2b9   :  { %v3889_v8 = vsel %vm3795_vm9, %v3888_v33, %v3884_v56 }
 0x2ba   :  { %v3894_v37 = vsel %vm3802_vm10, %v3893_v9, %v3889_v8 }
 0x2bb   :  { %v3899_v19 = vsel %vm3809_vm11, %v3898_v61, %v3894_v37  ;;  %v3685_v0 = vpop.permute.xlu1 %3684 }
 0x2bc   :  { %v3904_v4 = vsel %vm3816_vm12, %v3903_v39, %v3899_v19  ;;  %v3836_v46 = vrot.slane %v3685_v0, %v3835_v49 }
 0x2bd   :  { %v3909_v2 = vsel %vm3823_vm13, %v3908_v44, %v3904_v4 }
 0x2be   :  { %v3914_v43 = vsel %vm3830_vm14, %v3913_v14, %v3909_v2  ;;  %v3838_v60 = vsel %vm3837_vm15, %v3836_v46, %v3831_v32 }
 0x2bf   :  { %v3919_v20 = vsel %vm3837_vm15, %v3918_v48, %v3914_v43 }
 0x2c0   :  { %v3688_v30 = vpop.permute.xlu1 %3687  ;;  %v3924_v10 = vsel %vm3844_vm1, %v3923_v23, %v3919_v20 }
 0x2c1   :  { %v3843_v35 = vrot.slane %v3688_v30, %v3842_v63 }
 0x2c3   :  { %v3845_v54 = vsel %vm3844_vm1, %v3843_v35, %v3838_v60 }
 0x2c4   :  { %v3925_v58 = vcombine.low %v3845_v54, %v3924_v10 }
 0x2c6   :  { %v3932_v5 = vrot.slane %v3925_v58, %v4756_v15 }
 0x2c8   :  { %v3939_v12 = vrot.slane %v3932_v5, %v4756_v15 }
 0x2ca   :  { %3944 = vst.msk [vmem:[#allocation2] sm:$0x3] %vm3942_vm2, %v3939_v12 }
 0x2cb   :  { %4429 = shalt.err (!%p4426_p12)
}
 0x2cc   :  { %s4430_s19 = scalar_lea.hbm %s6028_s5, 32 }
 0x2cd   :  { %p4431_p13 = scmp.ne.s32.totalorder %s6028_s5, %s4430_s19  ;;  %p4434_p0 = scmp.lt.u32.totalorder %s4430_s19, %s6028_s5 }
 0x2cf   :  { %p4436_p1 = pnand %p4434_p0, %p4431_p13 }
 0x2d1   :  { %4439 = shalt.err (!%p4436_p1)
}
 0x2d2   :  { %3994 = dma.vmem_to_hbm [thread:$0]  %s3992_s6, 32, %s6028_s5, [#allocation3]  }
 0x2d3   :  { %4440 = dma.done.wait [#allocation3], 32  }
 0x2d4   :  { %4441 = vsyncadd [#allocation3], 4294967264 }
 0x2d5   :  { %4442 = dma.done.wait [#allocation5], 16  }
 0x2d6   :  { %4443 = vsyncadd [#allocation5], 4294967280 }
 0x2d7   :  { %4013 = vsyncpa [#allocation3], 1 }
 0x2d8   :  { %4014 = vsyncpa [#allocation5], 1 }

</bundles_post_ra>
